<compile_context>
chip_gen: v6e
topology: v6e:2x2x1
jax: 0.10.0
libtpu: 0.0.40
codegen_flags: <defaults>
</compile_context>

<pallas_src>
import jax
import jax.numpy as jnp
from jax.experimental import pallas as pl
from jax.experimental.pallas import tpu as pltpu

# MXU-input dtype for the big matmuls; accumulation + elementwise stay f32.
MATMUL_DTYPE = jnp.bfloat16


# ------------------- one-time weight-side layout plumbing -------------------


def _prep_params(params, H, W):
    """Build banded conv matrices / pooled-layout fc1 weights (host side)."""
    (w1, b1, w2, b2, fw1, fb1, fw2, fb2) = params
    KH, KW, Cin, C1 = w1.shape
    C2 = w2.shape[-1]
    assert Cin == 1, "MNIST single-channel input"
    Wo = W - KW + 1
    W2 = Wo - KW + 1
    Po = W2 // 2
    Qo = W2 // 2
    NH = fw1.shape[1]
    NCLS = fw2.shape[1]

    # conv1 banded matrix: A1[kh][w_in, wo*C1 + c] = w1[kh, w_in - wo, 0, c]
    wo_idx = jnp.arange(Wo)
    A1 = jnp.zeros((KH, W, Wo, C1), jnp.float32)
    for kw in range(KW):
        A1 = A1.at[:, wo_idx + kw, wo_idx, :].set(
            w1[:, kw, 0, :].astype(jnp.float32)[:, None, :])
    A1 = A1.reshape(KH, W, Wo * C1)                       # f32 (conv1 stays f32)

    # conv2 banded matrix: A2[kh][wo*C1 + c, w2*C2 + c2] = w2[kh, wo - w2, c, c2]
    w2i = jnp.arange(W2)
    A2 = jnp.zeros((KH, Wo, C1, W2, C2), jnp.float32)
    for kw in range(KW):
        A2 = A2.at[:, w2i + kw, :, w2i, :].set(w2[:, kw, :, :].astype(jnp.float32))
    A2 = A2.reshape(KH, Wo * C1, W2 * C2).astype(MATMUL_DTYPE)

    # fc1 rows scattered to the pooled lane layout:
    #   FW1e[p, w2*C2 + c2, j] = fw1[c2*Po*Qo + p*Qo + q, j] if w2 == 2q else 0
    # (torch NCHW flatten order is folded in here; odd-w2 lanes hit zero rows.)
    fw1_t = fw1.reshape(C2, Po, Qo, NH)
    FW1e = jnp.zeros((Po, W2, C2, NH), jnp.float32)
    FW1e = FW1e.at[:, 0::2, :, :].set(
        jnp.transpose(fw1_t, (1, 2, 0, 3)).astype(jnp.float32))
    FW1e = FW1e.reshape(Po, W2 * C2, NH).astype(MATMUL_DTYPE)

    b1t = jnp.tile(b1.astype(jnp.float32), Wo).reshape(1, Wo * C1)
    b2t = jnp.tile(b2.astype(jnp.float32), W2).reshape(1, W2 * C2)
    fb1r = fb1.reshape(1, NH).astype(jnp.float32)
    fw2m = fw2.astype(MATMUL_DTYPE)
    fb2r = fb2.reshape(1, NCLS).astype(jnp.float32)
    return (A1, b1t, A2, b2t, FW1e, fb1r, fw2m, fb2r)


# --------------------------------- wrapper ----------------------------------


def model_part_wrapper_forward(x_nchw, params, block_n=64):
    """Forward pass of ModelPartWrapper(nn.Sequential(mnist_stack))."""
    (w1, b1, w2, b2, fw1, fb1, fw2, fb2) = params
    N, Cin, H, W = x_nchw.shape
    KH, KW, _, C1 = w1.shape
    C2 = w2.shape[-1]
    assert Cin == 1
    Ho, Wo = H - KH + 1, W - KW + 1
    H2, W2 = Ho - KH + 1, Wo - KW + 1
    Po, Qo = H2 // 2, W2 // 2
    NH = fw1.shape[1]
    NCLS = fw2.shape[1]
    assert fw1.shape[0] == C2 * Po * Qo
    WoC1 = Wo * C1
    W2C2 = W2 * C2

    # Batch block: multiple of 8 (keeps all in-kernel row slices tile-aligned)
    # unless the whole (padded) batch fits in one block.  Batch is padded to a
    # multiple of the block, so any N works.
    if N <= block_n:
        nb = N
    else:
        nb = max(8, (block_n // 8) * 8)
    nblk = -(-N // nb)
    n_pad = nblk * nb

    (A1, b1t, A2, b2t, FW1e, fb1r, fw2m, fb2r) = _prep_params(params, H, W)

    # Input layout: rows = (block, h, n_in_block), lanes = w.  Host-side
    # transpose on a ~1 KB/sample input is negligible.
    x = x_nchw[:, 0, :, :].astype(jnp.float32)
    if n_pad != N:
        x = jnp.concatenate([x, jnp.zeros((n_pad - N, H, W), jnp.float32)], 0)
    x2d = (x.reshape(nblk, nb, H, W).transpose(0, 2, 1, 3)
            .reshape(nblk * H * nb, W))

    # TODO(synk): Dropout layers are identity at inference; no kernel needed.

    def kernel(x_ref, a1_ref, b1_ref, a2_ref, b2_ref,
               fw1_ref, fb1_ref, fw2_ref, fb2_ref, o_ref):
        xf = x_ref[...]                               # (H*nb, W) f32, rows (h, n)

        # conv1 + ReLU: 3 banded f32 matmuls on the MXU, accumulate.
        y1 = jnp.zeros((Ho * nb, WoC1), jnp.float32)
        for kh in range(KH):
            y1 = y1 + jnp.dot(xf[kh * nb:(kh + Ho) * nb, :], a1_ref[kh],
                              preferred_element_type=jnp.float32)
        y1 = jnp.maximum(y1 + b1_ref[...], 0.0).astype(MATMUL_DTYPE)

        # conv2 + ReLU: 3 banded bf16 matmuls, f32 accumulate.
        y2 = jnp.zeros((H2 * nb, W2C2), jnp.float32)
        for kh in range(KH):
            y2 = y2 + jnp.dot(y1[kh * nb:(kh + H2) * nb, :], a2_ref[kh],
                              preferred_element_type=jnp.float32)
        y2 = jnp.maximum(y2 + b2_ref[...], 0.0)       # (12*nb, 768) f32

        # 2x2 max-pool fused with fc1.  H-max: adjacent nb-row blocks.
        # W-max: adjacent 64-lane channel groups (each pool pair spans exactly
        # one 128-lane tile); the shifted copy is an explicit lane-concat so
        # the semantics are unambiguous.  Odd-w2 lanes of `wm` are unused and
        # hit exactly-zero rows of fw1_ref.
        h = jnp.zeros((nb, NH), jnp.float32)
        for p in range(Po):
            r0 = y2[(2 * p) * nb:(2 * p + 1) * nb, :]
            r1 = y2[(2 * p + 1) * nb:(2 * p + 2) * nb, :]
            hm = jnp.maximum(r0, r1)                  # (nb, 768)
            shifted = jnp.concatenate([hm[:, C2:], hm[:, :C2]], axis=-1)
            wm = jnp.maximum(hm, shifted).astype(MATMUL_DTYPE)
            h = h + jnp.dot(wm, fw1_ref[p], preferred_element_type=jnp.float32)
        h = jnp.maximum(h + fb1_ref[...], 0.0).astype(MATMUL_DTYPE)

        # fc2 + log_softmax.
        logits = jnp.dot(h, fw2_ref[...],
                         preferred_element_type=jnp.float32) + fb2_ref[...]
        m = jnp.max(logits, axis=-1, keepdims=True)
        lse = jnp.log(jnp.sum(jnp.exp(logits - m), axis=-1, keepdims=True)) + m
        o_ref[...] = logits - lse

    out = pl.pallas_call(
        kernel,
        out_shape=jax.ShapeDtypeStruct((n_pad, NCLS), jnp.float32),
        grid=(nblk,),
        in_specs=[
            pl.BlockSpec((H * nb, W), lambda b: (b, 0)),            # x (batch block)
            pl.BlockSpec((KH, W, WoC1), lambda b: (0, 0, 0)),       # conv1 banded
            pl.BlockSpec((1, WoC1), lambda b: (0, 0)),              # b1 tiled
            pl.BlockSpec((KH, WoC1, W2C2), lambda b: (0, 0, 0)),    # conv2 banded
            pl.BlockSpec((1, W2C2), lambda b: (0, 0)),              # b2 tiled
            pl.BlockSpec((Po, W2C2, NH), lambda b: (0, 0, 0)),      # fc1 (pooled layout)
            pl.BlockSpec((1, NH), lambda b: (0, 0)),                # fb1
            pl.BlockSpec((NH, NCLS), lambda b: (0, 0)),             # fc2
            pl.BlockSpec((1, NCLS), lambda b: (0, 0)),              # fb2
        ],
        out_specs=pl.BlockSpec((nb, NCLS), lambda b: (b, 0)),
        compiler_params=pltpu.CompilerParams(
            dimension_semantics=("parallel",),        # batch blocks shard across TCs
            vmem_limit_bytes=48 * 1024 * 1024),       # ~15 MB used at nb=64; fits v7x
    )(x2d, A1, b1t, A2, b2t, FW1e, fb1r, fw2m, fb2r)
    return out[:N]


# -------------------------------- reference ---------------------------------


def reference_forward(x_nchw, params):
    (w1, b1, w2, b2, fw1, fb1, fw2, fb2) = params
    x = jnp.transpose(x_nchw, (0, 2, 3, 1))
    dn = ("NHWC", "HWIO", "NHWC")
    y = jax.lax.conv_general_dilated(x, w1, (1, 1), "VALID",
                                     dimension_numbers=dn) + b1.reshape(1, 1, 1, -1)
    y = jnp.maximum(y, 0.0)
    y = jax.lax.conv_general_dilated(y, w2, (1, 1), "VALID",
                                     dimension_numbers=dn) + b2.reshape(1, 1, 1, -1)
    y = jnp.maximum(y, 0.0)
    N, H, W, C = y.shape
    y = y.reshape(N, H // 2, 2, W // 2, 2, C).max(axis=(2, 4))
    flat = jnp.transpose(y, (0, 3, 1, 2)).reshape(N, -1)   # torch NCHW flatten
    h = jnp.maximum(flat @ fw1 + fb1.reshape(1, -1), 0.0)
    logits = h @ fw2 + fb2.reshape(1, -1)
    return jax.nn.log_softmax(logits, axis=-1)


# ----------------------------------- main ------------------------------------


if __name__ == "__main__":
    key = jax.random.PRNGKey(0)
    ks = jax.random.split(key, 9)

    N, Cin, H, W = 2, 1, 16, 16          # small MNIST-like input (NCHW)
    C1, C2, NH, NCLS = 32, 64, 128, 10
    FLAT = C2 * ((H - 4) // 2) * ((W - 4) // 2)   # 64 * 6 * 6 = 2304

    w1 = jax.random.normal(ks[0], (3, 3, Cin, C1), jnp.float32) * 0.10
    b1 = jax.random.normal(ks[1], (C1,), jnp.float32) * 0.10
    w2 = jax.random.normal(ks[2], (3, 3, C1, C2), jnp.float32) * 0.05
    b2 = jax.random.normal(ks[3], (C2,), jnp.float32) * 0.05
    fw1 = jax.random.normal(ks[4], (FLAT, NH), jnp.float32) * 0.02
    fb1 = jax.random.normal(ks[5], (NH,), jnp.float32) * 0.02
    fw2 = jax.random.normal(ks[6], (NH, NCLS), jnp.float32) * 0.05
    fb2 = jax.random.normal(ks[7], (NCLS,), jnp.float32) * 0.05
    params = (w1, b1, w2, b2, fw1, fb1, fw2, fb2)

    x = jax.random.normal(ks[8], (N, Cin, H, W), jnp.float32)

    out = model_part_wrapper_forward(x, params)
    out = jax.block_until_ready(out)

    ref = jax.block_until_ready(reference_forward(x, params))
    assert out.shape == (N, NCLS), out.shape
    # bf16 MXU inputs for conv2/fc1/fc2 (f32 accumulation) vs. the pure-f32
    # reference -> same tolerance profile as the previously accepted version.
    assert jnp.allclose(out, ref, atol=2e-2, rtol=2e-2), (
        float(jnp.max(jnp.abs(out - ref))))

    print("KERNEL_OK")
</pallas_src>

<mosaic_0001>
module attributes {stable_mosaic.version = 11 : i64} {
  func.func @kernel(%arg0: i32, %arg1: memref<32x16xf32, #tpu.memory_space<vmem>>, %arg2: memref<3x16x448xf32, #tpu.memory_space<vmem>>, %arg3: memref<1x448xf32, #tpu.memory_space<vmem>>, %arg4: memref<3x448x768xbf16, #tpu.memory_space<vmem>>, %arg5: memref<1x768xf32, #tpu.memory_space<vmem>>, %arg6: memref<6x768x128xbf16, #tpu.memory_space<vmem>>, %arg7: memref<1x128xf32, #tpu.memory_space<vmem>>, %arg8: memref<128x10xbf16, #tpu.memory_space<vmem>>, %arg9: memref<1x10xf32, #tpu.memory_space<vmem>>, %arg10: memref<2x10xf32, #tpu.memory_space<vmem>>) attributes {dimension_semantics = [#tpu.dimension_semantics<parallel>], iteration_bounds = array<i64: 1>, scalar_prefetch = 0 : i64, scratch_operands = 0 : i64, tpu.core_type = #tpu.core_type<tc>, window_params = [{transform_indices = @transform_0, window_bounds = array<i64: 32, 16>}, {pipeline_mode = #tpu.pipeline_mode<synchronous>, transform_indices = @transform_1, window_bounds = array<i64: 3, 16, 448>}, {pipeline_mode = #tpu.pipeline_mode<synchronous>, transform_indices = @transform_2, window_bounds = array<i64: 1, 448>}, {pipeline_mode = #tpu.pipeline_mode<synchronous>, transform_indices = @transform_3, window_bounds = array<i64: 3, 448, 768>}, {pipeline_mode = #tpu.pipeline_mode<synchronous>, transform_indices = @transform_4, window_bounds = array<i64: 1, 768>}, {pipeline_mode = #tpu.pipeline_mode<synchronous>, transform_indices = @transform_5, window_bounds = array<i64: 6, 768, 128>}, {pipeline_mode = #tpu.pipeline_mode<synchronous>, transform_indices = @transform_6, window_bounds = array<i64: 1, 128>}, {pipeline_mode = #tpu.pipeline_mode<synchronous>, transform_indices = @transform_7, window_bounds = array<i64: 128, 10>}, {pipeline_mode = #tpu.pipeline_mode<synchronous>, transform_indices = @transform_8, window_bounds = array<i64: 1, 10>}, {transform_indices = @transform_9, window_bounds = array<i64: 2, 10>}]} {
    %c0 = arith.constant 0 : index
    %c0_0 = arith.constant 0 : index
    %0 = vector.load %arg1[%c0, %c0_0] : memref<32x16xf32, #tpu.memory_space<vmem>>, vector<32x16xf32>
    %cst = arith.constant 0.000000e+00 : f32
    %1 = vector.broadcast %cst : f32 to vector<28x448xf32>
    %2 = vector.extract_strided_slice %0 {offsets = [0, 0], sizes = [28, 16], strides = [1, 1]} : vector<32x16xf32> to vector<28x16xf32>
    %c0_1 = arith.constant 0 : index
    %c0_2 = arith.constant 0 : index
    %c0_3 = arith.constant 0 : index
    %3 = vector.load %arg2[%c0_1, %c0_2, %c0_3] : memref<3x16x448xf32, #tpu.memory_space<vmem>>, vector<1x16x448xf32>
    %4 = vector.shape_cast %3 : vector<1x16x448xf32> to vector<16x448xf32>
    %cst_4 = arith.constant dense<0.000000e+00> : vector<28x448xf32>
    %5 = tpu.matmul %2, %4, %cst_4 {dimension_numbers = #tpu.dot_dimension_numbers<[1], [0], [0], [1], [0, 0, 1, 1], [], []>} : vector<28x16xf32>, vector<16x448xf32>, vector<28x448xf32> -> vector<28x448xf32>
    %6 = arith.addf %1, %5 : vector<28x448xf32>
    %7 = vector.extract_strided_slice %0 {offsets = [2, 0], sizes = [28, 16], strides = [1, 1]} : vector<32x16xf32> to vector<28x16xf32>
    %c1 = arith.constant 1 : index
    %c0_5 = arith.constant 0 : index
    %c0_6 = arith.constant 0 : index
    %8 = vector.load %arg2[%c1, %c0_5, %c0_6] : memref<3x16x448xf32, #tpu.memory_space<vmem>>, vector<1x16x448xf32>
    %9 = vector.shape_cast %8 : vector<1x16x448xf32> to vector<16x448xf32>
    %cst_7 = arith.constant dense<0.000000e+00> : vector<28x448xf32>
    %10 = tpu.matmul %7, %9, %cst_7 {dimension_numbers = #tpu.dot_dimension_numbers<[1], [0], [0], [1], [0, 0, 1, 1], [], []>} : vector<28x16xf32>, vector<16x448xf32>, vector<28x448xf32> -> vector<28x448xf32>
    %11 = arith.addf %6, %10 : vector<28x448xf32>
    %12 = vector.extract_strided_slice %0 {offsets = [4, 0], sizes = [28, 16], strides = [1, 1]} : vector<32x16xf32> to vector<28x16xf32>
    %c2 = arith.constant 2 : index
    %c0_8 = arith.constant 0 : index
    %c0_9 = arith.constant 0 : index
    %13 = vector.load %arg2[%c2, %c0_8, %c0_9] : memref<3x16x448xf32, #tpu.memory_space<vmem>>, vector<1x16x448xf32>
    %14 = vector.shape_cast %13 : vector<1x16x448xf32> to vector<16x448xf32>
    %cst_10 = arith.constant dense<0.000000e+00> : vector<28x448xf32>
    %15 = tpu.matmul %12, %14, %cst_10 {dimension_numbers = #tpu.dot_dimension_numbers<[1], [0], [0], [1], [0, 0, 1, 1], [], []>} : vector<28x16xf32>, vector<16x448xf32>, vector<28x448xf32> -> vector<28x448xf32>
    %16 = arith.addf %11, %15 : vector<28x448xf32>
    %c0_11 = arith.constant 0 : index
    %c0_12 = arith.constant 0 : index
    %17 = vector.load %arg3[%c0_11, %c0_12] : memref<1x448xf32, #tpu.memory_space<vmem>>, vector<1x448xf32>
    %18 = vector.broadcast %17 : vector<1x448xf32> to vector<28x448xf32>
    %19 = arith.addf %16, %18 : vector<28x448xf32>
    %cst_13 = arith.constant 0.000000e+00 : f32
    %20 = vector.broadcast %cst_13 : f32 to vector<28x448xf32>
    %21 = arith.maximumf %19, %20 : vector<28x448xf32>
    %22 = arith.truncf %21 : vector<28x448xf32> to vector<28x448xbf16>
    %cst_14 = arith.constant 0.000000e+00 : f32
    %23 = vector.broadcast %cst_14 : f32 to vector<24x768xf32>
    %24 = vector.extract_strided_slice %22 {offsets = [0, 0], sizes = [24, 448], strides = [1, 1]} : vector<28x448xbf16> to vector<24x448xbf16>
    %c0_15 = arith.constant 0 : index
    %c0_16 = arith.constant 0 : index
    %c0_17 = arith.constant 0 : index
    %25 = vector.load %arg4[%c0_15, %c0_16, %c0_17] : memref<3x448x768xbf16, #tpu.memory_space<vmem>>, vector<1x448x768xbf16>
    %26 = vector.shape_cast %25 : vector<1x448x768xbf16> to vector<448x768xbf16>
    %cst_18 = arith.constant dense<0.000000e+00> : vector<24x768xf32>
    %27 = tpu.matmul %24, %26, %cst_18 {dimension_numbers = #tpu.dot_dimension_numbers<[1], [0], [0], [1], [0, 0, 1, 1], [], []>} : vector<24x448xbf16>, vector<448x768xbf16>, vector<24x768xf32> -> vector<24x768xf32>
    %28 = arith.addf %23, %27 : vector<24x768xf32>
    %29 = vector.extract_strided_slice %22 {offsets = [2, 0], sizes = [24, 448], strides = [1, 1]} : vector<28x448xbf16> to vector<24x448xbf16>
    %c1_19 = arith.constant 1 : index
    %c0_20 = arith.constant 0 : index
    %c0_21 = arith.constant 0 : index
    %30 = vector.load %arg4[%c1_19, %c0_20, %c0_21] : memref<3x448x768xbf16, #tpu.memory_space<vmem>>, vector<1x448x768xbf16>
    %31 = vector.shape_cast %30 : vector<1x448x768xbf16> to vector<448x768xbf16>
    %cst_22 = arith.constant dense<0.000000e+00> : vector<24x768xf32>
    %32 = tpu.matmul %29, %31, %cst_22 {dimension_numbers = #tpu.dot_dimension_numbers<[1], [0], [0], [1], [0, 0, 1, 1], [], []>} : vector<24x448xbf16>, vector<448x768xbf16>, vector<24x768xf32> -> vector<24x768xf32>
    %33 = arith.addf %28, %32 : vector<24x768xf32>
    %34 = vector.extract_strided_slice %22 {offsets = [4, 0], sizes = [24, 448], strides = [1, 1]} : vector<28x448xbf16> to vector<24x448xbf16>
    %c2_23 = arith.constant 2 : index
    %c0_24 = arith.constant 0 : index
    %c0_25 = arith.constant 0 : index
    %35 = vector.load %arg4[%c2_23, %c0_24, %c0_25] : memref<3x448x768xbf16, #tpu.memory_space<vmem>>, vector<1x448x768xbf16>
    %36 = vector.shape_cast %35 : vector<1x448x768xbf16> to vector<448x768xbf16>
    %cst_26 = arith.constant dense<0.000000e+00> : vector<24x768xf32>
    %37 = tpu.matmul %34, %36, %cst_26 {dimension_numbers = #tpu.dot_dimension_numbers<[1], [0], [0], [1], [0, 0, 1, 1], [], []>} : vector<24x448xbf16>, vector<448x768xbf16>, vector<24x768xf32> -> vector<24x768xf32>
    %38 = arith.addf %33, %37 : vector<24x768xf32>
    %c0_27 = arith.constant 0 : index
    %c0_28 = arith.constant 0 : index
    %39 = vector.load %arg5[%c0_27, %c0_28] : memref<1x768xf32, #tpu.memory_space<vmem>>, vector<1x768xf32>
    %40 = vector.broadcast %39 : vector<1x768xf32> to vector<24x768xf32>
    %41 = arith.addf %38, %40 : vector<24x768xf32>
    %cst_29 = arith.constant 0.000000e+00 : f32
    %42 = vector.broadcast %cst_29 : f32 to vector<24x768xf32>
    %43 = arith.maximumf %41, %42 : vector<24x768xf32>
    %cst_30 = arith.constant 0.000000e+00 : f32
    %44 = vector.broadcast %cst_30 : f32 to vector<2x128xf32>
    %45 = vector.extract_strided_slice %43 {offsets = [0, 0], sizes = [2, 768], strides = [1, 1]} : vector<24x768xf32> to vector<2x768xf32>
    %46 = vector.extract_strided_slice %43 {offsets = [2, 0], sizes = [2, 768], strides = [1, 1]} : vector<24x768xf32> to vector<2x768xf32>
    %47 = arith.maximumf %45, %46 : vector<2x768xf32>
    %48 = vector.extract_strided_slice %47 {offsets = [0, 64], sizes = [2, 704], strides = [1, 1]} : vector<2x768xf32> to vector<2x704xf32>
    %49 = vector.extract_strided_slice %47 {offsets = [0, 0], sizes = [2, 64], strides = [1, 1]} : vector<2x768xf32> to vector<2x64xf32>
    %50 = tpu.concatenate %48, %49 in 1 : vector<2x704xf32>, vector<2x64xf32> -> vector<2x768xf32>
    %51 = arith.maximumf %47, %50 : vector<2x768xf32>
    %52 = arith.truncf %51 : vector<2x768xf32> to vector<2x768xbf16>
    %c0_31 = arith.constant 0 : index
    %c0_32 = arith.constant 0 : index
    %c0_33 = arith.constant 0 : index
    %53 = vector.load %arg6[%c0_31, %c0_32, %c0_33] : memref<6x768x128xbf16, #tpu.memory_space<vmem>>, vector<1x768x128xbf16>
    %54 = vector.shape_cast %53 : vector<1x768x128xbf16> to vector<768x128xbf16>
    %cst_34 = arith.constant dense<0.000000e+00> : vector<2x128xf32>
    %55 = tpu.matmul %52, %54, %cst_34 {dimension_numbers = #tpu.dot_dimension_numbers<[1], [0], [0], [1], [0, 0, 1, 1], [], []>} : vector<2x768xbf16>, vector<768x128xbf16>, vector<2x128xf32> -> vector<2x128xf32>
    %56 = arith.addf %44, %55 : vector<2x128xf32>
    %57 = vector.extract_strided_slice %43 {offsets = [4, 0], sizes = [2, 768], strides = [1, 1]} : vector<24x768xf32> to vector<2x768xf32>
    %58 = vector.extract_strided_slice %43 {offsets = [6, 0], sizes = [2, 768], strides = [1, 1]} : vector<24x768xf32> to vector<2x768xf32>
    %59 = arith.maximumf %57, %58 : vector<2x768xf32>
    %60 = vector.extract_strided_slice %59 {offsets = [0, 64], sizes = [2, 704], strides = [1, 1]} : vector<2x768xf32> to vector<2x704xf32>
    %61 = vector.extract_strided_slice %59 {offsets = [0, 0], sizes = [2, 64], strides = [1, 1]} : vector<2x768xf32> to vector<2x64xf32>
    %62 = tpu.concatenate %60, %61 in 1 : vector<2x704xf32>, vector<2x64xf32> -> vector<2x768xf32>
    %63 = arith.maximumf %59, %62 : vector<2x768xf32>
    %64 = arith.truncf %63 : vector<2x768xf32> to vector<2x768xbf16>
    %c1_35 = arith.constant 1 : index
    %c0_36 = arith.constant 0 : index
    %c0_37 = arith.constant 0 : index
    %65 = vector.load %arg6[%c1_35, %c0_36, %c0_37] : memref<6x768x128xbf16, #tpu.memory_space<vmem>>, vector<1x768x128xbf16>
    %66 = vector.shape_cast %65 : vector<1x768x128xbf16> to vector<768x128xbf16>
    %cst_38 = arith.constant dense<0.000000e+00> : vector<2x128xf32>
    %67 = tpu.matmul %64, %66, %cst_38 {dimension_numbers = #tpu.dot_dimension_numbers<[1], [0], [0], [1], [0, 0, 1, 1], [], []>} : vector<2x768xbf16>, vector<768x128xbf16>, vector<2x128xf32> -> vector<2x128xf32>
    %68 = arith.addf %56, %67 : vector<2x128xf32>
    %69 = vector.extract_strided_slice %43 {offsets = [8, 0], sizes = [2, 768], strides = [1, 1]} : vector<24x768xf32> to vector<2x768xf32>
    %70 = vector.extract_strided_slice %43 {offsets = [10, 0], sizes = [2, 768], strides = [1, 1]} : vector<24x768xf32> to vector<2x768xf32>
    %71 = arith.maximumf %69, %70 : vector<2x768xf32>
    %72 = vector.extract_strided_slice %71 {offsets = [0, 64], sizes = [2, 704], strides = [1, 1]} : vector<2x768xf32> to vector<2x704xf32>
    %73 = vector.extract_strided_slice %71 {offsets = [0, 0], sizes = [2, 64], strides = [1, 1]} : vector<2x768xf32> to vector<2x64xf32>
    %74 = tpu.concatenate %72, %73 in 1 : vector<2x704xf32>, vector<2x64xf32> -> vector<2x768xf32>
    %75 = arith.maximumf %71, %74 : vector<2x768xf32>
    %76 = arith.truncf %75 : vector<2x768xf32> to vector<2x768xbf16>
    %c2_39 = arith.constant 2 : index
    %c0_40 = arith.constant 0 : index
    %c0_41 = arith.constant 0 : index
    %77 = vector.load %arg6[%c2_39, %c0_40, %c0_41] : memref<6x768x128xbf16, #tpu.memory_space<vmem>>, vector<1x768x128xbf16>
    %78 = vector.shape_cast %77 : vector<1x768x128xbf16> to vector<768x128xbf16>
    %cst_42 = arith.constant dense<0.000000e+00> : vector<2x128xf32>
    %79 = tpu.matmul %76, %78, %cst_42 {dimension_numbers = #tpu.dot_dimension_numbers<[1], [0], [0], [1], [0, 0, 1, 1], [], []>} : vector<2x768xbf16>, vector<768x128xbf16>, vector<2x128xf32> -> vector<2x128xf32>
    %80 = arith.addf %68, %79 : vector<2x128xf32>
    %81 = vector.extract_strided_slice %43 {offsets = [12, 0], sizes = [2, 768], strides = [1, 1]} : vector<24x768xf32> to vector<2x768xf32>
    %82 = vector.extract_strided_slice %43 {offsets = [14, 0], sizes = [2, 768], strides = [1, 1]} : vector<24x768xf32> to vector<2x768xf32>
    %83 = arith.maximumf %81, %82 : vector<2x768xf32>
    %84 = vector.extract_strided_slice %83 {offsets = [0, 64], sizes = [2, 704], strides = [1, 1]} : vector<2x768xf32> to vector<2x704xf32>
    %85 = vector.extract_strided_slice %83 {offsets = [0, 0], sizes = [2, 64], strides = [1, 1]} : vector<2x768xf32> to vector<2x64xf32>
    %86 = tpu.concatenate %84, %85 in 1 : vector<2x704xf32>, vector<2x64xf32> -> vector<2x768xf32>
    %87 = arith.maximumf %83, %86 : vector<2x768xf32>
    %88 = arith.truncf %87 : vector<2x768xf32> to vector<2x768xbf16>
    %c3 = arith.constant 3 : index
    %c0_43 = arith.constant 0 : index
    %c0_44 = arith.constant 0 : index
    %89 = vector.load %arg6[%c3, %c0_43, %c0_44] : memref<6x768x128xbf16, #tpu.memory_space<vmem>>, vector<1x768x128xbf16>
    %90 = vector.shape_cast %89 : vector<1x768x128xbf16> to vector<768x128xbf16>
    %cst_45 = arith.constant dense<0.000000e+00> : vector<2x128xf32>
    %91 = tpu.matmul %88, %90, %cst_45 {dimension_numbers = #tpu.dot_dimension_numbers<[1], [0], [0], [1], [0, 0, 1, 1], [], []>} : vector<2x768xbf16>, vector<768x128xbf16>, vector<2x128xf32> -> vector<2x128xf32>
    %92 = arith.addf %80, %91 : vector<2x128xf32>
    %93 = vector.extract_strided_slice %43 {offsets = [16, 0], sizes = [2, 768], strides = [1, 1]} : vector<24x768xf32> to vector<2x768xf32>
    %94 = vector.extract_strided_slice %43 {offsets = [18, 0], sizes = [2, 768], strides = [1, 1]} : vector<24x768xf32> to vector<2x768xf32>
    %95 = arith.maximumf %93, %94 : vector<2x768xf32>
    %96 = vector.extract_strided_slice %95 {offsets = [0, 64], sizes = [2, 704], strides = [1, 1]} : vector<2x768xf32> to vector<2x704xf32>
    %97 = vector.extract_strided_slice %95 {offsets = [0, 0], sizes = [2, 64], strides = [1, 1]} : vector<2x768xf32> to vector<2x64xf32>
    %98 = tpu.concatenate %96, %97 in 1 : vector<2x704xf32>, vector<2x64xf32> -> vector<2x768xf32>
    %99 = arith.maximumf %95, %98 : vector<2x768xf32>
    %100 = arith.truncf %99 : vector<2x768xf32> to vector<2x768xbf16>
    %c4 = arith.constant 4 : index
    %c0_46 = arith.constant 0 : index
    %c0_47 = arith.constant 0 : index
    %101 = vector.load %arg6[%c4, %c0_46, %c0_47] : memref<6x768x128xbf16, #tpu.memory_space<vmem>>, vector<1x768x128xbf16>
    %102 = vector.shape_cast %101 : vector<1x768x128xbf16> to vector<768x128xbf16>
    %cst_48 = arith.constant dense<0.000000e+00> : vector<2x128xf32>
    %103 = tpu.matmul %100, %102, %cst_48 {dimension_numbers = #tpu.dot_dimension_numbers<[1], [0], [0], [1], [0, 0, 1, 1], [], []>} : vector<2x768xbf16>, vector<768x128xbf16>, vector<2x128xf32> -> vector<2x128xf32>
    %104 = arith.addf %92, %103 : vector<2x128xf32>
    %105 = vector.extract_strided_slice %43 {offsets = [20, 0], sizes = [2, 768], strides = [1, 1]} : vector<24x768xf32> to vector<2x768xf32>
    %106 = vector.extract_strided_slice %43 {offsets = [22, 0], sizes = [2, 768], strides = [1, 1]} : vector<24x768xf32> to vector<2x768xf32>
    %107 = arith.maximumf %105, %106 : vector<2x768xf32>
    %108 = vector.extract_strided_slice %107 {offsets = [0, 64], sizes = [2, 704], strides = [1, 1]} : vector<2x768xf32> to vector<2x704xf32>
    %109 = vector.extract_strided_slice %107 {offsets = [0, 0], sizes = [2, 64], strides = [1, 1]} : vector<2x768xf32> to vector<2x64xf32>
    %110 = tpu.concatenate %108, %109 in 1 : vector<2x704xf32>, vector<2x64xf32> -> vector<2x768xf32>
    %111 = arith.maximumf %107, %110 : vector<2x768xf32>
    %112 = arith.truncf %111 : vector<2x768xf32> to vector<2x768xbf16>
    %c5 = arith.constant 5 : index
    %c0_49 = arith.constant 0 : index
    %c0_50 = arith.constant 0 : index
    %113 = vector.load %arg6[%c5, %c0_49, %c0_50] : memref<6x768x128xbf16, #tpu.memory_space<vmem>>, vector<1x768x128xbf16>
    %114 = vector.shape_cast %113 : vector<1x768x128xbf16> to vector<768x128xbf16>
    %cst_51 = arith.constant dense<0.000000e+00> : vector<2x128xf32>
    %115 = tpu.matmul %112, %114, %cst_51 {dimension_numbers = #tpu.dot_dimension_numbers<[1], [0], [0], [1], [0, 0, 1, 1], [], []>} : vector<2x768xbf16>, vector<768x128xbf16>, vector<2x128xf32> -> vector<2x128xf32>
    %116 = arith.addf %104, %115 : vector<2x128xf32>
    %c0_52 = arith.constant 0 : index
    %c0_53 = arith.constant 0 : index
    %117 = vector.load %arg7[%c0_52, %c0_53] : memref<1x128xf32, #tpu.memory_space<vmem>>, vector<1x128xf32>
    %118 = vector.broadcast %117 : vector<1x128xf32> to vector<2x128xf32>
    %119 = arith.addf %116, %118 : vector<2x128xf32>
    %cst_54 = arith.constant 0.000000e+00 : f32
    %120 = vector.broadcast %cst_54 : f32 to vector<2x128xf32>
    %121 = arith.maximumf %119, %120 : vector<2x128xf32>
    %122 = arith.truncf %121 : vector<2x128xf32> to vector<2x128xbf16>
    %c0_55 = arith.constant 0 : index
    %c0_56 = arith.constant 0 : index
    %123 = vector.load %arg8[%c0_55, %c0_56] : memref<128x10xbf16, #tpu.memory_space<vmem>>, vector<128x10xbf16>
    %cst_57 = arith.constant dense<0.000000e+00> : vector<2x10xf32>
    %124 = tpu.matmul %122, %123, %cst_57 {dimension_numbers = #tpu.dot_dimension_numbers<[1], [0], [0], [1], [0, 0, 1, 1], [], []>} : vector<2x128xbf16>, vector<128x10xbf16>, vector<2x10xf32> -> vector<2x10xf32>
    %c0_58 = arith.constant 0 : index
    %c0_59 = arith.constant 0 : index
    %125 = vector.load %arg9[%c0_58, %c0_59] : memref<1x10xf32, #tpu.memory_space<vmem>>, vector<1x10xf32>
    %126 = vector.broadcast %125 : vector<1x10xf32> to vector<2x10xf32>
    %127 = arith.addf %124, %126 : vector<2x10xf32>
    %cst_60 = arith.constant dense<0xFF800000> : vector<2xf32>
    %128 = vector.multi_reduction <maximumf>, %127, %cst_60 [1] : vector<2x10xf32> to vector<2xf32>
    %129 = vector.shape_cast %128 : vector<2xf32> to vector<2x1xf32>
    %130 = vector.broadcast %129 : vector<2x1xf32> to vector<2x10xf32>
    %131 = arith.subf %127, %130 : vector<2x10xf32>
    %132 = math.exp %131 : vector<2x10xf32>
    %cst_61 = arith.constant dense<0.000000e+00> : vector<2xf32>
    %133 = vector.multi_reduction <add>, %132, %cst_61 [1] : vector<2x10xf32> to vector<2xf32>
    %134 = vector.shape_cast %133 : vector<2xf32> to vector<2x1xf32>
    %135 = math.log %134 : vector<2x1xf32>
    %136 = arith.addf %135, %129 : vector<2x1xf32>
    %137 = vector.broadcast %136 : vector<2x1xf32> to vector<2x10xf32>
    %138 = arith.subf %127, %137 : vector<2x10xf32>
    %c0_62 = arith.constant 0 : index
    %c0_63 = arith.constant 0 : index
    %139 = vector.load %arg10[%c0_62, %c0_63] : memref<2x10xf32, #tpu.memory_space<vmem>>, vector<2x10xf32>
    tpu.vector_store %arg10[%c0_62, %c0_63], %138 {strides = array<i32>} : memref<2x10xf32, #tpu.memory_space<vmem>>, vector<2x10xf32>,
    return
  }
  func.func @transform_0(%arg0: i32) -> (i32, i32) {
    %c0_i32 = arith.constant 0 : i32
    %c0_i32_0 = arith.constant 0 : i32
    return %arg0, %c0_i32 : i32, i32
  }
  func.func @transform_1(%arg0: i32) -> (i32, i32, i32) {
    %c0_i32 = arith.constant 0 : i32
    %c0_i32_0 = arith.constant 0 : i32
    %c0_i32_1 = arith.constant 0 : i32
    %c0_i32_2 = arith.constant 0 : i32
    return %c0_i32, %c0_i32_0, %c0_i32_1 : i32, i32, i32
  }
  func.func @transform_2(%arg0: i32) -> (i32, i32) {
    %c0_i32 = arith.constant 0 : i32
    %c0_i32_0 = arith.constant 0 : i32
    %c0_i32_1 = arith.constant 0 : i32
    return %c0_i32, %c0_i32_0 : i32, i32
  }
  func.func @transform_3(%arg0: i32) -> (i32, i32, i32) {
    %c0_i32 = arith.constant 0 : i32
    %c0_i32_0 = arith.constant 0 : i32
    %c0_i32_1 = arith.constant 0 : i32
    %c0_i32_2 = arith.constant 0 : i32
    return %c0_i32, %c0_i32_0, %c0_i32_1 : i32, i32, i32
  }
  func.func @transform_4(%arg0: i32) -> (i32, i32) {
    %c0_i32 = arith.constant 0 : i32
    %c0_i32_0 = arith.constant 0 : i32
    %c0_i32_1 = arith.constant 0 : i32
    return %c0_i32, %c0_i32_0 : i32, i32
  }
  func.func @transform_5(%arg0: i32) -> (i32, i32, i32) {
    %c0_i32 = arith.constant 0 : i32
    %c0_i32_0 = arith.constant 0 : i32
    %c0_i32_1 = arith.constant 0 : i32
    %c0_i32_2 = arith.constant 0 : i32
    return %c0_i32, %c0_i32_0, %c0_i32_1 : i32, i32, i32
  }
  func.func @transform_6(%arg0: i32) -> (i32, i32) {
    %c0_i32 = arith.constant 0 : i32
    %c0_i32_0 = arith.constant 0 : i32
    %c0_i32_1 = arith.constant 0 : i32
    return %c0_i32, %c0_i32_0 : i32, i32
  }
  func.func @transform_7(%arg0: i32) -> (i32, i32) {
    %c0_i32 = arith.constant 0 : i32
    %c0_i32_0 = arith.constant 0 : i32
    %c0_i32_1 = arith.constant 0 : i32
    return %c0_i32, %c0_i32_0 : i32, i32
  }
  func.func @transform_8(%arg0: i32) -> (i32, i32) {
    %c0_i32 = arith.constant 0 : i32
    %c0_i32_0 = arith.constant 0 : i32
    %c0_i32_1 = arith.constant 0 : i32
    return %c0_i32, %c0_i32_0 : i32, i32
  }
  func.func @transform_9(%arg0: i32) -> (i32, i32) {
    %c0_i32 = arith.constant 0 : i32
    %c0_i32_0 = arith.constant 0 : i32
    return %arg0, %c0_i32 : i32, i32
  }
}

</mosaic_0001>

<bundles_post_ra>
// kernel: tpu_custom_call.1
= control target key start
LH: loop header
LB: loop body
LE: loop exit
PB: predicated region body
PF: predicated region fallthrough
CT: control target
= control target key end

     0   :  { %14 = vsyncpa [#allocation3], 0  ;;  %s11703_s0 = inlined_call_operand.vmem [shape: f32[32,16], index: 0, kind: input, shape index: {}]   ;;  %s11704_s1 = inlined_call_operand.hbm [shape: f32[3,16,448], index: 1, kind: input, shape index: {}]   ;;  %s11705_s2 = inlined_call_operand.hbm [shape: f32[1,448], index: 2, kind: input, shape index: {}]   ;;  %s11706_s3 = inlined_call_operand.hbm [shape: bf16[3,448,768], index: 3, kind: input, shape index: {}]   ;;  %s11707_s4 = inlined_call_operand.hbm [shape: f32[1,768], index: 4, kind: input, shape index: {}]   ;;  %s11708_s5 = inlined_call_operand.hbm [shape: bf16[6,768,128], index: 5, kind: input, shape index: {}]   ;;  %s11709_s6 = inlined_call_operand.hbm [shape: f32[1,128], index: 6, kind: input, shape index: {}]   ;;  %s11710_s7 = inlined_call_operand.vmem [shape: bf16[128,10], index: 7, kind: input, shape index: {}]   ;;  %s11711_s8 = inlined_call_operand.hbm [shape: f32[1,10], index: 8, kind: input, shape index: {}]   ;;  %s11712_s9 = inlined_call_operand.hbm [shape: f32[2,10], index: 9, kind: output, shape index: {}]  }
   0x1   :  { %15 = vsyncpa [#allocation6], 0 }
   0x2   :  { %16 = vsyncpa [#allocation9], 0 }
   0x3   :  { %17 = vsyncpa [#allocation12], 0 }
   0x4   :  { %18 = vsyncpa [#allocation4], 0  ;;  %s10890_s30 = smov [#allocation5]   ;;  %s10891_s11 = smov [#allocation8]  }
   0x5   :  { %s39_s10 = sshll.u32 %s10890_s30, 4  ;;  %s61_s12 = sshll.u32 %s10891_s11, 4  ;;  %s40_s10 = int_to_ptr.vmem [resolvable:$true] %s39_s10  ;;  %s62_s12 = int_to_ptr.vmem [resolvable:$true] %s61_s12 }
   0x6   :  { %s10728_s13 = scalar_lea.vmem %s40_s10, 64  ;;  %p10733_p1 = scmp.lt.s32.totalorder %s40_s10, %s40_s10 }
   0x7   :  { %p10729_p0 = scmp.ne.s32.totalorder %s40_s10, %s10728_s13  ;;  %p10734_p2 = scmp.lt.s32.totalorder %s10728_s13, %s10728_s13 }
   0x9   :  { %p10735_p3 = por %p10734_p2, %p10733_p1 }
   0xb   :  { %p10736_p4 = pnand %p10735_p3, %p10729_p0 }
   0xd   :  { %10739 = shalt.err (!%p10736_p4)
}
   0xe   :  { %42 = dma.hbm_to_vmem [thread:$0]  %s11705_s2, 64, %s40_s10, [#allocation6]  }
   0xf   :  { %s10748_s16 = scalar_lea.vmem %s62_s12, 96  ;;  %p10753_p6 = scmp.lt.s32.totalorder %s62_s12, %s62_s12 }
  0x10   :  { %p10749_p5 = scmp.ne.s32.totalorder %s62_s12, %s10748_s16  ;;  %p10754_p7 = scmp.lt.s32.totalorder %s10748_s16, %s10748_s16 }
  0x12   :  { %p10755_p8 = por %p10754_p7, %p10753_p6 }
  0x14   :  { %p10756_p9 = pnand %p10755_p8, %p10749_p5 }
  0x16   :  { %10759 = shalt.err (!%p10756_p9)
}
  0x17   :  { %64 = dma.hbm_to_vmem [thread:$0]  %s11707_s4, 96, %s62_s12, [#allocation9]  }
  0x18   :  { %s10892_s19 = smov [#allocation11]   ;;  %s10893_s21 = smov [#allocation2]  }
  0x19   :  { %s83_s20 = sshll.u32 %s10892_s19, 4  ;;  %s26_s22 = sshll.u32 %s10893_s21, 4  ;;  %s84_s20 = int_to_ptr.vmem [resolvable:$true] %s83_s20  ;;  %s27_s22 = int_to_ptr.vmem [resolvable:$true] %s26_s22 }
  0x1a   :  { %s10768_s23 = scalar_lea.vmem %s84_s20, 16  ;;  %s10772_s2 = scalar_lea.vmem %s84_s20, 32 }
  0x1b   :  { %p10769_p10 = scmp.ne.s32.totalorder %s84_s20, %s10768_s23  ;;  %p10773_p11 = scmp.lt.s32.totalorder %s84_s20, %s84_s20 }
  0x1c   :  { %p10774_p12 = scmp.lt.s32.totalorder %s10772_s2, %s10768_s23 }
  0x1e   :  { %p10775_p13 = por %p10774_p12, %p10773_p11 }
  0x20   :  { %p10776_p0 = pnand %p10775_p13, %p10769_p10 }
  0x22   :  { %10779 = shalt.err (!%p10776_p0)
}
  0x23   :  { %86 = dma.hbm_to_vmem [thread:$0]  %s11709_s6, 16, %s84_s20, [#allocation12]  }
  0x24   :  { %s10788_s26 = scalar_lea.vmem %s27_s22, 3072  ;;  %p10793_p2 = scmp.lt.s32.totalorder %s27_s22, %s27_s22 }
  0x25   :  { %p10789_p1 = scmp.ne.s32.totalorder %s27_s22, %s10788_s26  ;;  %p10794_p3 = scmp.lt.s32.totalorder %s10788_s26, %s10788_s26 }
  0x27   :  { %p10795_p4 = por %p10794_p3, %p10793_p2 }
  0x29   :  { %p10796_p5 = pnand %p10795_p4, %p10789_p1 }
  0x2b   :  { %10799 = shalt.err (!%p10796_p5)
}
  0x2c   :  { %s10894_s4 = smov 512   ;;  %s10895_s27 = smov 32  }
  0x2d   :  { %32 = dma.hbm_to_vmem [thread:$0]  %s11704_s1, 3072, %s27_s22, [#allocation3], %s10894_s4, %s10894_s4, %s10895_s27  }
  0x2e   :  { %s10896_s30 = smov [#allocation7]  }
  0x2f   :  { %s48_s10 = sshll.u32 %s10896_s30, 4  ;;  %s49_s10 = int_to_ptr.vmem [resolvable:$true] %s48_s10 }
  0x30   :  { %s10808_s11 = scalar_lea.vmem %s49_s10, 64512  ;;  %p10813_p7 = scmp.lt.s32.totalorder %s49_s10, %s49_s10 }
  0x31   :  { %p10809_p6 = scmp.ne.s32.totalorder %s49_s10, %s10808_s11  ;;  %p10814_p8 = scmp.lt.s32.totalorder %s10808_s11, %s10808_s11 }
  0x33   :  { %p10815_p9 = por %p10814_p8, %p10813_p7 }
  0x35   :  { %p10816_p10 = pnand %p10815_p9, %p10809_p6 }
  0x37   :  { %10819 = shalt.err (!%p10816_p10)
}
  0x38   :  { %s10897_s6 = smov 384   ;;  %s10898_s12 = smov 24  }
  0x39   :  { %54 = dma.hbm_to_vmem [thread:$0]  %s11706_s3, 64512, %s49_s10, [#allocation6], %s10897_s6, %s10897_s6, %s10898_s12  }
  0x3a   :  { %s10899_s15 = smov [#allocation10]  }
  0x3b   :  { %s70_s16 = sshll.u32 %s10899_s15, 4  ;;  %s71_s16 = int_to_ptr.vmem [resolvable:$true] %s70_s16 }
  0x3c   :  { %s10828_s1 = scalar_lea.vmem %s71_s16, 36864  ;;  %p10833_p12 = scmp.lt.s32.totalorder %s71_s16, %s71_s16 }
  0x3d   :  { %p10829_p11 = scmp.ne.s32.totalorder %s71_s16, %s10828_s1  ;;  %p10834_p13 = scmp.lt.s32.totalorder %s10828_s1, %s10828_s1 }
  0x3f   :  { %p10835_p0 = por %p10834_p13, %p10833_p12 }
  0x41   :  { %p10836_p1 = pnand %p10835_p0, %p10829_p11 }
  0x43   :  { %10839 = shalt.err (!%p10836_p1)
}
  0x44   :  { %s10900_s17 = smov 64   ;;  %s10901_s18 = smov 4  }
  0x45   :  { %76 = dma.hbm_to_vmem [thread:$0]  %s11708_s5, 36864, %s71_s16, [#allocation9], %s10900_s17, %s10900_s17, %s10901_s18  }
  0x46   :  { %s10902_s21 = smov [#allocation13]  }
  0x47   :  { %s95_s3 = sshll.u32 %s10902_s21, 4  ;;  %s96_s3 = int_to_ptr.vmem [resolvable:$true] %s95_s3 }
  0x48   :  { %s10848_s22 = scalar_lea.vmem %s96_s3, 16  ;;  %s10852_s23 = scalar_lea.vmem %s96_s3, 32 }
  0x49   :  { %p10849_p2 = scmp.ne.s32.totalorder %s96_s3, %s10848_s22  ;;  %p10853_p3 = scmp.lt.s32.totalorder %s96_s3, %s96_s3 }
  0x4a   :  { %p10854_p4 = scmp.lt.s32.totalorder %s10852_s23, %s10848_s22 }
  0x4c   :  { %p10855_p5 = por %p10854_p4, %p10853_p3 }
  0x4e   :  { %p10856_p6 = pnand %p10855_p5, %p10849_p2 }
  0x50   :  { %10859 = shalt.err (!%p10856_p6)
}
  0x51   :  { %98 = dma.hbm_to_vmem [thread:$0]  %s11711_s8, 16, %s96_s3, [#allocation12]  }
  0x52   :  { %10880 = dma.done.wait [#allocation3], 3072  }
  0x53   :  { %10881 = vsyncadd [#allocation3], 4294964224 }
  0x54   :  { %10882 = dma.done.wait [#allocation6], 64576  }
  0x55   :  { %10883 = vsyncadd [#allocation6], 4294902720 }
  0x56   :  { %10884 = dma.done.wait [#allocation9], 36960  }
  0x57   :  { %10885 = vsyncadd [#allocation9], 4294930336 }
  0x58   :  { %10886 = dma.done.wait [#allocation12], 32  }
  0x59   :  { %10887 = vsyncadd [#allocation12], 4294967264  ;;  %v10903_v0 = vmov 0.0   ;;  %v139_v1 = vld [vmem:[#allocation2 + $0x68] sm:$0xff]  ;;  %v141_v2 = vld [vmem:[#allocation2 + $0x78] sm:$0xff]  ;;  %vm146_vm0 = vcmask 1045504  }
  0x5a   :  { %227 = vmatprep.mubr.f32.mxu0 %v10903_v0  ;;  %328 = vmatprep.mubr.f32.mxu1 %v10903_v0  ;;  %v138_v3 = vld [vmem:[#allocation2 + $0x60] sm:$0xff]  ;;  %v140_v4 = vld [vmem:[#allocation2 + $0x70] sm:$0xff]  ;;  %v135_v5 = vld [vmem:[#allocation2 + $0x48] sm:$0xff]  ;;  %vm154_vm1 = vcmask 130048   ;;  %vm536_vm2 = vcmask 1043456   ;;  %vm1153_vm3 = vcmask 1046528  }
  0x5b   :  { %191 = vmatprep.subr.mxu0 %v139_v1  ;;  %9614 = vmatprep.subr.mxu1 %v141_v2  ;;  %v137_v6 = vld [vmem:[#allocation2 + $0x58] sm:$0xff]  ;;  %v134_v7 = vld [vmem:[#allocation2 + $0x40] sm:$0xff]  ;;  %v136_v8 = vld [vmem:[#allocation2 + $0x50] sm:$0xff]  ;;  %vm2012_vm4 = vcmask 523264   ;;  %vm10904_vm5 = vmmov 0   ;;  %vm8312_vm6 = vcmask 74752  }
  0x5c   :  { %192 = vmatpush1.msra.mxu0 %v138_v3  ;;  %9616 = vmatpush1.msra.mxu1 %v140_v4  ;;  %v10984_v9 = vld [vmem:[%s11703_s0] sm:$0xff]  ;;  %v10989_v10 = vld [vmem:[%s11703_s0 + $0x8] sm:$0xff]  ;;  %v10995_v12 = vld [vmem:[%s11703_s0 + $0x10] sm:$0xff] }
  0x5d   :  { %193 = vmatprep.subr.mxu0 %v135_v5  ;;  %9615 = vmatprep.subr.mxu1 %v137_v6  ;;  %v147_v11 = vrot.slane %v10984_v9, 2  ;;  %v11000_v13 = vld [vmem:[%s11703_s0 + $0x18] sm:$0xff]  ;;  %v148_v14 = vrot.slane %v10989_v10, 2  ;;  %v150_v15 = vrot.slane %v10995_v12, 2  ;;  %v131_v20 = vld [vmem:[#allocation2 + $0x30] sm:$0xff]  ;;  %v130_v24 = vld [vmem:[#allocation2 + $0x28] sm:$0xff] }
  0x5e   :  { %194 = vmatpush1.msra.mxu0 %v134_v7  ;;  %9617 = vmatpush1.msra.mxu1 %v136_v8  ;;  %v152_v16 = vrot.slane %v11000_v13, 2  ;;  %v132_v17 = vld [vmem:[#allocation2 + $0x38] sm:$0xff]  ;;  %v127_v23 = vld [vmem:[#allocation2 + $0x10] sm:$0xff]  ;;  %v129_v29 = vld [vmem:[#allocation2 + $0x20] sm:$0xff]  ;;  %v537_v33 = vrot.slane %v10984_v9, 4  ;;  %v538_v34 = vrot.slane %v10989_v10, 4 }
  0x5f   :  { %280 = vmatprep.subr.mxu0 %v141_v2  ;;  %466 = vmatprep.subr.mxu1 %v132_v17  ;;  %v149_v18 = vsel %vm146_vm0, %v147_v11, %v148_v14  ;;  %v128_v21 = vld [vmem:[#allocation2 + $0x18] sm:$0xff]  ;;  %v151_v22 = vsel %vm146_vm0, %v148_v14, %v150_v15  ;;  %v534_v26 = vld [vmem:[#allocation2 + $0xb0] sm:$0xff]  ;;  %v126_v30 = vld [vmem:[#allocation2 + $0x8] sm:$0xff]  ;;  %v540_v37 = vrot.slane %v10995_v12, 4  ;;  %v542_v41 = vrot.slane %v11000_v13, 4 }
  0x60   :  { %v153_v19 = vsel %vm146_vm0, %v150_v15, %v152_v16  ;;  %8345 = vmatmul.mubr.msk.f32.vlgmr.msra.gmra.mxu0 %vm154_vm1, %v149_v18  ;;  %v535_v25 = vld [vmem:[#allocation2 + $0xb8] sm:$0xff]  ;;  %v530_v28 = vld [vmem:[#allocation2 + $0x90] sm:$0xff]  ;;  %v125_v31 = vld [vmem:[#allocation2] sm:$0xff]  ;;  %v539_v36 = vsel %vm536_vm2, %v537_v33, %v538_v34 }
  0x61   :  { %8351 = vmatmul.mubr.msk.f32.vlgmr.msra.gmra.mxu1 %vm154_vm1, %v153_v19  ;;  %281 = vmatpush1.msra.mxu0 %v140_v4  ;;  %v531_v27 = vld [vmem:[#allocation2 + $0x98] sm:$0xff]  ;;  %v533_v32 = vld [vmem:[#allocation2 + $0xa8] sm:$0xff]  ;;  %v532_v35 = vld [vmem:[#allocation2 + $0xa0] sm:$0xff]  ;;  %v541_v40 = vsel %vm536_vm2, %v538_v34, %v540_v37  ;;  %v543_v42 = vsel %vm536_vm2, %v540_v37, %v542_v41 }
  0x62   :  { %233 = vmatprep.mubr.f32.mxu0 %v10903_v0  ;;  %334 = vmatprep.mubr.f32.mxu1 %v10903_v0  ;;  %v529_v38 = vld [vmem:[#allocation2 + $0x88] sm:$0xff]  ;;  %v528_v39 = vld [vmem:[#allocation2 + $0x80] sm:$0xff]  ;;  %v9666_v43 = vld [vmem:[#allocation7 + $0x694] ss:$24 sps:$4 sm:$0xff]  }
  0x63   :  { %467 = vmatpush1.msra.mxu1 %v131_v20  ;;  %282 = vmatprep.subr.mxu0 %v137_v6  ;;  %v9669_v44 = vld [vmem:[#allocation7 + $0x994] ss:$24 sps:$4 sm:$0xff]   ;;  %v9664_v45 = vld [vmem:[#allocation7 + $0x690] ss:$24 sps:$4 sm:$0xff]   ;;  %v9672_v47 = vld [vmem:[#allocation7 + $0x664] ss:$24 sps:$4 sm:$0xff]  }
  0x64   :  { %468 = vmatprep.subr.mxu1 %v128_v21  ;;  %8346 = vmatmul.mubr.msk.f32.gmra.mxu0 %vm154_vm1, %v151_v22  ;;  %v9667_v46 = vld [vmem:[#allocation7 + $0x990] ss:$24 sps:$4 sm:$0xff]   ;;  %v9675_v48 = vld [vmem:[#allocation7 + $0x964] ss:$24 sps:$4 sm:$0xff]   ;;  %v9670_v49 = vld [vmem:[#allocation7 + $0x660] ss:$24 sps:$4 sm:$0xff]  }
  0x65   :  { %8352 = vmatmul.mubr.msk.f32.gmra.mxu1 %vm154_vm1, %v152_v16  ;;  %239 = vmatprep.mubr.f32.mxu0 %v10903_v0  ;;  %v9673_v50 = vld [vmem:[#allocation7 + $0x960] ss:$24 sps:$4 sm:$0xff]   ;;  %v9678_v51 = vld [vmem:[#allocation7 + $0x634] ss:$24 sps:$4 sm:$0xff]   ;;  %v9676_v53 = vld [vmem:[#allocation7 + $0x630] ss:$24 sps:$4 sm:$0xff]  }
  0x66   :  { %469 = vmatpush1.msra.mxu1 %v127_v23  ;;  %502 = vmatprep.mubr.f32.mxu1 %v10903_v0  ;;  %v9681_v52 = vld [vmem:[#allocation7 + $0x934] ss:$24 sps:$4 sm:$0xff]   ;;  %v9679_v54 = vld [vmem:[#allocation7 + $0x930] ss:$24 sps:$4 sm:$0xff]   ;;  %v9684_v55 = vld [vmem:[#allocation7 + $0x604] ss:$24 sps:$4 sm:$0xff]  }
  0x67   :  { %283 = vmatpush1.msra.mxu0 %v136_v8  ;;  %669 = vmatprep.subr.mxu1 %v535_v25  ;;  %v9687_v56 = vld [vmem:[#allocation7 + $0x904] ss:$24 sps:$4 sm:$0xff]   ;;  %v9682_v57 = vld [vmem:[#allocation7 + $0x600] ss:$24 sps:$4 sm:$0xff]   ;;  %v9690_v59 = vld [vmem:[#allocation7 + $0x5d4] ss:$24 sps:$4 sm:$0xff]  }
  0x68   :  { %377 = vmatprep.subr.mxu0 %v130_v24  ;;  %8347 = vmatmul.mubr.msk.f32.gmra.mxu0 %vm154_vm1, %v153_v19  ;;  %v9685_v58 = vld [vmem:[#allocation7 + $0x900] ss:$24 sps:$4 sm:$0xff]   ;;  %v9693_v60 = vld [vmem:[#allocation7 + $0x8d4] ss:$24 sps:$4 sm:$0xff]   ;;  %v9688_v61 = vld [vmem:[#allocation7 + $0x5d0] ss:$24 sps:$4 sm:$0xff]  }
  0x69   :  { %8357 = vmatmul.mubr.msk.f32.vlgmr.msra.gmra.mxu1 %vm154_vm1, %v10984_v9  ;;  %245 = vmatprep.mubr.f32.mxu0 %v10903_v0  ;;  %v9691_v62 = vld [vmem:[#allocation7 + $0x8d0] ss:$24 sps:$4 sm:$0xff]   ;;  %v9696_v63 = vld [vmem:[#allocation7 + $0x5a4] ss:$24 sps:$4 sm:$0xff]   ;;  %v9694_v2 = vld [vmem:[#allocation7 + $0x5a0] ss:$24 sps:$4 sm:$0xff]  }
  0x6a   :  { %508 = vmatprep.mubr.f32.mxu1 %v10903_v0  ;;  %670 = vmatpush1.msra.mxu1 %v534_v26  ;;  %v9699_v1 = vld [vmem:[#allocation7 + $0x8a4] ss:$24 sps:$4 sm:$0xff]   ;;  %v9697_v3 = vld [vmem:[#allocation7 + $0x8a0] ss:$24 sps:$4 sm:$0xff]   ;;  %v9702_v4 = vld [vmem:[#allocation7 + $0x574] ss:$24 sps:$4 sm:$0xff]  }
  0x6b   :  { %671 = vmatprep.subr.mxu1 %v531_v27  ;;  %v9705_v5 = vld [vmem:[#allocation7 + $0x874] ss:$24 sps:$4 sm:$0xff]   ;;  %v9700_v6 = vld [vmem:[#allocation7 + $0x570] ss:$24 sps:$4 sm:$0xff]   ;;  %v9708_v8 = vld [vmem:[#allocation7 + $0x544] ss:$24 sps:$4 sm:$0xff]  }
  0x6c   :  { %8348 = vmatmul.mubr.msk.f32.gmra.mxu0 %vm154_vm1, %v152_v16  ;;  %672 = vmatpush1.msra.mxu1 %v530_v28  ;;  %v9703_v7 = vld [vmem:[#allocation7 + $0x870] ss:$24 sps:$4 sm:$0xff]   ;;  %v9709_v11 = vld [vmem:[#allocation7 + $0x840] ss:$24 sps:$4 sm:$0xff]   ;;  %v9720_v16 = vld [vmem:[#allocation7 + $0x7e4] ss:$24 sps:$4 sm:$0xff]  }
  0x6d   :  { %8358 = vmatmul.mubr.msk.f32.gmra.mxu1 %vm154_vm1, %v10989_v10  ;;  %316 = vmatprep.mubr.f32.mxu0 %v10903_v0  ;;  %v9712_v14 = vld [vmem:[#allocation7 + $0x810] ss:$24 sps:$4 sm:$0xff]   ;;  %v9723_v17 = vld [vmem:[#allocation7 + $0xa24] ss:$24 sps:$4 sm:$0xff]   ;;  %v9721_v19 = vld [vmem:[#allocation7 + $0xa20] ss:$24 sps:$4 sm:$0xff]  }
  0x6e   :  { %514 = vmatprep.mubr.f32.mxu1 %v10903_v0  ;;  %2070 = vmatprep.subr.bf16.mxu1 %v9669_v44  ;;  %v9715_v15 = vld [vmem:[#allocation7 + $0xa50] ss:$24 sps:$4 sm:$0xff]   ;;  %v9726_v20 = vld [vmem:[#allocation7 + $0x7b4] ss:$24 sps:$4 sm:$0xff]   ;;  %v9732_v24 = vld [vmem:[#allocation7 + $0x784] ss:$24 sps:$4 sm:$0xff]  }
  0x6f   :  { %v9729_v21 = vld [vmem:[#allocation7 + $0x9f4] ss:$24 sps:$4 sm:$0xff]   ;;  %v9727_v23 = vld [vmem:[#allocation7 + $0x9f0] ss:$24 sps:$4 sm:$0xff]   ;;  %v9735_v25 = vld [vmem:[#allocation7 + $0x9c4] ss:$24 sps:$4 sm:$0xff]  }
  0x70   :  { %8349 = vmatmul.mubr.msk.f32.vlgmr.msra.gmra.mxu0 %vm154_vm1, %v149_v18  ;;  %v9718_v18 = vld [vmem:[#allocation7 + $0x7e0] ss:$24 sps:$4 sm:$0xff]   ;;  %v9738_v28 = vld [vmem:[#allocation7 + $0x754] ss:$24 sps:$4 sm:$0xff]   ;;  %v9748_v34 = vld [vmem:[#allocation7 + $0x6f0] ss:$24 sps:$4 sm:$0xff]  }
  0x71   :  { %8359 = vmatmul.mubr.msk.f32.gmra.mxu1 %vm154_vm1, %v10995_v12  ;;  %378 = vmatpush1.msra.mxu0 %v129_v29  ;;  %v9730_v26 = vld [vmem:[#allocation7 + $0x780] ss:$24 sps:$4 sm:$0xff]   ;;  %v9741_v29 = vld [vmem:[#allocation7 + $0x69c] ss:$24 sps:$4 sm:$0xff]  }
  0x72   :  { %322 = vmatprep.mubr.f32.mxu0 %v10903_v0  ;;  %520 = vmatprep.mubr.f32.mxu1 %v10903_v0  ;;  %v9733_v27 = vld [vmem:[#allocation7 + $0x9c0] ss:$24 sps:$4 sm:$0xff]   ;;  %v9750_v33 = vld [vmem:[#allocation7 + $0x6f4] ss:$24 sps:$4 sm:$0xff]  }
  0x73   :  { %379 = vmatprep.subr.mxu0 %v126_v30  ;;  %v9736_v30 = vld [vmem:[#allocation7 + $0x750] ss:$24 sps:$4 sm:$0xff]   ;;  %v9765_v37 = vld [vmem:[#allocation7 + $0x99c] ss:$24 sps:$4 sm:$0xff]  }
  0x74   :  { %380 = vmatpush1.msra.mxu0 %v125_v31  ;;  %v9744_v31 = vld [vmem:[#allocation7 + $0x724] ss:$24 sps:$4 sm:$0xff]  }
  0x75   :  { %8350 = vmatmul.mubr.msk.f32.gmra.mxu0 %vm154_vm1, %v151_v22  ;;  %8360 = vmatmul.mubr.msk.f32.gmra.mxu1 %vm154_vm1, %v11000_v13  ;;  %v9724_v22 = vld [vmem:[#allocation7 + $0x7b0] ss:$24 sps:$4 sm:$0xff]  }
  0x76   :  { %413 = vmatprep.mubr.f32.mxu0 %v10903_v0  ;;  %705 = vmatprep.mubr.f32.mxu1 %v10903_v0 }
  0x77   :  { %580 = vmatprep.subr.mxu0 %v533_v32  ;;  %v9742_v32 = vld [vmem:[#allocation7 + $0x720] ss:$24 sps:$4 sm:$0xff]  }
  0x79   :  { %8353 = vmatmul.mubr.msk.f32.vlgmr.msra.gmra.mxu0 %vm154_vm1, %v10984_v9  ;;  %8365 = vmatmul.mubr.msk.f32.vlgmr.msra.gmra.mxu1 %vm154_vm1, %v539_v36  ;;  %v9711_v9 = vld [vmem:[#allocation7 + $0x844] ss:$24 sps:$4 sm:$0xff]  }
  0x7a   :  { %581 = vmatpush1.msra.mxu0 %v532_v35  ;;  %419 = vmatprep.mubr.f32.mxu0 %v10903_v0  ;;  %v9754_v35 = vld [vmem:[#allocation7 + $0x6c0] ss:$24 sps:$4 sm:$0xff]  }
  0x7b   :  { %711 = vmatprep.mubr.f32.mxu1 %v10903_v0  ;;  %582 = vmatprep.subr.mxu0 %v529_v38 }
  0x7c   :  { %583 = vmatpush1.msra.mxu0 %v528_v39  ;;  %2071 = vmatpush1.bf16.msra.mxu1 %v9667_v46 }
  0x7d   :  { %8354 = vmatmul.mubr.msk.f32.gmra.mxu0 %vm154_vm1, %v10989_v10  ;;  %8366 = vmatmul.mubr.msk.f32.gmra.mxu1 %vm154_vm1, %v541_v40  ;;  %v9706_v10 = vld [vmem:[#allocation7 + $0x540] ss:$24 sps:$4 sm:$0xff]  }
  0x7e   :  { %425 = vmatprep.mubr.f32.mxu0 %v10903_v0  ;;  %717 = vmatprep.mubr.f32.mxu1 %v10903_v0 }
  0x7f   :  { %2019 = vmatprep.subr.bf16.mxu0 %v9666_v43  ;;  %2072 = vmatprep.subr.bf16.mxu1 %v9675_v48 }
  0x80   :  { %2073 = vmatpush1.bf16.msra.mxu1 %v9673_v50 }
  0x81   :  { %8355 = vmatmul.mubr.msk.f32.gmra.mxu0 %vm154_vm1, %v10995_v12  ;;  %8367 = vmatmul.mubr.msk.f32.gmra.mxu1 %vm154_vm1, %v543_v42  ;;  %v9714_v12 = vld [vmem:[#allocation7 + $0x814] ss:$24 sps:$4 sm:$0xff]  }
  0x82   :  { %431 = vmatprep.mubr.f32.mxu0 %v10903_v0  ;;  %723 = vmatprep.mubr.f32.mxu1 %v10903_v0 }
  0x83   :  { %2074 = vmatprep.subr.bf16.mxu1 %v9681_v52 }
  0x84   :  { %2075 = vmatpush1.bf16.msra.mxu1 %v9679_v54 }
  0x85   :  { %8356 = vmatmul.mubr.msk.f32.gmra.mxu0 %vm154_vm1, %v11000_v13  ;;  %8368 = vmatmul.mubr.msk.f32.gmra.mxu1 %vm154_vm1, %v542_v41  ;;  %v9717_v13 = vld [vmem:[#allocation7 + $0xa54] ss:$24 sps:$4 sm:$0xff]  }
  0x86   :  { %616 = vmatprep.mubr.f32.mxu0 %v10903_v0  ;;  %2076 = vmatprep.subr.bf16.mxu1 %v9687_v56 }
  0x88   :  { %2077 = vmatpush1.bf16.msra.mxu1 %v9685_v58 }
  0x89   :  { %8361 = vmatmul.mubr.msk.f32.vlgmr.msra.gmra.mxu0 %vm154_vm1, %v539_v36  ;;  %2078 = vmatprep.subr.bf16.mxu1 %v9693_v60  ;;  %v9756_v36 = vld [vmem:[#allocation7 + $0x6c4] ss:$24 sps:$4 sm:$0xff]  }
  0x8a   :  { %622 = vmatprep.mubr.f32.mxu0 %v10903_v0  ;;  %2020 = vmatpush1.bf16.msra.mxu0 %v9664_v45 }
  0x8b   :  { %2021 = vmatprep.subr.bf16.mxu0 %v9672_v47 }
  0x8c   :  { %2079 = vmatpush1.bf16.msra.mxu1 %v9691_v62  ;;  %v748_v62 = vlaneseq }
  0x8d   :  { %8362 = vmatmul.mubr.msk.f32.gmra.mxu0 %vm154_vm1, %v541_v40  ;;  %2080 = vmatprep.subr.bf16.mxu1 %v9699_v1 }
  0x8e   :  { %628 = vmatprep.mubr.f32.mxu0 %v10903_v0  ;;  %2022 = vmatpush1.bf16.msra.mxu0 %v9670_v49 }
  0x8f   :  { %2023 = vmatprep.subr.bf16.mxu0 %v9678_v51 }
  0x90   :  { %2081 = vmatpush1.bf16.msra.mxu1 %v9697_v3 }
  0x91   :  { %8363 = vmatmul.mubr.msk.f32.gmra.mxu0 %vm154_vm1, %v543_v42  ;;  %2082 = vmatprep.subr.bf16.mxu1 %v9705_v5 }
  0x92   :  { %634 = vmatprep.mubr.f32.mxu0 %v10903_v0  ;;  %2024 = vmatpush1.bf16.msra.mxu0 %v9676_v53 }
  0x93   :  { %2025 = vmatprep.subr.bf16.mxu0 %v9684_v55 }
  0x94   :  { %2083 = vmatpush1.bf16.msra.mxu1 %v9703_v7 }
  0x95   :  { %8364 = vmatmul.mubr.msk.f32.gmra.mxu0 %vm154_vm1, %v542_v41  ;;  %2084 = vmatprep.subr.bf16.mxu1 %v9711_v9 }
  0x96   :  { %2026 = vmatpush1.bf16.msra.mxu0 %v9682_v57 }
  0x97   :  { %2027 = vmatprep.subr.bf16.mxu0 %v9690_v59 }
  0x98   :  { %2085 = vmatpush1.bf16.msra.mxu1 %v9709_v11  ;;  %v11092_v11 = vld [vmem:[#allocation5] sm:$0xf] }
  0x99   :  { %2094 = vmatprep.subr.bf16.mxu1 %v9717_v13 }
  0x9a   :  { %2028 = vmatpush1.bf16.msra.mxu0 %v9688_v61 }
  0x9b   :  { %2029 = vmatprep.subr.bf16.mxu0 %v9696_v63 }
  0x9c   :  { %2095 = vmatpush2.bf16.msra.mxu1 %v9715_v15 }
  0x9d   :  { %2096 = vmatprep.subr.bf16.mxu1 %v9723_v17 }
  0x9e   :  { %2030 = vmatpush1.bf16.msra.mxu0 %v9694_v2  ;;  %v11087_v2 = vshrl.u32 %v748_v62, 7 }
  0x9f   :  { %2031 = vmatprep.subr.bf16.mxu0 %v9702_v4 }
  0xa0   :  { %2097 = vmatpush2.bf16.msra.mxu1 %v9721_v19  ;;  %v762_v5 = vsub.s32 3, %v11087_v2 }
  0xa1   :  { %2098 = vmatprep.subr.bf16.mxu1 %v9729_v21 }
  0xa2   :  { %2032 = vmatpush1.bf16.msra.mxu0 %v9700_v6  ;;  %v763_v19 = vrot.slane %v11092_v11, %v762_v5 }
  0xa3   :  { %2033 = vmatprep.subr.bf16.mxu0 %v9708_v8 }
  0xa4   :  { %2099 = vmatpush2.bf16.msra.mxu1 %v9727_v23 }
  0xa5   :  { %2100 = vmatprep.subr.bf16.mxu1 %v9735_v25 }
  0xa6   :  { %2034 = vmatpush1.bf16.msra.mxu0 %v9706_v10 }
  0xa7   :  { %2035 = vmatprep.subr.bf16.mxu0 %v9714_v12  ;;  %v758_v12 = vsub.s32 2, %v11087_v2 }
  0xa8   :  { %2101 = vmatpush2.bf16.msra.mxu1 %v9733_v27 }
  0xa9   :  { %2121 = vmatprep.subr.bf16.mxu1 %v9741_v29 }
  0xaa   :  { %2036 = vmatpush2.bf16.msra.mxu0 %v9712_v14 }
  0xab   :  { %2037 = vmatprep.subr.bf16.mxu0 %v9720_v16 }
  0xae   :  { %2038 = vmatpush2.bf16.msra.mxu0 %v9718_v18 }
  0xaf   :  { %2039 = vmatprep.subr.bf16.mxu0 %v9726_v20 }
  0xb2   :  { %2040 = vmatpush2.bf16.msra.mxu0 %v9724_v22 }
  0xb3   :  { %2041 = vmatprep.subr.bf16.mxu0 %v9732_v24 }
  0xb6   :  { %2042 = vmatpush2.bf16.msra.mxu0 %v9730_v26  ;;  %v759_v26 = vrot.slane %v11092_v11, %v758_v12 }
  0xb7   :  { %2043 = vmatprep.subr.bf16.mxu0 %v9738_v28 }
  0xba   :  { %2044 = vmatpush2.bf16.msra.mxu0 %v9736_v30 }
  0xbb   :  { %2045 = vmatprep.subr.bf16.mxu0 %v9744_v31 }
  0xbe   :  { %2046 = vmatpush2.bf16.msra.mxu0 %v9742_v32 }
  0xbf   :  { %2047 = vmatprep.subr.bf16.mxu0 %v9750_v33 }
  0xc2   :  { %2048 = vmatpush2.bf16.msra.mxu0 %v9748_v34 }
  0xc3   :  { %2049 = vmatprep.subr.bf16.mxu0 %v9756_v36 }
  0xc6   :  { %2050 = vmatpush2.bf16.msra.mxu0 %v9754_v35 }
  0xc7   :  { %2172 = vmatprep.subr.bf16.mxu0 %v9765_v37 }
 0x120   :  { %v11069_v38 = vpop.f32.mrf.mxu0 }
 0x121   :  { %v330_v39 = vpop.f32.mrf.mxu1 }
 0x122   :  { %v11071_v40 = vpop.f32.mrf.mxu0 }
 0x123   :  { %v332_v41 = vpop.f32.mrf.mxu1 }
 0x124   :  { %v11073_v42 = vpop.f32.mrf.mxu0 }
 0x125   :  { %v336_v43 = vpop.f32.mrf.mxu1 }
 0x126   :  { %v11075_v44 = vpop.f32.mrf.mxu0 }
 0x127   :  { %v338_v45 = vpop.f32.mrf.mxu1 }
 0x128   :  { %v11077_v46 = vpop.f32.mrf.mxu0 }
 0x129   :  { %v504_v47 = vpop.f32.mrf.mxu1 }
 0x12a   :  { %v11079_v48 = vpop.f32.mrf.mxu0 }
 0x12b   :  { %v506_v49 = vpop.f32.mrf.mxu1 }
 0x12c   :  { %v11081_v50 = vpop.f32.mrf.mxu0 }
 0x12d   :  { %v510_v51 = vpop.f32.mrf.mxu1 }
 0x12e   :  { %v11083_v52 = vpop.f32.mrf.mxu0 }
 0x12f   :  { %v512_v53 = vpop.f32.mrf.mxu1 }
 0x130   :  { %v318_v54 = vpop.f32.mrf.mxu0 }
 0x131   :  { %v516_v55 = vpop.f32.mrf.mxu1  ;;  %v505_v17 = vadd.f32 %v504_v47, %v318_v54 }
 0x132   :  { %v320_v56 = vpop.f32.mrf.mxu0  ;;  %v517_v15 = vadd.f32 %v516_v55, %v330_v39 }
 0x133   :  { %v518_v57 = vpop.f32.mrf.mxu1  ;;  %v507_v9 = vadd.f32 %v506_v49, %v320_v56 }
 0x134   :  { %v519_v24 = vadd.f32 %v518_v57, %v332_v41 }
 0x135   :  { %v324_v58 = vpop.f32.mrf.mxu0  ;;  %v522_v59 = vpop.f32.mrf.mxu1 }
 0x136   :  { %v511_v10 = vadd.f32 %v510_v51, %v324_v58  ;;  %v523_v29 = vadd.f32 %v522_v59, %v336_v43  ;;  %v750_v51 = vsub.s32 0, %v11087_v2 }
 0x137   :  { %v326_v60 = vpop.f32.mrf.mxu0  ;;  %v524_v61 = vpop.f32.mrf.mxu1 }
 0x138   :  { %v513_v8 = vadd.f32 %v512_v53, %v326_v60  ;;  %v525_v36 = vadd.f32 %v524_v61, %v338_v45 }
 0x139   :  { %v11085_v63 = vpop.f32.mrf.mxu0  ;;  %v707_v1 = vpop.f32.mrf.mxu1 }
 0x13a   :  { %v732_v25 = vadd.f32 %v707_v1, %v505_v17 }
 0x13b   :  { %v11089_v3 = vpop.f32.mrf.mxu0  ;;  %v709_v4 = vpop.f32.mrf.mxu1 }
 0x13c   :  { %v733_v18 = vadd.f32 %v709_v4, %v507_v9  ;;  %v770_v47 = vadd.f32 %v759_v26, %v732_v25  ;;  %v9739_v25 = vld [vmem:[#allocation7 + $0x698] ss:$24 sps:$4 sm:$0xff]  }
 0x13d   :  { %v421_v6 = vpop.f32.mrf.mxu0  ;;  %v713_v7 = vpop.f32.mrf.mxu1 }
 0x13e   :  { %v736_v20 = vadd.f32 %v713_v7, %v511_v10  ;;  %v771_v31 = vadd.f32 %v763_v19, %v733_v18  ;;  %v786_v1 = vmax.f32 %v770_v47, 0.0  ;;  %v422_v9 = vadd.f32 %v421_v6, %v11073_v42 }
 0x13f   :  { %v423_v13 = vpop.f32.mrf.mxu0  ;;  %v715_v14 = vpop.f32.mrf.mxu1  ;;  %v418_v42 = vadd.f32 %v11089_v3, %v11071_v40 }
 0x140   :  { %v737_v16 = vadd.f32 %v715_v14, %v513_v8  ;;  %v774_v32 = vadd.f32 %v759_v26, %v736_v20  ;;  %v787_v57 = vmax.f32 %v771_v31, 0.0  ;;  %v751_v14 = vrot.slane %v11092_v11, %v750_v51 }
 0x141   :  { %v427_v21 = vpop.f32.mrf.mxu0  ;;  %v719_v22 = vpop.f32.mrf.mxu1  ;;  %v424_v17 = vadd.f32 %v423_v13, %v11075_v44 }
 0x142   :  { %v740_v23 = vadd.f32 %v719_v22, %v517_v15  ;;  %v775_v30 = vadd.f32 %v763_v19, %v737_v16  ;;  %v790_v43 = vmax.f32 %v774_v32, 0.0  ;;  %v754_v15 = vsub.s32 1, %v11087_v2 }
 0x143   :  { %v429_v27 = vpop.f32.mrf.mxu0  ;;  %v721_v28 = vpop.f32.mrf.mxu1 }
 0x144   :  { %v741_v33 = vadd.f32 %v721_v28, %v519_v24  ;;  %v778_v37 = vadd.f32 %v759_v26, %v740_v23  ;;  %v791_v53 = vmax.f32 %v775_v30, 0.0  ;;  %v11107_v10 = vpack.c.bf16 %v790_v43, %v786_v1  ;;  %v9751_v43 = vld [vmem:[#allocation7 + $0x638] ss:$24 sps:$4 sm:$0xff]  }
 0x145   :  { %v433_v34 = vpop.f32.mrf.mxu0  ;;  %v725_v35 = vpop.f32.mrf.mxu1  ;;  %v428_v23 = vadd.f32 %v427_v21, %v11077_v46  ;;  %v430_v3 = vadd.f32 %v429_v27, %v11079_v48  ;;  %v9747_v21 = vld [vmem:[#allocation7 + $0x66c] ss:$24 sps:$4 sm:$0xff]  }
 0x146   :  { %v744_v39 = vadd.f32 %v725_v35, %v523_v29  ;;  %v779_v54 = vadd.f32 %v763_v19, %v741_v33  ;;  %v794_v59 = vmax.f32 %v778_v37, 0.0  ;;  %v11102_v45 = vpack.c.bf16 %v791_v53, %v787_v57  ;;  %v9745_v37 = vld [vmem:[#allocation7 + $0x668] ss:$24 sps:$4 sm:$0xff]   ;;  %v9753_v53 = vld [vmem:[#allocation7 + $0x63c] ss:$24 sps:$4 sm:$0xff]  }
 0x147   :  { %v435_v49 = vpop.f32.mrf.mxu0  ;;  %v727_v41 = vpop.f32.mrf.mxu1 }
 0x148   :  { %v782_v55 = vadd.f32 %v759_v26, %v744_v39  ;;  %v745_v56 = vadd.f32 %v727_v41, %v525_v36  ;;  %v795_v61 = vmax.f32 %v779_v54, 0.0  ;;  %v1163_v44 = vrot.slane %v11102_v45, 1 }
 0x149   :  { %v618_v58 = vpop.f32.mrf.mxu0  ;;  %v436_v39 = vadd.f32 %v435_v49, %v11083_v52 }
 0x14a   :  { %v798_v60 = vmax.f32 %v782_v55, 0.0  ;;  %v783_v62 = vadd.f32 %v763_v19, %v745_v56  ;;  %v416_v19 = vadd.f32 %v11085_v63, %v11069_v38  ;;  %v755_v38 = vrot.slane %v11092_v11, %v754_v15 }
 0x14b   :  { %v620_v4 = vpop.f32.mrf.mxu0  ;;  %v1160_v63 = vrot.slane %v11107_v10, 1  ;;  %v434_v11 = vadd.f32 %v433_v34, %v11081_v50 }
 0x14c   :  { %v11104_v7 = vpack.c.bf16 %v798_v60, %v794_v59  ;;  %v799_v8 = vmax.f32 %v783_v62, 0.0  ;;  %v730_v26 = vadd.f32 %v618_v58, %v416_v19  ;;  %v731_v28 = vadd.f32 %v620_v4, %v418_v42  ;;  %v9759_v58 = vld [vmem:[#allocation7 + $0x60c] ss:$24 sps:$4 sm:$0xff]   ;;  %v9760_v19 = vld [vmem:[#allocation7 + $0x5d8] ss:$24 sps:$4 sm:$0xff]  }
 0x14d   :  { %v624_v16 = vpop.f32.mrf.mxu0  ;;  %v9763_v42 = vld [vmem:[#allocation7 + $0x998] ss:$24 sps:$4 sm:$0xff]  }
 0x14e   :  { %v11114_v18 = vpack.c.bf16 %v799_v8, %v795_v61  ;;  %v734_v6 = vadd.f32 %v624_v16, %v422_v9  ;;  %v11121_v22 = vrot.slane %v11104_v7, 1  ;;  %v768_v48 = vadd.f32 %v751_v14, %v730_v26 }
 0x14f   :  { %v626_v20 = vpop.f32.mrf.mxu0  ;;  %v769_v27 = vadd.f32 %v755_v38, %v731_v28  ;;  %v9766_v28 = vld [vmem:[#allocation7 + $0x5a8] ss:$24 sps:$4 sm:$0xff]  }
 0x150   :  { %v735_v24 = vadd.f32 %v626_v20, %v424_v17  ;;  %v11126_v13 = vrot.slane %v11114_v18, 1  ;;  %v772_v30 = vadd.f32 %v751_v14, %v734_v6  ;;  %v11141_v32 = vsel %vm1153_vm3, %v1160_v63, %v11121_v22  ;;  %v9762_v17 = vld [vmem:[#allocation7 + $0x5dc] ss:$24 sps:$4 sm:$0xff]  }
 0x151   :  { %v630_v40 = vpop.f32.mrf.mxu0  ;;  %v784_v59 = vmax.f32 %v768_v48, 0.0  ;;  %v785_v60 = vmax.f32 %v769_v27, 0.0  ;;  %v9774_v63 = vld [vmem:[#allocation7 + $0x57c] ss:$24 sps:$4 sm:$0xff]   ;;  %v9784_v27 = vld [vmem:[#allocation7 + $0x818] ss:$24 sps:$4 sm:$0xff]  }
 0x152   :  { %v738_v29 = vadd.f32 %v630_v40, %v428_v23  ;;  %v11135_v46 = vsel %vm1153_vm3, %v1163_v44, %v11126_v13  ;;  %v773_v33 = vadd.f32 %v755_v38, %v735_v24  ;;  %v788_v54 = vmax.f32 %v772_v30, 0.0  ;;  %v9768_v44 = vld [vmem:[#allocation7 + $0x5ac] ss:$24 sps:$4 sm:$0xff]   ;;  %v9789_v48 = vld [vmem:[#allocation7 + $0x8dc] ss:$24 sps:$4 sm:$0xff]  }
 0x153   :  { %v632_v31 = vpop.f32.mrf.mxu0  ;;  %8537 = vmatprep.mubr.msk.bf16.mxu1 %vm2012_vm4, %v11135_v46  ;;  %v9771_v40 = vld [vmem:[#allocation7 + $0x96c] ss:$24 sps:$4 sm:$0xff]  }
 0x154   :  { %v739_v35 = vadd.f32 %v632_v31, %v430_v3  ;;  %2103 = vmatmul.mubr.bf16.vlgmr.msra.gmra.mxu1 %v11141_v32  ;;  %v776_v47 = vadd.f32 %v751_v14, %v738_v29  ;;  %v789_v34 = vmax.f32 %v773_v33, 0.0  ;;  %v11148_v52 = vpack.c.bf16 %v788_v54, %v784_v59  ;;  %v9777_v3 = vld [vmem:[#allocation7 + $0x93c] ss:$24 sps:$4 sm:$0xff]   ;;  %v9772_v29 = vld [vmem:[#allocation7 + $0x578] ss:$24 sps:$4 sm:$0xff]  }
 0x155   :  { %2122 = vmatpush1.bf16.msra.mxu1 %v9739_v25  ;;  %v636_v36 = vpop.f32.mrf.mxu0  ;;  %8538 = vmatprep.mubr.msk.bf16.mxu1 %vm2012_vm4, %v11126_v13  ;;  %v9780_v30 = vld [vmem:[#allocation7 + $0x54c] ss:$24 sps:$4 sm:$0xff]   ;;  %v9778_v31 = vld [vmem:[#allocation7 + $0x548] ss:$24 sps:$4 sm:$0xff]   ;;  %v9801_v54 = vld [vmem:[#allocation7 + $0x87c] ss:$24 sps:$4 sm:$0xff]  }
 0x156   :  { %v742_v41 = vadd.f32 %v636_v36, %v434_v11  ;;  %2123 = vmatprep.subr.bf16.mxu1 %v9747_v21  ;;  %v777_v55 = vadd.f32 %v755_v38, %v739_v35  ;;  %v792_v62 = vmax.f32 %v776_v47, 0.0  ;;  %v11150_v49 = vpack.c.bf16 %v789_v34, %v785_v60  ;;  %v9775_v21 = vld [vmem:[#allocation7 + $0x938] ss:$24 sps:$4 sm:$0xff]   ;;  %v9781_v11 = vld [vmem:[#allocation7 + $0x908] ss:$24 sps:$4 sm:$0xff]  }
 0x157   :  { %v638_v50 = vpop.f32.mrf.mxu0  ;;  %v1154_v24 = vrot.slane %v11148_v52, 1  ;;  %v9783_v33 = vld [vmem:[#allocation7 + $0x90c] ss:$24 sps:$4 sm:$0xff]   ;;  %v9786_v35 = vld [vmem:[#allocation7 + $0x81c] ss:$24 sps:$4 sm:$0xff]  }
 0x158   :  { %v780_v56 = vadd.f32 %v751_v14, %v742_v41  ;;  %v743_v57 = vadd.f32 %v638_v50, %v436_v39  ;;  %v793_v61 = vmax.f32 %v777_v55, 0.0  ;;  %v9757_v14 = vld [vmem:[#allocation7 + $0x608] ss:$24 sps:$4 sm:$0xff]   ;;  %v1157_v20 = vrot.slane %v11150_v49, 1  ;;  %v9787_v36 = vld [vmem:[#allocation7 + $0x8d8] ss:$24 sps:$4 sm:$0xff]  }
 0x159   :  { %2124 = vmatpush1.bf16.msra.mxu1 %v9745_v37  ;;  %v9792_v37 = vld [vmem:[#allocation7 + $0x7ec] ss:$24 sps:$4 sm:$0xff]   ;;  %v9790_v47 = vld [vmem:[#allocation7 + $0x7e8] ss:$24 sps:$4 sm:$0xff]   ;;  %v9796_v50 = vld [vmem:[#allocation7 + $0x7b8] ss:$24 sps:$4 sm:$0xff]  }
 0x15a   :  { %v796_v1 = vmax.f32 %v780_v56, 0.0  ;;  %v781_v4 = vadd.f32 %v755_v38, %v743_v57  ;;  %2125 = vmatprep.subr.bf16.mxu1 %v9753_v53  ;;  %v9769_v38 = vld [vmem:[#allocation7 + $0x968] ss:$24 sps:$4 sm:$0xff]   ;;  %v9795_v39 = vld [vmem:[#allocation7 + $0x8ac] ss:$24 sps:$4 sm:$0xff]  }
 0x15b   :  { %v9793_v41 = vld [vmem:[#allocation7 + $0x8a8] ss:$24 sps:$4 sm:$0xff]   ;;  %v9798_v53 = vld [vmem:[#allocation7 + $0x7bc] ss:$24 sps:$4 sm:$0xff]   ;;  %v9799_v34 = vld [vmem:[#allocation7 + $0x878] ss:$24 sps:$4 sm:$0xff]  }
 0x15c   :  { %v11152_v8 = vpack.c.bf16 %v796_v1, %v792_v62  ;;  %v797_v9 = vmax.f32 %v781_v4, 0.0  ;;  %2113 = vmatmul.mubr.bf16.gmra.mxu1 %v11121_v22  ;;  %v9804_v55 = vld [vmem:[#allocation7 + $0x78c] ss:$24 sps:$4 sm:$0xff]   ;;  %v9802_v57 = vld [vmem:[#allocation7 + $0x788] ss:$24 sps:$4 sm:$0xff]  }
 0x15d   :  { %2126 = vmatpush1.bf16.msra.mxu1 %v9751_v43  ;;  %v9807_v56 = vld [vmem:[#allocation7 + $0x84c] ss:$24 sps:$4 sm:$0xff]   ;;  %v9805_v43 = vld [vmem:[#allocation7 + $0x848] ss:$24 sps:$4 sm:$0xff]   ;;  %v9813_v59 = vld [vmem:[#allocation7 + $0xa5c] ss:$24 sps:$4 sm:$0xff]  }
 0x15e   :  { %v11155_v16 = vpack.c.bf16 %v797_v9, %v793_v61  ;;  %2127 = vmatprep.subr.bf16.mxu1 %v9759_v58  ;;  %v11158_v6 = vrot.slane %v11152_v8, 1  ;;  %v9810_v58 = vld [vmem:[#allocation7 + $0x75c] ss:$24 sps:$4 sm:$0xff]   ;;  %v9808_v60 = vld [vmem:[#allocation7 + $0x758] ss:$24 sps:$4 sm:$0xff]  }
 0x15f   :  { %v9811_v62 = vld [vmem:[#allocation7 + $0xa58] ss:$24 sps:$4 sm:$0xff]   ;;  %v9816_v1 = vld [vmem:[#allocation7 + $0x72c] ss:$24 sps:$4 sm:$0xff]   ;;  %v9814_v61 = vld [vmem:[#allocation7 + $0x728] ss:$24 sps:$4 sm:$0xff]  }
 0x160   :  { %v11162_v23 = vrot.slane %v11155_v16, 1  ;;  %v11173_v26 = vsel %vm1153_vm3, %v1154_v24, %v11158_v6  ;;  %v9819_v4 = vld [vmem:[#allocation7 + $0xa2c] ss:$24 sps:$4 sm:$0xff]   ;;  %v9817_v9 = vld [vmem:[#allocation7 + $0xa28] ss:$24 sps:$4 sm:$0xff]  }
 0x161   :  { %2128 = vmatpush1.bf16.msra.mxu1 %v9757_v14  ;;  %v9822_v14 = vld [vmem:[#allocation7 + $0x6fc] ss:$24 sps:$4 sm:$0xff]   ;;  %v9831_v24 = vld [vmem:[#allocation7 + $0x9cc] ss:$24 sps:$4 sm:$0xff]  }
 0x162   :  { %v11167_v25 = vsel %vm1153_vm3, %v1157_v20, %v11162_v23  ;;  %2129 = vmatprep.subr.bf16.mxu1 %v9762_v17  ;;  %v9825_v17 = vld [vmem:[#allocation7 + $0x9fc] ss:$24 sps:$4 sm:$0xff]   ;;  %v9828_v20 = vld [vmem:[#allocation7 + $0x6cc] ss:$24 sps:$4 sm:$0xff]  }
 0x163   :  { %2051 = vmatprep.mubr.bf16.mxu0 %v11167_v25  ;;  %2153 = vmatprep.mubr.bf16.mxu1 %v11167_v25 }
 0x164   :  { %2052 = vmatmul.mubr.bf16.vlgmr.msra.gmra.mxu0 %v11173_v26 }
 0x165   :  { %2130 = vmatpush1.bf16.msra.mxu1 %v9760_v19  ;;  %2173 = vmatpush1.bf16.msra.mxu0 %v9763_v42  ;;  %v9820_v19 = vld [vmem:[#allocation7 + $0x6f8] ss:$24 sps:$4 sm:$0xff]  }
 0x166   :  { %2061 = vmatprep.mubr.bf16.mxu0 %v11162_v23  ;;  %2131 = vmatprep.subr.bf16.mxu1 %v9768_v44  ;;  %v9823_v42 = vld [vmem:[#allocation7 + $0x9f8] ss:$24 sps:$4 sm:$0xff]   ;;  %v9826_v44 = vld [vmem:[#allocation7 + $0x6c8] ss:$24 sps:$4 sm:$0xff]  }
 0x167   :  { %2174 = vmatprep.subr.bf16.mxu0 %v9771_v40  ;;  %v9837_v40 = vld [vmem:[#allocation7 + $0x9a4] ss:$24 sps:$4 sm:$0xff]  }
 0x169   :  { %2132 = vmatpush1.bf16.msra.mxu1 %v9766_v28  ;;  %2175 = vmatpush1.bf16.msra.mxu0 %v9769_v38  ;;  %v9829_v28 = vld [vmem:[#allocation7 + $0x9c8] ss:$24 sps:$4 sm:$0xff]   ;;  %v9834_v38 = vld [vmem:[#allocation7 + $0x6a4] ss:$24 sps:$4 sm:$0xff]  }
 0x16a   :  { %2133 = vmatprep.subr.bf16.mxu1 %v9774_v63  ;;  %2176 = vmatprep.subr.bf16.mxu0 %v9777_v3  ;;  %v9832_v63 = vld [vmem:[#allocation7 + $0x6a0] ss:$24 sps:$4 sm:$0xff]  }
 0x16b   :  { %v9835_v3 = vld [vmem:[#allocation7 + $0x9a0] ss:$24 sps:$4 sm:$0xff]  }
 0x16c   :  { %2062 = vmatmul.mubr.bf16.gmra.mxu0 %v11158_v6 }
 0x16d   :  { %2134 = vmatpush1.bf16.msra.mxu1 %v9772_v29  ;;  %2177 = vmatpush1.bf16.msra.mxu0 %v9775_v21  ;;  %v9840_v29 = vld [vmem:[#allocation7 + $0x674] ss:$24 sps:$4 sm:$0xff]  }
 0x16e   :  { %8539 = vmatprep.mubr.msk.bf16.mxu0 %vm2012_vm4, %v11135_v46  ;;  %2135 = vmatprep.subr.bf16.mxu1 %v9780_v30  ;;  %v9843_v21 = vld [vmem:[#allocation7 + $0x974] ss:$24 sps:$4 sm:$0xff]   ;;  %v9838_v30 = vld [vmem:[#allocation7 + $0x670] ss:$24 sps:$4 sm:$0xff]  }
 0x16f   :  { %2178 = vmatprep.subr.bf16.mxu0 %v9783_v33  ;;  %v9849_v33 = vld [vmem:[#allocation7 + $0x944] ss:$24 sps:$4 sm:$0xff]  }
 0x171   :  { %2136 = vmatpush1.bf16.msra.mxu1 %v9778_v31  ;;  %2179 = vmatpush1.bf16.msra.mxu0 %v9781_v11  ;;  %v9841_v31 = vld [vmem:[#allocation7 + $0x970] ss:$24 sps:$4 sm:$0xff]   ;;  %v9846_v11 = vld [vmem:[#allocation7 + $0x644] ss:$24 sps:$4 sm:$0xff]  }
 0x172   :  { %2137 = vmatprep.subr.bf16.mxu1 %v9786_v35  ;;  %2180 = vmatprep.subr.bf16.mxu0 %v9789_v48  ;;  %v9844_v35 = vld [vmem:[#allocation7 + $0x640] ss:$24 sps:$4 sm:$0xff]  }
 0x173   :  { %v9847_v48 = vld [vmem:[#allocation7 + $0x940] ss:$24 sps:$4 sm:$0xff]  }
 0x175   :  { %2138 = vmatpush2.bf16.msra.mxu1 %v9784_v27  ;;  %2181 = vmatpush1.bf16.msra.mxu0 %v9787_v36  ;;  %v9852_v27 = vld [vmem:[#allocation7 + $0x614] ss:$24 sps:$4 sm:$0xff]  }
 0x176   :  { %2139 = vmatprep.subr.bf16.mxu1 %v9792_v37  ;;  %2182 = vmatprep.subr.bf16.mxu0 %v9795_v39  ;;  %v9855_v36 = vld [vmem:[#allocation7 + $0x914] ss:$24 sps:$4 sm:$0xff]   ;;  %v9850_v37 = vld [vmem:[#allocation7 + $0x610] ss:$24 sps:$4 sm:$0xff]  }
 0x177   :  { %v9853_v39 = vld [vmem:[#allocation7 + $0x910] ss:$24 sps:$4 sm:$0xff]  }
 0x179   :  { %2140 = vmatpush2.bf16.msra.mxu1 %v9790_v47  ;;  %2183 = vmatpush1.bf16.msra.mxu0 %v9793_v41  ;;  %v9858_v47 = vld [vmem:[#allocation7 + $0x5e4] ss:$24 sps:$4 sm:$0xff]  }
 0x17a   :  { %2141 = vmatprep.subr.bf16.mxu1 %v9798_v53  ;;  %2184 = vmatprep.subr.bf16.mxu0 %v9801_v54  ;;  %v9861_v41 = vld [vmem:[#allocation7 + $0x8e4] ss:$24 sps:$4 sm:$0xff]   ;;  %v9856_v53 = vld [vmem:[#allocation7 + $0x5e0] ss:$24 sps:$4 sm:$0xff]  }
 0x17b   :  { %v9859_v54 = vld [vmem:[#allocation7 + $0x8e0] ss:$24 sps:$4 sm:$0xff]  }
 0x17d   :  { %2142 = vmatpush2.bf16.msra.mxu1 %v9796_v50  ;;  %2185 = vmatpush1.bf16.msra.mxu0 %v9799_v34  ;;  %v9864_v50 = vld [vmem:[#allocation7 + $0x5b4] ss:$24 sps:$4 sm:$0xff]  }
 0x17e   :  { %2143 = vmatprep.subr.bf16.mxu1 %v9804_v55  ;;  %2186 = vmatprep.subr.bf16.mxu0 %v9807_v56  ;;  %v9867_v34 = vld [vmem:[#allocation7 + $0x8b4] ss:$24 sps:$4 sm:$0xff]   ;;  %v9862_v55 = vld [vmem:[#allocation7 + $0x5b0] ss:$24 sps:$4 sm:$0xff]  }
 0x17f   :  { %v9865_v56 = vld [vmem:[#allocation7 + $0x8b0] ss:$24 sps:$4 sm:$0xff]  }
 0x181   :  { %2144 = vmatpush2.bf16.msra.mxu1 %v9802_v57  ;;  %2187 = vmatpush1.bf16.msra.mxu0 %v9805_v43  ;;  %v9873_v57 = vld [vmem:[#allocation7 + $0x884] ss:$24 sps:$4 sm:$0xff]   ;;  %v9871_v43 = vld [vmem:[#allocation7 + $0x880] ss:$24 sps:$4 sm:$0xff]  }
 0x182   :  { %2145 = vmatprep.subr.bf16.mxu1 %v9810_v58  ;;  %2196 = vmatprep.subr.bf16.mxu0 %v9813_v59  ;;  %v9876_v58 = vld [vmem:[#allocation7 + $0x554] ss:$24 sps:$4 sm:$0xff]  }
 0x183   :  { %v9879_v59 = vld [vmem:[#allocation7 + $0x854] ss:$24 sps:$4 sm:$0xff]  }
 0x185   :  { %2146 = vmatpush2.bf16.msra.mxu1 %v9808_v60  ;;  %2197 = vmatpush2.bf16.msra.mxu0 %v9811_v62  ;;  %v9874_v60 = vld [vmem:[#allocation7 + $0x550] ss:$24 sps:$4 sm:$0xff]  }
 0x186   :  { %2147 = vmatprep.subr.bf16.mxu1 %v9816_v1  ;;  %2198 = vmatprep.subr.bf16.mxu0 %v9819_v4  ;;  %v9877_v62 = vld [vmem:[#allocation7 + $0x850] ss:$24 sps:$4 sm:$0xff]   ;;  %v9882_v1 = vld [vmem:[#allocation7 + $0x824] ss:$24 sps:$4 sm:$0xff]  }
 0x187   :  { %v9885_v4 = vld [vmem:[#allocation7 + $0xa64] ss:$24 sps:$4 sm:$0xff]  }
 0x189   :  { %2148 = vmatpush2.bf16.msra.mxu1 %v9814_v61  ;;  %2199 = vmatpush2.bf16.msra.mxu0 %v9817_v9  ;;  %v9880_v61 = vld [vmem:[#allocation7 + $0x820] ss:$24 sps:$4 sm:$0xff]  }
 0x18a   :  { %2149 = vmatprep.subr.bf16.mxu1 %v9822_v14  ;;  %2200 = vmatprep.subr.bf16.mxu0 %v9825_v17  ;;  %v9883_v9 = vld [vmem:[#allocation7 + $0xa60] ss:$24 sps:$4 sm:$0xff]   ;;  %v9888_v14 = vld [vmem:[#allocation7 + $0x7f4] ss:$24 sps:$4 sm:$0xff]  }
 0x18b   :  { %v9891_v17 = vld [vmem:[#allocation7 + $0xa34] ss:$24 sps:$4 sm:$0xff]  }
 0x18d   :  { %2150 = vmatpush2.bf16.msra.mxu1 %v9820_v19  ;;  %2201 = vmatpush2.bf16.msra.mxu0 %v9823_v42  ;;  %v9886_v19 = vld [vmem:[#allocation7 + $0x7f0] ss:$24 sps:$4 sm:$0xff]  }
 0x18e   :  { %2151 = vmatprep.subr.bf16.mxu1 %v9828_v20  ;;  %2202 = vmatprep.subr.bf16.mxu0 %v9831_v24  ;;  %v9889_v42 = vld [vmem:[#allocation7 + $0xa30] ss:$24 sps:$4 sm:$0xff]   ;;  %v9894_v20 = vld [vmem:[#allocation7 + $0x7c4] ss:$24 sps:$4 sm:$0xff]  }
 0x18f   :  { %v9897_v24 = vld [vmem:[#allocation7 + $0xa04] ss:$24 sps:$4 sm:$0xff]  }
 0x191   :  { %2152 = vmatpush2.bf16.msra.mxu1 %v9826_v44  ;;  %2203 = vmatpush2.bf16.msra.mxu0 %v9829_v28  ;;  %v9892_v44 = vld [vmem:[#allocation7 + $0x7c0] ss:$24 sps:$4 sm:$0xff]  }
 0x192   :  { %2223 = vmatprep.subr.bf16.mxu0 %v9834_v38  ;;  %2274 = vmatprep.subr.bf16.mxu1 %v9837_v40  ;;  %v9895_v28 = vld [vmem:[#allocation7 + $0xa00] ss:$24 sps:$4 sm:$0xff]   ;;  %v9900_v38 = vld [vmem:[#allocation7 + $0x794] ss:$24 sps:$4 sm:$0xff]  }
 0x193   :  { %v9903_v40 = vld [vmem:[#allocation7 + $0x9d4] ss:$24 sps:$4 sm:$0xff]  }
 0x194   :  { %2154 = vmatmul.mubr.bf16.vlgmr.msra.gmra.mxu1 %v11173_v26  ;;  %2205 = vmatmul.mubr.bf16.vlgmr.msra.gmra.mxu0 %v11141_v32 }
 0x195   :  { %2163 = vmatprep.mubr.bf16.mxu1 %v11162_v23  ;;  %8540 = vmatprep.mubr.msk.bf16.mxu0 %vm2012_vm4, %v11126_v13 }
 0x196   :  { %2224 = vmatpush1.bf16.msra.mxu0 %v9832_v63  ;;  %2275 = vmatpush1.bf16.msra.mxu1 %v9835_v3  ;;  %v9898_v63 = vld [vmem:[#allocation7 + $0x790] ss:$24 sps:$4 sm:$0xff]  }
 0x197   :  { %2225 = vmatprep.subr.bf16.mxu0 %v9840_v29  ;;  %2276 = vmatprep.subr.bf16.mxu1 %v9843_v21  ;;  %v9901_v3 = vld [vmem:[#allocation7 + $0x9d0] ss:$24 sps:$4 sm:$0xff]   ;;  %v9906_v29 = vld [vmem:[#allocation7 + $0x764] ss:$24 sps:$4 sm:$0xff]   ;;  %v9909_v21 = vld [vmem:[#allocation7 + $0x154] ss:$24 sps:$4 sm:$0xff]  }
 0x19a   :  { %2226 = vmatpush1.bf16.msra.mxu0 %v9838_v30  ;;  %2277 = vmatpush1.bf16.msra.mxu1 %v9841_v31  ;;  %v9904_v30 = vld [vmem:[#allocation7 + $0x760] ss:$24 sps:$4 sm:$0xff]   ;;  %v9907_v31 = vld [vmem:[#allocation7 + $0x150] ss:$24 sps:$4 sm:$0xff]  }
 0x19b   :  { %2227 = vmatprep.subr.bf16.mxu0 %v9846_v11  ;;  %2278 = vmatprep.subr.bf16.mxu1 %v9849_v33  ;;  %v9912_v11 = vld [vmem:[#allocation7 + $0x734] ss:$24 sps:$4 sm:$0xff]   ;;  %v9915_v33 = vld [vmem:[#allocation7 + $0x124] ss:$24 sps:$4 sm:$0xff]  }
 0x19c   :  { %2164 = vmatmul.mubr.bf16.gmra.mxu1 %v11158_v6  ;;  %2215 = vmatmul.mubr.bf16.gmra.mxu0 %v11121_v22 }
 0x19d   :  { %2255 = vmatprep.mubr.bf16.mxu0 %v11167_v25  ;;  %8541 = vmatprep.mubr.msk.bf16.mxu1 %vm2012_vm4, %v11135_v46  ;;  %v9870_v25 = vld [vmem:[#allocation7 + $0x584] ss:$24 sps:$4 sm:$0xff]   ;;  %v9868_v46 = vld [vmem:[#allocation7 + $0x580] ss:$24 sps:$4 sm:$0xff]  }
 0x19e   :  { %2228 = vmatpush1.bf16.msra.mxu0 %v9844_v35  ;;  %2279 = vmatpush1.bf16.msra.mxu1 %v9847_v48  ;;  %v9910_v35 = vld [vmem:[#allocation7 + $0x730] ss:$24 sps:$4 sm:$0xff]   ;;  %v9913_v48 = vld [vmem:[#allocation7 + $0x120] ss:$24 sps:$4 sm:$0xff]  }
 0x19f   :  { %2229 = vmatprep.subr.bf16.mxu0 %v9852_v27  ;;  %2280 = vmatprep.subr.bf16.mxu1 %v9855_v36  ;;  %v9918_v27 = vld [vmem:[#allocation7 + $0x704] ss:$24 sps:$4 sm:$0xff]   ;;  %v9916_v36 = vld [vmem:[#allocation7 + $0x700] ss:$24 sps:$4 sm:$0xff]  }
 0x1a2   :  { %2230 = vmatpush1.bf16.msra.mxu0 %v9850_v37  ;;  %2281 = vmatpush1.bf16.msra.mxu1 %v9853_v39  ;;  %v9921_v37 = vld [vmem:[#allocation7 + $0xf4] ss:$24 sps:$4 sm:$0xff]   ;;  %v9919_v39 = vld [vmem:[#allocation7 + $0xf0] ss:$24 sps:$4 sm:$0xff]  }
 0x1a3   :  { %2231 = vmatprep.subr.bf16.mxu0 %v9858_v47  ;;  %2282 = vmatprep.subr.bf16.mxu1 %v9861_v41  ;;  %v9924_v47 = vld [vmem:[#allocation7 + $0x6d4] ss:$24 sps:$4 sm:$0xff]   ;;  %v9927_v41 = vld [vmem:[#allocation7 + $0xc4] ss:$24 sps:$4 sm:$0xff]  }
 0x1a6   :  { %2232 = vmatpush1.bf16.msra.mxu0 %v9856_v53  ;;  %2283 = vmatpush1.bf16.msra.mxu1 %v9859_v54  ;;  %v9933_v53 = vld [vmem:[#allocation7 + $0x454] ss:$24 sps:$4 sm:$0xff]  }
 0x1a7   :  { %2233 = vmatprep.subr.bf16.mxu0 %v9864_v50  ;;  %2284 = vmatprep.subr.bf16.mxu1 %v9867_v34  ;;  %v9930_v54 = vld [vmem:[#allocation7 + $0x94] ss:$24 sps:$4 sm:$0xff]   ;;  %v9928_v50 = vld [vmem:[#allocation7 + $0x90] ss:$24 sps:$4 sm:$0xff]  }
 0x1a8   :  { %v9931_v34 = vld [vmem:[#allocation7 + $0x450] ss:$24 sps:$4 sm:$0xff]  }
 0x1aa   :  { %2234 = vmatpush1.bf16.msra.mxu0 %v9862_v55  ;;  %2285 = vmatpush1.bf16.msra.mxu1 %v9865_v56  ;;  %v9939_v55 = vld [vmem:[#allocation7 + $0x424] ss:$24 sps:$4 sm:$0xff]  }
 0x1ab   :  { %2235 = vmatprep.subr.bf16.mxu0 %v9870_v25  ;;  %2286 = vmatprep.subr.bf16.mxu1 %v9873_v57  ;;  %v9936_v56 = vld [vmem:[#allocation7 + $0x64] ss:$24 sps:$4 sm:$0xff]   ;;  %v9937_v25 = vld [vmem:[#allocation7 + $0x420] ss:$24 sps:$4 sm:$0xff]   ;;  %v9942_v57 = vld [vmem:[#allocation7 + $0x34] ss:$24 sps:$4 sm:$0xff]  }
 0x1ae   :  { %2236 = vmatpush1.bf16.msra.mxu0 %v9868_v46  ;;  %2287 = vmatpush1.bf16.msra.mxu1 %v9871_v43  ;;  %v9945_v46 = vld [vmem:[#allocation7 + $0x3f4] ss:$24 sps:$4 sm:$0xff]   ;;  %v9940_v43 = vld [vmem:[#allocation7 + $0x30] ss:$24 sps:$4 sm:$0xff]  }
 0x1af   :  { %2237 = vmatprep.subr.bf16.mxu0 %v9876_v58  ;;  %2288 = vmatprep.subr.bf16.mxu1 %v9879_v59  ;;  %v9943_v58 = vld [vmem:[#allocation7 + $0x3f0] ss:$24 sps:$4 sm:$0xff]   ;;  %v9948_v59 = vld [vmem:[#allocation7 + $0x4] ss:$24 sps:$4 sm:$0xff]  }
 0x1b2   :  { %2238 = vmatpush1.bf16.msra.mxu0 %v9874_v60  ;;  %2289 = vmatpush1.bf16.msra.mxu1 %v9877_v62  ;;  %v9951_v60 = vld [vmem:[#allocation7 + $0x3c4] ss:$24 sps:$4 sm:$0xff]   ;;  %v9949_v62 = vld [vmem:[#allocation7 + $0x3c0] ss:$24 sps:$4 sm:$0xff]  }
 0x1b3   :  { %2239 = vmatprep.subr.bf16.mxu0 %v9882_v1  ;;  %2298 = vmatprep.subr.bf16.mxu1 %v9885_v4  ;;  %v9954_v1 = vld [vmem:[#allocation7 + $0x2d4] ss:$24 sps:$4 sm:$0xff]   ;;  %v9952_v4 = vld [vmem:[#allocation7 + $0x2d0] ss:$24 sps:$4 sm:$0xff]  }
 0x1b6   :  { %2240 = vmatpush2.bf16.msra.mxu0 %v9880_v61  ;;  %2299 = vmatpush2.bf16.msra.mxu1 %v9883_v9  ;;  %v9955_v61 = vld [vmem:[#allocation7 + $0x390] ss:$24 sps:$4 sm:$0xff]   ;;  %v9963_v9 = vld [vmem:[#allocation7 + $0x364] ss:$24 sps:$4 sm:$0xff]  }
 0x1b7   :  { %2241 = vmatprep.subr.bf16.mxu0 %v9888_v14  ;;  %2300 = vmatprep.subr.bf16.mxu1 %v9891_v17  ;;  %v9960_v14 = vld [vmem:[#allocation7 + $0x2a4] ss:$24 sps:$4 sm:$0xff]   ;;  %v9961_v17 = vld [vmem:[#allocation7 + $0x360] ss:$24 sps:$4 sm:$0xff]  }
 0x1ba   :  { %2242 = vmatpush2.bf16.msra.mxu0 %v9886_v19  ;;  %2301 = vmatpush2.bf16.msra.mxu1 %v9889_v42  ;;  %v9969_v19 = vld [vmem:[#allocation7 + $0x334] ss:$24 sps:$4 sm:$0xff]  }
 0x1bb   :  { %2243 = vmatprep.subr.bf16.mxu0 %v9894_v20  ;;  %2302 = vmatprep.subr.bf16.mxu1 %v9897_v24  ;;  %v9966_v42 = vld [vmem:[#allocation7 + $0x274] ss:$24 sps:$4 sm:$0xff]   ;;  %v9964_v20 = vld [vmem:[#allocation7 + $0x270] ss:$24 sps:$4 sm:$0xff]  }
 0x1bc   :  { %v9967_v24 = vld [vmem:[#allocation7 + $0x330] ss:$24 sps:$4 sm:$0xff]  }
 0x1be   :  { %2244 = vmatpush2.bf16.msra.mxu0 %v9892_v44  ;;  %2303 = vmatpush2.bf16.msra.mxu1 %v9895_v28  ;;  %v9975_v44 = vld [vmem:[#allocation7 + $0x304] ss:$24 sps:$4 sm:$0xff]  }
 0x1bf   :  { %2245 = vmatprep.subr.bf16.mxu0 %v9900_v38  ;;  %2304 = vmatprep.subr.bf16.mxu1 %v9903_v40  ;;  %v9972_v28 = vld [vmem:[#allocation7 + $0x244] ss:$24 sps:$4 sm:$0xff]   ;;  %v9970_v38 = vld [vmem:[#allocation7 + $0x240] ss:$24 sps:$4 sm:$0xff]  }
 0x1c0   :  { %v9973_v40 = vld [vmem:[#allocation7 + $0x300] ss:$24 sps:$4 sm:$0xff]  }
 0x1c2   :  { %2246 = vmatpush2.bf16.msra.mxu0 %v9898_v63  ;;  %2305 = vmatpush2.bf16.msra.mxu1 %v9901_v3  ;;  %v9981_v63 = vld [vmem:[#allocation7 + $0x514] ss:$24 sps:$4 sm:$0xff]  }
 0x1c3   :  { %2247 = vmatprep.subr.bf16.mxu0 %v9906_v29  ;;  %3171 = vmatprep.subr.bf16.mxu1 %v9909_v21  ;;  %v9978_v3 = vld [vmem:[#allocation7 + $0x214] ss:$24 sps:$4 sm:$0xff]   ;;  %v9976_v29 = vld [vmem:[#allocation7 + $0x210] ss:$24 sps:$4 sm:$0xff]  }
 0x1c4   :  { %v9979_v21 = vld [vmem:[#allocation7 + $0x510] ss:$24 sps:$4 sm:$0xff]  }
 0x1c5   :  { %2307 = vmatmul.mubr.bf16.vlgmr.msra.gmra.mxu1 %v11141_v32  ;;  %v9922_v32 = vld [vmem:[#allocation7 + $0x6d0] ss:$24 sps:$4 sm:$0xff]  }
 0x1c6   :  { %2248 = vmatpush2.bf16.msra.mxu0 %v9904_v30  ;;  %8542 = vmatprep.mubr.msk.bf16.mxu1 %vm2012_vm4, %v11126_v13  ;;  %v9925_v13 = vld [vmem:[#allocation7 + $0xc0] ss:$24 sps:$4 sm:$0xff]   ;;  %v9987_v30 = vld [vmem:[#allocation7 + $0x4e4] ss:$24 sps:$4 sm:$0xff]  }
 0x1c7   :  { %3172 = vmatpush1.bf16.msra.mxu1 %v9907_v31  ;;  %2249 = vmatprep.subr.bf16.mxu0 %v9912_v11  ;;  %v9984_v31 = vld [vmem:[#allocation7 + $0x1e4] ss:$24 sps:$4 sm:$0xff]   ;;  %v9982_v11 = vld [vmem:[#allocation7 + $0x1e0] ss:$24 sps:$4 sm:$0xff]  }
 0x1c8   :  { %3173 = vmatprep.subr.bf16.mxu1 %v9915_v33  ;;  %v9985_v33 = vld [vmem:[#allocation7 + $0x4e0] ss:$24 sps:$4 sm:$0xff]  }
 0x1ca   :  { %2250 = vmatpush2.bf16.msra.mxu0 %v9910_v35  ;;  %v9990_v35 = vld [vmem:[#allocation7 + $0x1b4] ss:$24 sps:$4 sm:$0xff]  }
 0x1cb   :  { %3174 = vmatpush1.bf16.msra.mxu1 %v9913_v48  ;;  %2251 = vmatprep.subr.bf16.mxu0 %v9918_v27  ;;  %v9993_v48 = vld [vmem:[#allocation7 + $0x4b4] ss:$24 sps:$4 sm:$0xff]   ;;  %v9988_v27 = vld [vmem:[#allocation7 + $0x1b0] ss:$24 sps:$4 sm:$0xff]  }
 0x1cc   :  { %3175 = vmatprep.subr.bf16.mxu1 %v9921_v37  ;;  %v9996_v37 = vld [vmem:[#allocation7 + $0x184] ss:$24 sps:$4 sm:$0xff]  }
 0x1cd   :  { %2317 = vmatmul.mubr.bf16.gmra.mxu1 %v11121_v22  ;;  %v9934_v22 = vld [vmem:[#allocation7 + $0x60] ss:$24 sps:$4 sm:$0xff]  }
 0x1ce   :  { %2252 = vmatpush2.bf16.msra.mxu0 %v9916_v36  ;;  %3203 = vmatprep.mubr.bf16.mxu1 %v11150_v49  ;;  %v9991_v36 = vld [vmem:[#allocation7 + $0x4b0] ss:$24 sps:$4 sm:$0xff]  }
 0x1cf   :  { %3176 = vmatpush1.bf16.msra.mxu1 %v9919_v39  ;;  %2253 = vmatprep.subr.bf16.mxu0 %v9924_v47  ;;  %v9999_v39 = vld [vmem:[#allocation7 + $0x484] ss:$24 sps:$4 sm:$0xff]   ;;  %v9994_v47 = vld [vmem:[#allocation7 + $0x180] ss:$24 sps:$4 sm:$0xff]  }
 0x1d0   :  { %3177 = vmatprep.subr.bf16.mxu1 %v9927_v41  ;;  %v9997_v41 = vld [vmem:[#allocation7 + $0x480] ss:$24 sps:$4 sm:$0xff]  }
 0x1d2   :  { %2254 = vmatpush2.bf16.msra.mxu0 %v9922_v32  ;;  %v10002_v32 = vld [vmem:[#allocation7 + $0x15c] ss:$24 sps:$4 sm:$0xff]  }
 0x1d3   :  { %3178 = vmatpush1.bf16.msra.mxu1 %v9925_v13  ;;  %3222 = vmatprep.subr.bf16.mxu0 %v9933_v53  ;;  %v10005_v13 = vld [vmem:[#allocation7 + $0x45c] ss:$24 sps:$4 sm:$0xff]   ;;  %v10000_v53 = vld [vmem:[#allocation7 + $0x158] ss:$24 sps:$4 sm:$0xff]  }
 0x1d4   :  { %3179 = vmatprep.subr.bf16.mxu1 %v9930_v54  ;;  %v10003_v54 = vld [vmem:[#allocation7 + $0x458] ss:$24 sps:$4 sm:$0xff]  }
 0x1d5   :  { %2256 = vmatmul.mubr.bf16.vlgmr.msra.gmra.mxu0 %v11173_v26  ;;  %v9946_v26 = vld [vmem:[#allocation7] ss:$24 sps:$4 sm:$0xff]  }
 0x1d6   :  { %2265 = vmatprep.mubr.bf16.mxu0 %v11162_v23  ;;  %3223 = vmatpush1.bf16.msra.mxu0 %v9931_v34  ;;  %v9957_v23 = vld [vmem:[#allocation7 + $0x394] ss:$24 sps:$4 sm:$0xff]   ;;  %v10006_v34 = vld [vmem:[#allocation7 + $0x128] ss:$24 sps:$4 sm:$0xff]  }
 0x1d7   :  { %3180 = vmatpush1.bf16.msra.mxu1 %v9928_v50  ;;  %3224 = vmatprep.subr.bf16.mxu0 %v9939_v55  ;;  %v10008_v50 = vld [vmem:[#allocation7 + $0x12c] ss:$24 sps:$4 sm:$0xff]  }
 0x1d8   :  { %3181 = vmatprep.subr.bf16.mxu1 %v9936_v56  ;;  %v10011_v55 = vld [vmem:[#allocation7 + $0x42c] ss:$24 sps:$4 sm:$0xff]   ;;  %v10009_v56 = vld [vmem:[#allocation7 + $0x428] ss:$24 sps:$4 sm:$0xff]  }
 0x1da   :  { %3225 = vmatpush1.bf16.msra.mxu0 %v9937_v25  ;;  %v10012_v25 = vld [vmem:[#allocation7 + $0xf8] ss:$24 sps:$4 sm:$0xff]  }
 0x1db   :  { %3182 = vmatpush1.bf16.msra.mxu1 %v9934_v22  ;;  %3226 = vmatprep.subr.bf16.mxu0 %v9945_v46  ;;  %v10014_v22 = vld [vmem:[#allocation7 + $0xfc] ss:$24 sps:$4 sm:$0xff]   ;;  %v10015_v46 = vld [vmem:[#allocation7 + $0x3f8] ss:$24 sps:$4 sm:$0xff]  }
 0x1dc   :  { %3183 = vmatprep.subr.bf16.mxu1 %v9942_v57  ;;  %v10017_v57 = vld [vmem:[#allocation7 + $0x3fc] ss:$24 sps:$4 sm:$0xff]  }
 0x1dd   :  { %2266 = vmatmul.mubr.bf16.gmra.mxu0 %v11158_v6  ;;  %v9958_v6 = vld [vmem:[#allocation7 + $0x2a0] ss:$24 sps:$4 sm:$0xff]  }
 0x1de   :  { %3227 = vmatpush1.bf16.msra.mxu0 %v9943_v58  ;;  %8711 = vmatprep.mubr.msk.bf16.mxu0 %vm2012_vm4, %v11102_v45  ;;  %v10018_v58 = vld [vmem:[#allocation7 + $0xc8] ss:$24 sps:$4 sm:$0xff]  }
 0x1df   :  { %3184 = vmatpush1.bf16.msra.mxu1 %v9940_v43  ;;  %3228 = vmatprep.subr.bf16.mxu0 %v9951_v60  ;;  %v10020_v43 = vld [vmem:[#allocation7 + $0xcc] ss:$24 sps:$4 sm:$0xff]   ;;  %v10021_v60 = vld [vmem:[#allocation7 + $0x3c8] ss:$24 sps:$4 sm:$0xff]  }
 0x1e0   :  { %3185 = vmatprep.subr.bf16.mxu1 %v9948_v59  ;;  %v10023_v59 = vld [vmem:[#allocation7 + $0x3cc] ss:$24 sps:$4 sm:$0xff]  }
 0x1e2   :  { %3229 = vmatpush1.bf16.msra.mxu0 %v9949_v62  ;;  %v10024_v62 = vld [vmem:[#allocation7 + $0x98] ss:$24 sps:$4 sm:$0xff]  }
 0x1e3   :  { %3186 = vmatpush1.bf16.msra.mxu1 %v9946_v26  ;;  %3230 = vmatprep.subr.bf16.mxu0 %v9957_v23  ;;  %v10026_v26 = vld [vmem:[#allocation7 + $0x9c] ss:$24 sps:$4 sm:$0xff]  }
 0x1e4   :  { %3187 = vmatprep.subr.bf16.mxu1 %v9954_v1  ;;  %v10029_v23 = vld [vmem:[#allocation7 + $0x39c] ss:$24 sps:$4 sm:$0xff]   ;;  %v10027_v1 = vld [vmem:[#allocation7 + $0x398] ss:$24 sps:$4 sm:$0xff]  }
 0x1e6   :  { %3231 = vmatpush1.bf16.msra.mxu0 %v9955_v61  ;;  %v10035_v61 = vld [vmem:[#allocation7 + $0x36c] ss:$24 sps:$4 sm:$0xff]  }
 0x1e7   :  { %3188 = vmatpush2.bf16.msra.mxu1 %v9952_v4  ;;  %3232 = vmatprep.subr.bf16.mxu0 %v9963_v9  ;;  %v10032_v4 = vld [vmem:[#allocation7 + $0x6c] ss:$24 sps:$4 sm:$0xff]  }
 0x1e8   :  { %3189 = vmatprep.subr.bf16.mxu1 %v9960_v14 }
 0x1ea   :  { %3233 = vmatpush1.bf16.msra.mxu0 %v9961_v17  ;;  %v10033_v17 = vld [vmem:[#allocation7 + $0x368] ss:$24 sps:$4 sm:$0xff]  }
 0x1eb   :  { %3190 = vmatpush2.bf16.msra.mxu1 %v9958_v6  ;;  %3234 = vmatprep.subr.bf16.mxu0 %v9969_v19  ;;  %v10030_v6 = vld [vmem:[#allocation7 + $0x68] ss:$24 sps:$4 sm:$0xff]   ;;  %v10038_v19 = vld [vmem:[#allocation7 + $0x3c] ss:$24 sps:$4 sm:$0xff]  }
 0x1ec   :  { %3191 = vmatprep.subr.bf16.mxu1 %v9966_v42  ;;  %v10041_v42 = vld [vmem:[#allocation7 + $0x33c] ss:$24 sps:$4 sm:$0xff]  }
 0x1ee   :  { %3235 = vmatpush1.bf16.msra.mxu0 %v9967_v24 }
 0x1ef   :  { %3192 = vmatpush2.bf16.msra.mxu1 %v9964_v20  ;;  %3236 = vmatprep.subr.bf16.mxu0 %v9975_v44  ;;  %v10036_v44 = vld [vmem:[#allocation7 + $0x38] ss:$24 sps:$4 sm:$0xff]  }
 0x1f0   :  { %3193 = vmatprep.subr.bf16.mxu1 %v9972_v28  ;;  %v10039_v28 = vld [vmem:[#allocation7 + $0x338] ss:$24 sps:$4 sm:$0xff]  }
 0x1f2   :  { %3237 = vmatpush1.bf16.msra.mxu0 %v9973_v40  ;;  %v10047_v40 = vld [vmem:[#allocation7 + $0x30c] ss:$24 sps:$4 sm:$0xff]  }
 0x1f3   :  { %3194 = vmatpush2.bf16.msra.mxu1 %v9970_v38  ;;  %3246 = vmatprep.subr.bf16.mxu0 %v9981_v63  ;;  %v10044_v38 = vld [vmem:[#allocation7 + $0xc] ss:$24 sps:$4 sm:$0xff]  }
 0x1f4   :  { %3195 = vmatprep.subr.bf16.mxu1 %v9978_v3 }
 0x1f6   :  { %3247 = vmatpush2.bf16.msra.mxu0 %v9979_v21  ;;  %v10045_v21 = vld [vmem:[#allocation7 + $0x308] ss:$24 sps:$4 sm:$0xff]  }
 0x1f7   :  { %3196 = vmatpush2.bf16.msra.mxu1 %v9976_v29  ;;  %3248 = vmatprep.subr.bf16.mxu0 %v9987_v30  ;;  %v10042_v29 = vld [vmem:[#allocation7 + $0x8] ss:$24 sps:$4 sm:$0xff]   ;;  %v10050_v30 = vld [vmem:[#allocation7 + $0x2dc] ss:$24 sps:$4 sm:$0xff]  }
 0x1f8   :  { %3197 = vmatprep.subr.bf16.mxu1 %v9984_v31 }
 0x1fa   :  { %3249 = vmatpush2.bf16.msra.mxu0 %v9985_v33  ;;  %v10053_v33 = vld [vmem:[#allocation7 + $0x51c] ss:$24 sps:$4 sm:$0xff]  }
 0x1fb   :  { %3198 = vmatpush2.bf16.msra.mxu1 %v9982_v11  ;;  %3250 = vmatprep.subr.bf16.mxu0 %v9993_v48  ;;  %v10048_v11 = vld [vmem:[#allocation7 + $0x2d8] ss:$24 sps:$4 sm:$0xff]  }
 0x1fc   :  { %3199 = vmatprep.subr.bf16.mxu1 %v9990_v35  ;;  %v10051_v48 = vld [vmem:[#allocation7 + $0x518] ss:$24 sps:$4 sm:$0xff]  }
 0x1fe   :  { %3251 = vmatpush2.bf16.msra.mxu0 %v9991_v36 }
 0x1ff   :  { %3200 = vmatpush2.bf16.msra.mxu1 %v9988_v27  ;;  %3252 = vmatprep.subr.bf16.mxu0 %v9999_v39  ;;  %v10056_v27 = vld [vmem:[#allocation7 + $0x2ac] ss:$24 sps:$4 sm:$0xff]   ;;  %v10054_v39 = vld [vmem:[#allocation7 + $0x2a8] ss:$24 sps:$4 sm:$0xff]  }
 0x200   :  { %3201 = vmatprep.subr.bf16.mxu1 %v9996_v37 }
 0x202   :  { %3253 = vmatpush2.bf16.msra.mxu0 %v9997_v41 }
 0x203   :  { %3202 = vmatpush2.bf16.msra.mxu1 %v9994_v47  ;;  %3273 = vmatprep.subr.bf16.mxu0 %v10002_v32  ;;  %v10059_v47 = vld [vmem:[#allocation7 + $0x4ec] ss:$24 sps:$4 sm:$0xff]   ;;  %v10057_v32 = vld [vmem:[#allocation7 + $0x4e8] ss:$24 sps:$4 sm:$0xff]  }
 0x204   :  { %3324 = vmatprep.subr.bf16.mxu1 %v10005_v13 }
 0x205   :  { %3255 = vmatmul.mubr.bf16.vlgmr.msra.gmra.mxu0 %v11107_v10 }
 0x206   :  { %3204 = vmatmul.mubr.bf16.vlgmr.msra.gmra.mxu1 %v11148_v52  ;;  %8712 = vmatprep.mubr.msk.bf16.mxu0 %vm2012_vm4, %v11114_v18 }
 0x207   :  { %3213 = vmatprep.mubr.bf16.mxu1 %v11155_v16  ;;  %3274 = vmatpush1.bf16.msra.mxu0 %v10000_v53  ;;  %v10062_v53 = vld [vmem:[#allocation7 + $0x27c] ss:$24 sps:$4 sm:$0xff]  }
 0x208   :  { %3325 = vmatpush1.bf16.msra.mxu1 %v10003_v54  ;;  %3275 = vmatprep.subr.bf16.mxu0 %v10008_v50 }
 0x209   :  { %3326 = vmatprep.subr.bf16.mxu1 %v10011_v55  ;;  %v10065_v55 = vld [vmem:[#allocation7 + $0x4bc] ss:$24 sps:$4 sm:$0xff]  }
 0x20b   :  { %3276 = vmatpush1.bf16.msra.mxu0 %v10006_v34  ;;  %v10060_v34 = vld [vmem:[#allocation7 + $0x278] ss:$24 sps:$4 sm:$0xff]  }
 0x20c   :  { %3327 = vmatpush1.bf16.msra.mxu1 %v10009_v56  ;;  %3277 = vmatprep.subr.bf16.mxu0 %v10014_v22  ;;  %v10063_v22 = vld [vmem:[#allocation7 + $0x4b8] ss:$24 sps:$4 sm:$0xff]  }
 0x20d   :  { %3265 = vmatmul.mubr.bf16.gmra.mxu0 %v11104_v7  ;;  %3328 = vmatprep.subr.bf16.mxu1 %v10017_v57 }
 0x20e   :  { %3214 = vmatmul.mubr.bf16.gmra.mxu1 %v11152_v8  ;;  %3305 = vmatprep.mubr.bf16.mxu0 %v11150_v49 }
 0x20f   :  { %3278 = vmatpush1.bf16.msra.mxu0 %v10012_v25  ;;  %8713 = vmatprep.mubr.msk.bf16.mxu1 %vm2012_vm4, %v11102_v45  ;;  %v10068_v25 = vld [vmem:[#allocation7 + $0x24c] ss:$24 sps:$4 sm:$0xff]  }
 0x210   :  { %3329 = vmatpush1.bf16.msra.mxu1 %v10015_v46  ;;  %3279 = vmatprep.subr.bf16.mxu0 %v10020_v43 }
 0x211   :  { %3330 = vmatprep.subr.bf16.mxu1 %v10023_v59  ;;  %v10071_v59 = vld [vmem:[#allocation7 + $0x48c] ss:$24 sps:$4 sm:$0xff]  }
 0x213   :  { %3280 = vmatpush1.bf16.msra.mxu0 %v10018_v58  ;;  %v10066_v58 = vld [vmem:[#allocation7 + $0x248] ss:$24 sps:$4 sm:$0xff]  }
 0x214   :  { %3331 = vmatpush1.bf16.msra.mxu1 %v10021_v60  ;;  %3281 = vmatprep.subr.bf16.mxu0 %v10026_v26  ;;  %v2104_v9 = vpop.f32.mrf.mxu1  ;;  %v10069_v26 = vld [vmem:[#allocation7 + $0x488] ss:$24 sps:$4 sm:$0xff]  }
 0x215   :  { %3332 = vmatprep.subr.bf16.mxu1 %v10029_v23  ;;  %v10074_v23 = vld [vmem:[#allocation7 + $0x21c] ss:$24 sps:$4 sm:$0xff]  }
 0x216   :  { %v2106_v14 = vpop.f32.mrf.mxu1 }
 0x217   :  { %3282 = vmatpush1.bf16.msra.mxu0 %v10024_v62 }
 0x218   :  { %3333 = vmatpush1.bf16.msra.mxu1 %v10027_v1  ;;  %3283 = vmatprep.subr.bf16.mxu0 %v10032_v4  ;;  %v2108_v20 = vpop.f32.mrf.mxu1  ;;  %v10077_v4 = vld [vmem:[#allocation7 + $0x164] ss:$24 sps:$4 sm:$0xff]  }
 0x219   :  { %3334 = vmatprep.subr.bf16.mxu1 %v10035_v61 }
 0x21a   :  { %v2110_v24 = vpop.f32.mrf.mxu1 }
 0x21b   :  { %3284 = vmatpush1.bf16.msra.mxu0 %v10030_v6  ;;  %v10080_v6 = vld [vmem:[#allocation7 + $0x1ec] ss:$24 sps:$4 sm:$0xff]  }
 0x21c   :  { %3335 = vmatpush1.bf16.msra.mxu1 %v10033_v17  ;;  %3285 = vmatprep.subr.bf16.mxu0 %v10038_v19  ;;  %v2114_v63 = vpop.f32.mrf.mxu1  ;;  %v10083_v17 = vld [vmem:[#allocation7 + $0x134] ss:$24 sps:$4 sm:$0xff]   ;;  %v10078_v19 = vld [vmem:[#allocation7 + $0x1e8] ss:$24 sps:$4 sm:$0xff]  }
 0x21d   :  { %3336 = vmatprep.subr.bf16.mxu1 %v10041_v42  ;;  %v10081_v42 = vld [vmem:[#allocation7 + $0x130] ss:$24 sps:$4 sm:$0xff]  }
 0x21e   :  { %v2116_v3 = vpop.f32.mrf.mxu1 }
 0x21f   :  { %3286 = vmatpush1.bf16.msra.mxu0 %v10036_v44  ;;  %v10084_v44 = vld [vmem:[#allocation7 + $0x1b8] ss:$24 sps:$4 sm:$0xff]  }
 0x220   :  { %3337 = vmatpush1.bf16.msra.mxu1 %v10039_v28  ;;  %3287 = vmatprep.subr.bf16.mxu0 %v10044_v38  ;;  %v2118_v31 = vpop.f32.mrf.mxu1  ;;  %v10087_v28 = vld [vmem:[#allocation7 + $0x100] ss:$24 sps:$4 sm:$0xff]   ;;  %v10092_v38 = vld [vmem:[#allocation7 + $0x18c] ss:$24 sps:$4 sm:$0xff]  }
 0x221   :  { %3338 = vmatprep.subr.bf16.mxu1 %v10047_v40  ;;  %v10095_v40 = vld [vmem:[#allocation7 + $0xd4] ss:$24 sps:$4 sm:$0xff]   ;;  %v10099_v31 = vld [vmem:[#allocation7 + $0x460] ss:$24 sps:$4 sm:$0xff]  }
 0x222   :  { %v2119_v35 = vpop.f32.mrf.mxu1 }
 0x223   :  { %3288 = vmatpush1.bf16.msra.mxu0 %v10042_v29  ;;  %v10101_v29 = vld [vmem:[#allocation7 + $0x464] ss:$24 sps:$4 sm:$0xff]   ;;  %v10102_v35 = vld [vmem:[#allocation7 + $0x70] ss:$24 sps:$4 sm:$0xff]  }
 0x224   :  { %3339 = vmatpush1.bf16.msra.mxu1 %v10045_v21  ;;  %3289 = vmatprep.subr.bf16.mxu0 %v10050_v30  ;;  %v2053_v36 = vpop.f32.mrf.mxu0  ;;  %v10098_v21 = vld [vmem:[#allocation7 + $0xa4] ss:$24 sps:$4 sm:$0xff]   ;;  %v10096_v30 = vld [vmem:[#allocation7 + $0xa0] ss:$24 sps:$4 sm:$0xff]  }
 0x225   :  { %3348 = vmatprep.subr.bf16.mxu1 %v10053_v33  ;;  %v11210_v37 = vadd.f32 %v2104_v9, %v2053_v36  ;;  %v10072_v9 = vld [vmem:[#allocation7 + $0x218] ss:$24 sps:$4 sm:$0xff]   ;;  %v10104_v33 = vld [vmem:[#allocation7 + $0x74] ss:$24 sps:$4 sm:$0xff]   ;;  %v10113_v36 = vld [vmem:[#allocation7 + $0x404] ss:$24 sps:$4 sm:$0xff]  }
 0x226   :  { %v2055_v41 = vpop.f32.mrf.mxu0 }
 0x227   :  { %3290 = vmatpush2.bf16.msra.mxu0 %v10048_v11  ;;  %v11212_v13 = vadd.f32 %v2106_v14, %v2055_v41  ;;  %v10075_v14 = vld [vmem:[#allocation7 + $0x160] ss:$24 sps:$4 sm:$0xff]   ;;  %v10107_v11 = vld [vmem:[#allocation7 + $0x434] ss:$24 sps:$4 sm:$0xff]  }
 0x228   :  { %3349 = vmatpush2.bf16.msra.mxu1 %v10051_v48  ;;  %3291 = vmatprep.subr.bf16.mxu0 %v10056_v27  ;;  %v2057_v54 = vpop.f32.mrf.mxu0  ;;  %v10105_v48 = vld [vmem:[#allocation7 + $0x430] ss:$24 sps:$4 sm:$0xff]   ;;  %v10110_v27 = vld [vmem:[#allocation7 + $0x44] ss:$24 sps:$4 sm:$0xff]   ;;  %v10116_v41 = vld [vmem:[#allocation7 + $0x14] ss:$24 sps:$4 sm:$0xff]  }
 0x229   :  { %3350 = vmatprep.subr.bf16.mxu1 %v10059_v47  ;;  %v11214_v50 = vadd.f32 %v2108_v20, %v2057_v54  ;;  %v10086_v20 = vld [vmem:[#allocation7 + $0x1bc] ss:$24 sps:$4 sm:$0xff]   ;;  %v10111_v47 = vld [vmem:[#allocation7 + $0x400] ss:$24 sps:$4 sm:$0xff]   ;;  %v10117_v54 = vld [vmem:[#allocation7 + $0x3d0] ss:$24 sps:$4 sm:$0xff]  }
 0x22a   :  { %v2059_v56 = vpop.f32.mrf.mxu0 }
 0x22b   :  { %3292 = vmatpush2.bf16.msra.mxu0 %v10054_v39  ;;  %v11216_v57 = vadd.f32 %v2110_v24, %v2059_v56  ;;  %v10089_v24 = vld [vmem:[#allocation7 + $0x104] ss:$24 sps:$4 sm:$0xff]   ;;  %v10108_v39 = vld [vmem:[#allocation7 + $0x40] ss:$24 sps:$4 sm:$0xff]  }
 0x22c   :  { %3351 = vmatpush2.bf16.msra.mxu1 %v10057_v32  ;;  %3293 = vmatprep.subr.bf16.mxu0 %v10062_v53  ;;  %v2063_v46 = vpop.f32.mrf.mxu0  ;;  %v10119_v32 = vld [vmem:[#allocation7 + $0x3d4] ss:$24 sps:$4 sm:$0xff]   ;;  %v10114_v53 = vld [vmem:[#allocation7 + $0x10] ss:$24 sps:$4 sm:$0xff]   ;;  %v10120_v56 = vld [vmem:[#allocation7 + $0x2e0] ss:$24 sps:$4 sm:$0xff]  }
 0x22d   :  { %3352 = vmatprep.subr.bf16.mxu1 %v10065_v55  ;;  %v11218_v43 = vadd.f32 %v2114_v63, %v2063_v46  ;;  %v10090_v63 = vld [vmem:[#allocation7 + $0x188] ss:$24 sps:$4 sm:$0xff]   ;;  %v10125_v55 = vld [vmem:[#allocation7 + $0x3a4] ss:$24 sps:$4 sm:$0xff]  }
 0x22e   :  { %v2065_v60 = vpop.f32.mrf.mxu0 }
 0x22f   :  { %3294 = vmatpush2.bf16.msra.mxu0 %v10060_v34  ;;  %v11220_v62 = vadd.f32 %v2116_v3, %v2065_v60  ;;  %v10093_v3 = vld [vmem:[#allocation7 + $0xd0] ss:$24 sps:$4 sm:$0xff]   ;;  %v10122_v34 = vld [vmem:[#allocation7 + $0x2e4] ss:$24 sps:$4 sm:$0xff]   ;;  %v10128_v60 = vld [vmem:[#allocation7 + $0x2b4] ss:$24 sps:$4 sm:$0xff]  }
 0x230   :  { %3353 = vmatpush2.bf16.msra.mxu1 %v10063_v22  ;;  %3295 = vmatprep.subr.bf16.mxu0 %v10068_v25  ;;  %v2067_v1 = vpop.f32.mrf.mxu0  ;;  %v10123_v22 = vld [vmem:[#allocation7 + $0x3a0] ss:$24 sps:$4 sm:$0xff]   ;;  %v10131_v25 = vld [vmem:[#allocation7 + $0x374] ss:$24 sps:$4 sm:$0xff]  }
 0x231   :  { %3354 = vmatprep.subr.bf16.mxu1 %v10071_v59  ;;  %v10126_v1 = vld [vmem:[#allocation7 + $0x2b0] ss:$24 sps:$4 sm:$0xff]  }
 0x232   :  { %v2068_v61 = vpop.f32.mrf.mxu0 }
 0x233   :  { %3296 = vmatpush2.bf16.msra.mxu0 %v10066_v58  ;;  %v10137_v61 = vld [vmem:[#allocation7 + $0x344] ss:$24 sps:$4 sm:$0xff]  }
 0x234   :  { %3355 = vmatpush2.bf16.msra.mxu1 %v10069_v26  ;;  %3297 = vmatprep.subr.bf16.mxu0 %v10074_v23 }
 0x235   :  { %3375 = vmatprep.subr.bf16.mxu1 %v10077_v4  ;;  %v10129_v4 = vld [vmem:[#allocation7 + $0x370] ss:$24 sps:$4 sm:$0xff]  }
 0x237   :  { %3357 = vmatmul.mubr.bf16.vlgmr.msra.gmra.mxu1 %v11107_v10  ;;  %3298 = vmatpush2.bf16.msra.mxu0 %v10072_v9 }
 0x238   :  { %8714 = vmatprep.mubr.msk.bf16.mxu1 %vm2012_vm4, %v11114_v18  ;;  %3376 = vmatpush1.bf16.msra.mxu1 %v10075_v14 }
 0x239   :  { %3299 = vmatprep.subr.bf16.mxu0 %v10080_v6  ;;  %3377 = vmatprep.subr.bf16.mxu1 %v10083_v17 }
 0x23b   :  { %3300 = vmatpush2.bf16.msra.mxu0 %v10078_v19  ;;  %v10134_v19 = vld [vmem:[#allocation7 + $0x284] ss:$24 sps:$4 sm:$0xff]  }
 0x23c   :  { %3378 = vmatpush1.bf16.msra.mxu1 %v10081_v42  ;;  %3301 = vmatprep.subr.bf16.mxu0 %v10086_v20 }
 0x23d   :  { %3379 = vmatprep.subr.bf16.mxu1 %v10089_v24  ;;  %v10132_v24 = vld [vmem:[#allocation7 + $0x280] ss:$24 sps:$4 sm:$0xff]  }
 0x23f   :  { %3367 = vmatmul.mubr.bf16.gmra.mxu1 %v11104_v7  ;;  %3302 = vmatpush2.bf16.msra.mxu0 %v10084_v44  ;;  %v10135_v44 = vld [vmem:[#allocation7 + $0x340] ss:$24 sps:$4 sm:$0xff]  }
 0x240   :  { %3380 = vmatpush1.bf16.msra.mxu1 %v10087_v28  ;;  %3407 = vmatprep.mubr.bf16.mxu1 %v11150_v49  ;;  %v10143_v28 = vld [vmem:[#allocation7 + $0x314] ss:$24 sps:$4 sm:$0xff]  }
 0x241   :  { %3303 = vmatprep.subr.bf16.mxu0 %v10092_v38  ;;  %3381 = vmatprep.subr.bf16.mxu1 %v10095_v40 }
 0x243   :  { %3304 = vmatpush2.bf16.msra.mxu0 %v10090_v63 }
 0x244   :  { %3382 = vmatpush1.bf16.msra.mxu1 %v10093_v3  ;;  %3426 = vmatprep.subr.bf16.mxu0 %v10101_v29  ;;  %v10140_v29 = vld [vmem:[#allocation7 + $0x254] ss:$24 sps:$4 sm:$0xff]  }
 0x245   :  { %3383 = vmatprep.subr.bf16.mxu1 %v10098_v21 }
 0x246   :  { %3306 = vmatmul.mubr.bf16.vlgmr.msra.gmra.mxu0 %v11148_v52 }
 0x247   :  { %3315 = vmatprep.mubr.bf16.mxu0 %v11155_v16  ;;  %3427 = vmatpush1.bf16.msra.mxu0 %v10099_v31  ;;  %v10138_v31 = vld [vmem:[#allocation7 + $0x250] ss:$24 sps:$4 sm:$0xff]  }
 0x248   :  { %3384 = vmatpush1.bf16.msra.mxu1 %v10096_v30  ;;  %3428 = vmatprep.subr.bf16.mxu0 %v10107_v11  ;;  %v10141_v11 = vld [vmem:[#allocation7 + $0x310] ss:$24 sps:$4 sm:$0xff]  }
 0x249   :  { %3385 = vmatprep.subr.bf16.mxu1 %v10104_v33  ;;  %v10149_v33 = vld [vmem:[#allocation7 + $0x524] ss:$24 sps:$4 sm:$0xff]  }
 0x24b   :  { %3429 = vmatpush1.bf16.msra.mxu0 %v10105_v48 }
 0x24c   :  { %3386 = vmatpush1.bf16.msra.mxu1 %v10102_v35  ;;  %3430 = vmatprep.subr.bf16.mxu0 %v10113_v36  ;;  %v10146_v36 = vld [vmem:[#allocation7 + $0x224] ss:$24 sps:$4 sm:$0xff]  }
 0x24d   :  { %3387 = vmatprep.subr.bf16.mxu1 %v10110_v27 }
 0x24e   :  { %3316 = vmatmul.mubr.bf16.gmra.mxu0 %v11152_v8 }
 0x24f   :  { %3431 = vmatpush1.bf16.msra.mxu0 %v10111_v47  ;;  %8715 = vmatprep.mubr.msk.bf16.mxu0 %vm2012_vm4, %v11102_v45 }
 0x250   :  { %3388 = vmatpush1.bf16.msra.mxu1 %v10108_v39  ;;  %3432 = vmatprep.subr.bf16.mxu0 %v10119_v32  ;;  %v10147_v32 = vld [vmem:[#allocation7 + $0x520] ss:$24 sps:$4 sm:$0xff]  }
 0x251   :  { %3389 = vmatprep.subr.bf16.mxu1 %v10116_v41  ;;  %v10144_v41 = vld [vmem:[#allocation7 + $0x220] ss:$24 sps:$4 sm:$0xff]  }
 0x253   :  { %3433 = vmatpush1.bf16.msra.mxu0 %v10117_v54  ;;  %v10152_v54 = vld [vmem:[#allocation7 + $0x1f4] ss:$24 sps:$4 sm:$0xff]  }
 0x254   :  { %3390 = vmatpush1.bf16.msra.mxu1 %v10114_v53  ;;  %v2155_v46 = vpop.f32.mrf.mxu1  ;;  %v2206_v58 = vpop.f32.mrf.mxu0  ;;  %3434 = vmatprep.subr.bf16.mxu0 %v10125_v55  ;;  %v10155_v53 = vld [vmem:[#allocation7 + $0x4f4] ss:$24 sps:$4 sm:$0xff]   ;;  %v10153_v55 = vld [vmem:[#allocation7 + $0x4f0] ss:$24 sps:$4 sm:$0xff]  }
 0x255   :  { %v11232_v59 = vadd.f32 %v2206_v58, %v2155_v46  ;;  %3391 = vmatprep.subr.bf16.mxu1 %v10122_v34  ;;  %v10150_v34 = vld [vmem:[#allocation7 + $0x1f0] ss:$24 sps:$4 sm:$0xff]   ;;  %v10159_v46 = vld [vmem:[#allocation7 + $0x4c0] ss:$24 sps:$4 sm:$0xff]   ;;  %v10164_v58 = vld [vmem:[#allocation7 + $0x194] ss:$24 sps:$4 sm:$0xff]  }
 0x256   :  { %v2157_v26 = vpop.f32.mrf.mxu1  ;;  %v2208_v23 = vpop.f32.mrf.mxu0 }
 0x257   :  { %3435 = vmatpush1.bf16.msra.mxu0 %v10123_v22  ;;  %v11234_v9 = vadd.f32 %v2208_v23, %v2157_v26  ;;  %v10161_v22 = vld [vmem:[#allocation7 + $0x4c4] ss:$24 sps:$4 sm:$0xff]   ;;  %v10165_v26 = vld [vmem:[#allocation7 + $0x490] ss:$24 sps:$4 sm:$0xff]  }
 0x258   :  { %3392 = vmatpush2.bf16.msra.mxu1 %v10120_v56  ;;  %v2159_v14 = vpop.f32.mrf.mxu1  ;;  %v2210_v6 = vpop.f32.mrf.mxu0  ;;  %3436 = vmatprep.subr.bf16.mxu0 %v10131_v25  ;;  %v10158_v56 = vld [vmem:[#allocation7 + $0x1c4] ss:$24 sps:$4 sm:$0xff]   ;;  %v10156_v25 = vld [vmem:[#allocation7 + $0x1c0] ss:$24 sps:$4 sm:$0xff]   ;;  %v10162_v23 = vld [vmem:[#allocation7 + $0x190] ss:$24 sps:$4 sm:$0xff]  }
 0x259   :  { %v11236_v17 = vadd.f32 %v2210_v6, %v2159_v14  ;;  %3393 = vmatprep.subr.bf16.mxu1 %v10128_v60  ;;  %v10167_v60 = vld [vmem:[#allocation7 + $0x494] ss:$24 sps:$4 sm:$0xff]   ;;  %v10171_v14 = vld [vmem:[#allocation7 + $0xed0] ss:$24 sps:$4 sm:$0xff]   ;;  %v10176_v6 = vld [vmem:[#allocation7 + $0xba4] ss:$24 sps:$4 sm:$0xff]  }
 0x25a   :  { %v2161_v42 = vpop.f32.mrf.mxu1  ;;  %v2212_v20 = vpop.f32.mrf.mxu0 }
 0x25b   :  { %3437 = vmatpush1.bf16.msra.mxu0 %v10129_v4  ;;  %v11238_v38 = vadd.f32 %v2212_v20, %v2161_v42  ;;  %v10173_v4 = vld [vmem:[#allocation7 + $0xed4] ss:$24 sps:$4 sm:$0xff]   ;;  %v10174_v42 = vld [vmem:[#allocation7 + $0xba0] ss:$24 sps:$4 sm:$0xff]  }
 0x25c   :  { %3394 = vmatpush2.bf16.msra.mxu1 %v10126_v1  ;;  %v2165_v40 = vpop.f32.mrf.mxu1  ;;  %v2216_v63 = vpop.f32.mrf.mxu0  ;;  %3438 = vmatprep.subr.bf16.mxu0 %v10137_v61  ;;  %v10170_v1 = vld [vmem:[#allocation7 + $0xbd4] ss:$24 sps:$4 sm:$0xff]   ;;  %v10168_v61 = vld [vmem:[#allocation7 + $0xbd0] ss:$24 sps:$4 sm:$0xff]   ;;  %v10177_v20 = vld [vmem:[#allocation7 + $0xea0] ss:$24 sps:$4 sm:$0xff]  }
 0x25d   :  { %v11240_v3 = vadd.f32 %v2216_v63, %v2165_v40  ;;  %3395 = vmatprep.subr.bf16.mxu1 %v10134_v19  ;;  %v10179_v19 = vld [vmem:[#allocation7 + $0xea4] ss:$24 sps:$4 sm:$0xff]   ;;  %v11253_v40 = vrot.slane %v11114_v18, 2  ;;  %v10180_v63 = vld [vmem:[#allocation7 + $0xb70] ss:$24 sps:$4 sm:$0xff]  }
 0x25e   :  { %v2167_v21 = vpop.f32.mrf.mxu1  ;;  %v2218_v30 = vpop.f32.mrf.mxu0 }
 0x25f   :  { %3439 = vmatpush1.bf16.msra.mxu0 %v10135_v44  ;;  %v11242_v35 = vadd.f32 %v2218_v30, %v2167_v21  ;;  %v10185_v44 = vld [vmem:[#allocation7 + $0xe74] ss:$24 sps:$4 sm:$0xff]   ;;  %v10183_v21 = vld [vmem:[#allocation7 + $0xe70] ss:$24 sps:$4 sm:$0xff]   ;;  %v3656_v30 = vrot.slane %v11102_v45, 2 }
 0x260   :  { %3396 = vmatpush2.bf16.msra.mxu1 %v10132_v24  ;;  %v2169_v48 = vpop.f32.mrf.mxu1  ;;  %v2220_v27 = vpop.f32.mrf.mxu0  ;;  %3440 = vmatprep.subr.bf16.mxu0 %v10143_v28  ;;  %v10182_v24 = vld [vmem:[#allocation7 + $0xb74] ss:$24 sps:$4 sm:$0xff]   ;;  %v11250_v28 = vrot.slane %v11155_v16, 2  ;;  %v10186_v45 = vld [vmem:[#allocation7 + $0xb40] ss:$24 sps:$4 sm:$0xff]  }
 0x261   :  { %3397 = vmatprep.subr.bf16.mxu1 %v10140_v29  ;;  %v3650_v29 = vrot.slane %v11150_v49, 2  ;;  %v10189_v49 = vld [vmem:[#allocation7 + $0xe40] ss:$24 sps:$4 sm:$0xff]   ;;  %v10197_v48 = vld [vmem:[#allocation7 + $0xe14] ss:$24 sps:$4 sm:$0xff]  }
 0x262   :  { %v2170_v39 = vpop.f32.mrf.mxu1  ;;  %v2221_v47 = vpop.f32.mrf.mxu0  ;;  %v10192_v27 = vld [vmem:[#allocation7 + $0xb10] ss:$24 sps:$4 sm:$0xff]  }
 0x263   :  { %3441 = vmatpush1.bf16.msra.mxu0 %v10141_v11  ;;  %v10191_v11 = vld [vmem:[#allocation7 + $0xe44] ss:$24 sps:$4 sm:$0xff]   ;;  %v10195_v39 = vld [vmem:[#allocation7 + $0xe10] ss:$24 sps:$4 sm:$0xff]  }
 0x264   :  { %3398 = vmatpush2.bf16.msra.mxu1 %v10138_v31  ;;  %3450 = vmatprep.subr.bf16.mxu0 %v10149_v33  ;;  %v10188_v31 = vld [vmem:[#allocation7 + $0xb44] ss:$24 sps:$4 sm:$0xff]   ;;  %v10194_v33 = vld [vmem:[#allocation7 + $0xb14] ss:$24 sps:$4 sm:$0xff]  }
 0x265   :  { %3399 = vmatprep.subr.bf16.mxu1 %v10146_v36  ;;  %v10200_v47 = vld [vmem:[#allocation7 + $0xae4] ss:$24 sps:$4 sm:$0xff]  }
 0x267   :  { %3451 = vmatpush2.bf16.msra.mxu0 %v10147_v32 }
 0x268   :  { %3400 = vmatpush2.bf16.msra.mxu1 %v10144_v41  ;;  %3452 = vmatprep.subr.bf16.mxu0 %v10155_v53  ;;  %v10203_v41 = vld [vmem:[#allocation7 + $0xde4] ss:$24 sps:$4 sm:$0xff]   ;;  %v10198_v53 = vld [vmem:[#allocation7 + $0xae0] ss:$24 sps:$4 sm:$0xff]  }
 0x269   :  { %3401 = vmatprep.subr.bf16.mxu1 %v10152_v54 }
 0x26b   :  { %3453 = vmatpush2.bf16.msra.mxu0 %v10153_v55  ;;  %v10206_v55 = vld [vmem:[#allocation7 + $0xab4] ss:$24 sps:$4 sm:$0xff]  }
 0x26c   :  { %3402 = vmatpush2.bf16.msra.mxu1 %v10150_v34  ;;  %3454 = vmatprep.subr.bf16.mxu0 %v10161_v22  ;;  %v10201_v34 = vld [vmem:[#allocation7 + $0xde0] ss:$24 sps:$4 sm:$0xff]  }
 0x26d   :  { %3403 = vmatprep.subr.bf16.mxu1 %v10158_v56  ;;  %v10209_v56 = vld [vmem:[#allocation7 + $0xdb4] ss:$24 sps:$4 sm:$0xff]  }
 0x26f   :  { %3455 = vmatpush2.bf16.msra.mxu0 %v10159_v46 }
 0x270   :  { %3404 = vmatpush2.bf16.msra.mxu1 %v10156_v25  ;;  %3456 = vmatprep.subr.bf16.mxu0 %v10167_v60  ;;  %v10204_v25 = vld [vmem:[#allocation7 + $0xab0] ss:$24 sps:$4 sm:$0xff]   ;;  %v10212_v60 = vld [vmem:[#allocation7 + $0xa84] ss:$24 sps:$4 sm:$0xff]  }
 0x271   :  { %3405 = vmatprep.subr.bf16.mxu1 %v10164_v58  ;;  %v10207_v58 = vld [vmem:[#allocation7 + $0xdb0] ss:$24 sps:$4 sm:$0xff]  }
 0x273   :  { %3457 = vmatpush2.bf16.msra.mxu0 %v10165_v26  ;;  %v10215_v26 = vld [vmem:[#allocation7 + $0xd84] ss:$24 sps:$4 sm:$0xff]  }
 0x274   :  { %3406 = vmatpush2.bf16.msra.mxu1 %v10162_v23  ;;  %4511 = vmatprep.subr.bf16.mxu0 %v10170_v1  ;;  %v10210_v1 = vld [vmem:[#allocation7 + $0xa80] ss:$24 sps:$4 sm:$0xff]  }
 0x275   :  { %4562 = vmatprep.subr.bf16.mxu1 %v10173_v4 }
 0x276   :  { %3459 = vmatmul.mubr.bf16.vlgmr.msra.gmra.mxu0 %v11107_v10 }
 0x277   :  { %3408 = vmatmul.mubr.bf16.vlgmr.msra.gmra.mxu1 %v11148_v52  ;;  %8716 = vmatprep.mubr.msk.bf16.mxu0 %vm2012_vm4, %v11114_v18  ;;  %v11266_v18 = vsel %vm146_vm0, %v3656_v30, %v11253_v40 }
 0x278   :  { %3417 = vmatprep.mubr.bf16.mxu1 %v11155_v16  ;;  %4512 = vmatpush1.bf16.msra.mxu0 %v10168_v61  ;;  %v11260_v16 = vsel %vm146_vm0, %v3650_v29, %v11250_v28  ;;  %v10213_v61 = vld [vmem:[#allocation7 + $0xd80] ss:$24 sps:$4 sm:$0xff]   ;;  %v10227_v29 = vld [vmem:[#allocation7 + $0xf64] ss:$24 sps:$4 sm:$0xff]  }
 0x279   :  { %4563 = vmatpush1.bf16.msra.mxu1 %v10171_v14  ;;  %4513 = vmatprep.subr.bf16.mxu0 %v10176_v6  ;;  %v10218_v14 = vld [vmem:[#allocation7 + $0xd54] ss:$24 sps:$4 sm:$0xff]  }
 0x27a   :  { %4564 = vmatprep.subr.bf16.mxu1 %v10179_v19  ;;  %v10221_v6 = vld [vmem:[#allocation7 + $0xf94] ss:$24 sps:$4 sm:$0xff]  }
 0x27c   :  { %4514 = vmatpush1.bf16.msra.mxu0 %v10174_v42  ;;  %v10216_v42 = vld [vmem:[#allocation7 + $0xd50] ss:$24 sps:$4 sm:$0xff]  }
 0x27d   :  { %4565 = vmatpush1.bf16.msra.mxu1 %v10177_v20  ;;  %4515 = vmatprep.subr.bf16.mxu0 %v10182_v24  ;;  %v10219_v24 = vld [vmem:[#allocation7 + $0xf90] ss:$24 sps:$4 sm:$0xff]  }
 0x27e   :  { %3469 = vmatmul.mubr.bf16.gmra.mxu0 %v11104_v7  ;;  %4566 = vmatprep.subr.bf16.mxu1 %v10185_v44  ;;  %v10224_v44 = vld [vmem:[#allocation7 + $0xd24] ss:$24 sps:$4 sm:$0xff]  }
 0x27f   :  { %3418 = vmatmul.mubr.bf16.gmra.mxu1 %v11152_v8  ;;  %4543 = vmatprep.mubr.bf16.mxu0 %v11260_v16 }
 0x280   :  { %4516 = vmatpush1.bf16.msra.mxu0 %v10180_v63  ;;  %8885 = vmatprep.mubr.msk.bf16.mxu1 %vm2012_vm4, %v11266_v18 }
 0x281   :  { %4567 = vmatpush1.bf16.msra.mxu1 %v10183_v21  ;;  %4517 = vmatprep.subr.bf16.mxu0 %v10188_v31  ;;  %v10222_v31 = vld [vmem:[#allocation7 + $0xd20] ss:$24 sps:$4 sm:$0xff]  }
 0x282   :  { %4568 = vmatprep.subr.bf16.mxu1 %v10191_v11 }
 0x284   :  { %4518 = vmatpush1.bf16.msra.mxu0 %v10186_v45  ;;  %v10225_v45 = vld [vmem:[#allocation7 + $0xf60] ss:$24 sps:$4 sm:$0xff]  }
 0x285   :  { %4569 = vmatpush1.bf16.msra.mxu1 %v10189_v49  ;;  %v2308_v36 = vpop.f32.mrf.mxu1  ;;  %4519 = vmatprep.subr.bf16.mxu0 %v10194_v33  ;;  %v10230_v49 = vld [vmem:[#allocation7 + $0xcf4] ss:$24 sps:$4 sm:$0xff]  }
 0x286   :  { %4570 = vmatprep.subr.bf16.mxu1 %v10197_v48  ;;  %v10233_v48 = vld [vmem:[#allocation7 + $0xf34] ss:$24 sps:$4 sm:$0xff]  }
 0x287   :  { %v2310_v32 = vpop.f32.mrf.mxu1 }
 0x288   :  { %4520 = vmatpush1.bf16.msra.mxu0 %v10192_v27 }
 0x289   :  { %4571 = vmatpush1.bf16.msra.mxu1 %v10195_v39  ;;  %v2312_v54 = vpop.f32.mrf.mxu1  ;;  %4521 = vmatprep.subr.bf16.mxu0 %v10200_v47  ;;  %v10228_v39 = vld [vmem:[#allocation7 + $0xcf0] ss:$24 sps:$4 sm:$0xff]  }
 0x28a   :  { %4572 = vmatprep.subr.bf16.mxu1 %v10203_v41  ;;  %v10231_v41 = vld [vmem:[#allocation7 + $0xf30] ss:$24 sps:$4 sm:$0xff]  }
 0x28b   :  { %v2314_v22 = vpop.f32.mrf.mxu1 }
 0x28c   :  { %4522 = vmatpush1.bf16.msra.mxu0 %v10198_v53 }
 0x28d   :  { %4573 = vmatpush1.bf16.msra.mxu1 %v10201_v34  ;;  %v2318_v46 = vpop.f32.mrf.mxu1  ;;  %4523 = vmatprep.subr.bf16.mxu0 %v10206_v55  ;;  %v10239_v34 = vld [vmem:[#allocation7 + $0xf04] ss:$24 sps:$4 sm:$0xff]  }
 0x28e   :  { %4574 = vmatprep.subr.bf16.mxu1 %v10209_v56  ;;  %v10234_v56 = vld [vmem:[#allocation7 + $0xcc0] ss:$24 sps:$4 sm:$0xff]  }
 0x28f   :  { %v2320_v23 = vpop.f32.mrf.mxu1 }
 0x290   :  { %4524 = vmatpush1.bf16.msra.mxu0 %v10204_v25 }
 0x291   :  { %4575 = vmatpush1.bf16.msra.mxu1 %v10207_v58  ;;  %v2322_v4 = vpop.f32.mrf.mxu1  ;;  %4525 = vmatprep.subr.bf16.mxu0 %v10212_v60  ;;  %v10242_v58 = vld [vmem:[#allocation7 + $0xc94] ss:$24 sps:$4 sm:$0xff]  }
 0x292   :  { %4576 = vmatprep.subr.bf16.mxu1 %v10215_v26  ;;  %v10245_v60 = vld [vmem:[#allocation7 + $0xbdc] ss:$24 sps:$4 sm:$0xff]   ;;  %v3653_v4 = vrot.slane %v11107_v10, 2 }
 0x293   :  { %v2323_v19 = vpop.f32.mrf.mxu1  ;;  %v10257_v10 = vld [vmem:[#allocation7 + $0xb7c] ss:$24 sps:$4 sm:$0xff]  }
 0x294   :  { %4526 = vmatpush1.bf16.msra.mxu0 %v10210_v1  ;;  %v11283_v1 = vrot.slane %v11104_v7, 2  ;;  %v10246_v19 = vld [vmem:[#allocation7 + $0xc60] ss:$24 sps:$4 sm:$0xff]  }
 0x295   :  { %4577 = vmatpush1.bf16.msra.mxu1 %v10213_v61  ;;  %v2257_v20 = vpop.f32.mrf.mxu0  ;;  %4527 = vmatprep.subr.bf16.mxu0 %v10218_v14  ;;  %v10248_v61 = vld [vmem:[#allocation7 + $0xc64] ss:$24 sps:$4 sm:$0xff]   ;;  %v10249_v7 = vld [vmem:[#allocation7 + $0xba8] ss:$24 sps:$4 sm:$0xff]  }
 0x296   :  { %v11270_v63 = vadd.f32 %v2308_v36, %v2257_v20  ;;  %4586 = vmatprep.subr.bf16.mxu1 %v10221_v6  ;;  %v10251_v14 = vld [vmem:[#allocation7 + $0xbac] ss:$24 sps:$4 sm:$0xff]   ;;  %v11288_v6 = vsel %vm146_vm0, %v3653_v4, %v11283_v1  ;;  %v10252_v20 = vld [vmem:[#allocation7 + $0xc30] ss:$24 sps:$4 sm:$0xff]   ;;  %v10290_v4 = vld [vmem:[#allocation7 + $0xd5c] ss:$24 sps:$4 sm:$0xff]  }
 0x297   :  { %v2259_v21 = vpop.f32.mrf.mxu0 }
 0x298   :  { %4528 = vmatpush2.bf16.msra.mxu0 %v10216_v42  ;;  %v11272_v30 = vadd.f32 %v2310_v32, %v2259_v21  ;;  %v10236_v32 = vld [vmem:[#allocation7 + $0xcc4] ss:$24 sps:$4 sm:$0xff]   ;;  %v10254_v42 = vld [vmem:[#allocation7 + $0xc34] ss:$24 sps:$4 sm:$0xff]   ;;  %v10258_v21 = vld [vmem:[#allocation7 + $0xc00] ss:$24 sps:$4 sm:$0xff]  }
 0x299   :  { %4587 = vmatpush2.bf16.msra.mxu1 %v10219_v24  ;;  %v2261_v11 = vpop.f32.mrf.mxu0  ;;  %4529 = vmatprep.subr.bf16.mxu0 %v10224_v44  ;;  %v10255_v24 = vld [vmem:[#allocation7 + $0xb78] ss:$24 sps:$4 sm:$0xff]   ;;  %v10260_v44 = vld [vmem:[#allocation7 + $0xc04] ss:$24 sps:$4 sm:$0xff]  }
 0x29a   :  { %v11274_v33 = vadd.f32 %v2312_v54, %v2261_v11  ;;  %4588 = vmatprep.subr.bf16.mxu1 %v10227_v29  ;;  %v10263_v29 = vld [vmem:[#allocation7 + $0xb4c] ss:$24 sps:$4 sm:$0xff]   ;;  %v10269_v11 = vld [vmem:[#allocation7 + $0xedc] ss:$24 sps:$4 sm:$0xff]  }
 0x29b   :  { %v2263_v27 = vpop.f32.mrf.mxu0 }
 0x29c   :  { %4530 = vmatpush2.bf16.msra.mxu0 %v10222_v31  ;;  %v11276_v36 = vadd.f32 %v2314_v22, %v2263_v27  ;;  %v10237_v22 = vld [vmem:[#allocation7 + $0xf00] ss:$24 sps:$4 sm:$0xff]  }
 0x29d   :  { %4589 = vmatpush2.bf16.msra.mxu1 %v10225_v45  ;;  %v2267_v47 = vpop.f32.mrf.mxu0  ;;  %4531 = vmatprep.subr.bf16.mxu0 %v10230_v49  ;;  %v10261_v31 = vld [vmem:[#allocation7 + $0xb48] ss:$24 sps:$4 sm:$0xff]   ;;  %v11296_v45 = vrot.slane %v11152_v8, 2  ;;  %v10266_v49 = vld [vmem:[#allocation7 + $0xb1c] ss:$24 sps:$4 sm:$0xff]  }
 0x29e   :  { %v11278_v53 = vadd.f32 %v2318_v46, %v2267_v47  ;;  %4590 = vmatprep.subr.bf16.mxu1 %v10233_v48  ;;  %v10240_v46 = vld [vmem:[#allocation7 + $0xc90] ss:$24 sps:$4 sm:$0xff]   ;;  %v3647_v48 = vrot.slane %v11148_v52, 2  ;;  %v10275_v47 = vld [vmem:[#allocation7 + $0xeac] ss:$24 sps:$4 sm:$0xff]  }
 0x29f   :  { %v2269_v55 = vpop.f32.mrf.mxu0  ;;  %v10267_v27 = vld [vmem:[#allocation7 + $0xed8] ss:$24 sps:$4 sm:$0xff]   ;;  %v10273_v8 = vld [vmem:[#allocation7 + $0xea8] ss:$24 sps:$4 sm:$0xff]   ;;  %v10281_v52 = vld [vmem:[#allocation7 + $0xe7c] ss:$24 sps:$4 sm:$0xff]  }
 0x2a0   :  { %4532 = vmatpush2.bf16.msra.mxu0 %v10228_v39  ;;  %v11280_v54 = vadd.f32 %v2320_v23, %v2269_v55  ;;  %v10243_v23 = vld [vmem:[#allocation7 + $0xbd8] ss:$24 sps:$4 sm:$0xff]   ;;  %v10278_v55 = vld [vmem:[#allocation7 + $0xabc] ss:$24 sps:$4 sm:$0xff]  }
 0x2a1   :  { %4591 = vmatpush2.bf16.msra.mxu1 %v10231_v41  ;;  %v2271_v25 = vpop.f32.mrf.mxu0  ;;  %4533 = vmatprep.subr.bf16.mxu0 %v10236_v32  ;;  %v10264_v39 = vld [vmem:[#allocation7 + $0xb18] ss:$24 sps:$4 sm:$0xff]   ;;  %v11301_v41 = vsel %vm146_vm0, %v3647_v48, %v11296_v45  ;;  %v10272_v32 = vld [vmem:[#allocation7 + $0xaec] ss:$24 sps:$4 sm:$0xff]  }
 0x2a2   :  { %4592 = vmatprep.subr.bf16.mxu1 %v10239_v34  ;;  %v10270_v34 = vld [vmem:[#allocation7 + $0xae8] ss:$24 sps:$4 sm:$0xff]   ;;  %v10276_v25 = vld [vmem:[#allocation7 + $0xab8] ss:$24 sps:$4 sm:$0xff]  }
 0x2a3   :  { %v2272_v26 = vpop.f32.mrf.mxu0 }
 0x2a4   :  { %4534 = vmatpush2.bf16.msra.mxu0 %v10234_v56  ;;  %v10279_v56 = vld [vmem:[#allocation7 + $0xe78] ss:$24 sps:$4 sm:$0xff]   ;;  %v10282_v26 = vld [vmem:[#allocation7 + $0xa88] ss:$24 sps:$4 sm:$0xff]  }
 0x2a5   :  { %4593 = vmatpush2.bf16.msra.mxu1 %v10237_v22  ;;  %4535 = vmatprep.subr.bf16.mxu0 %v10242_v58  ;;  %v10287_v22 = vld [vmem:[#allocation7 + $0xe4c] ss:$24 sps:$4 sm:$0xff]  }
 0x2a6   :  { %4613 = vmatprep.subr.bf16.mxu1 %v10245_v60  ;;  %v10284_v58 = vld [vmem:[#allocation7 + $0xa8c] ss:$24 sps:$4 sm:$0xff]   ;;  %v10285_v60 = vld [vmem:[#allocation7 + $0xe48] ss:$24 sps:$4 sm:$0xff]  }
 0x2a8   :  { %4595 = vmatmul.mubr.bf16.vlgmr.msra.gmra.mxu1 %v11288_v6  ;;  %4536 = vmatpush2.bf16.msra.mxu0 %v10240_v46  ;;  %v10293_v46 = vld [vmem:[#allocation7 + $0xe1c] ss:$24 sps:$4 sm:$0xff]  }
 0x2a9   :  { %8886 = vmatprep.mubr.msk.bf16.mxu1 %vm2012_vm4, %v11253_v40  ;;  %4614 = vmatpush1.bf16.msra.mxu1 %v10243_v23  ;;  %v10291_v23 = vld [vmem:[#allocation7 + $0xe18] ss:$24 sps:$4 sm:$0xff]  }
 0x2aa   :  { %4537 = vmatprep.subr.bf16.mxu0 %v10248_v61  ;;  %4615 = vmatprep.subr.bf16.mxu1 %v10251_v14  ;;  %v10288_v14 = vld [vmem:[#allocation7 + $0xd58] ss:$24 sps:$4 sm:$0xff]  }
 0x2ac   :  { %4538 = vmatpush2.bf16.msra.mxu0 %v10246_v19  ;;  %v10299_v19 = vld [vmem:[#allocation7 + $0xdec] ss:$24 sps:$4 sm:$0xff]  }
 0x2ad   :  { %4616 = vmatpush1.bf16.msra.mxu1 %v10249_v7  ;;  %4539 = vmatprep.subr.bf16.mxu0 %v10254_v42  ;;  %v10296_v42 = vld [vmem:[#allocation7 + $0xd2c] ss:$24 sps:$4 sm:$0xff]  }
 0x2ae   :  { %4617 = vmatprep.subr.bf16.mxu1 %v10257_v10 }
 0x2b0   :  { %4605 = vmatmul.mubr.bf16.gmra.mxu1 %v11283_v1  ;;  %4540 = vmatpush2.bf16.msra.mxu0 %v10252_v20 }
 0x2b1   :  { %4618 = vmatpush1.bf16.msra.mxu1 %v10255_v24  ;;  %4645 = vmatprep.mubr.bf16.mxu1 %v11260_v16 }
 0x2b2   :  { %4541 = vmatprep.subr.bf16.mxu0 %v10260_v44  ;;  %4619 = vmatprep.subr.bf16.mxu1 %v10263_v29  ;;  %v10297_v44 = vld [vmem:[#allocation7 + $0xde8] ss:$24 sps:$4 sm:$0xff]  }
 0x2b4   :  { %4542 = vmatpush2.bf16.msra.mxu0 %v10258_v21 }
 0x2b5   :  { %4620 = vmatpush1.bf16.msra.mxu1 %v10261_v31  ;;  %4664 = vmatprep.subr.bf16.mxu0 %v10269_v11  ;;  %v10294_v11 = vld [vmem:[#allocation7 + $0xd28] ss:$24 sps:$4 sm:$0xff]  }
 0x2b6   :  { %4621 = vmatprep.subr.bf16.mxu1 %v10266_v49  ;;  %v10305_v49 = vld [vmem:[#allocation7 + $0xdbc] ss:$24 sps:$4 sm:$0xff]  }
 0x2b7   :  { %4544 = vmatmul.mubr.bf16.vlgmr.msra.gmra.mxu0 %v11301_v41 }
 0x2b8   :  { %4553 = vmatprep.mubr.bf16.mxu0 %v11250_v28  ;;  %4665 = vmatpush1.bf16.msra.mxu0 %v10267_v27  ;;  %v10302_v27 = vld [vmem:[#allocation7 + $0xcfc] ss:$24 sps:$4 sm:$0xff]  }
 0x2b9   :  { %4622 = vmatpush1.bf16.msra.mxu1 %v10264_v39  ;;  %4666 = vmatprep.subr.bf16.mxu0 %v10275_v47 }
 0x2ba   :  { %4623 = vmatprep.subr.bf16.mxu1 %v10272_v32 }
 0x2bc   :  { %4667 = vmatpush1.bf16.msra.mxu0 %v10273_v8  ;;  %v10303_v8 = vld [vmem:[#allocation7 + $0xdb8] ss:$24 sps:$4 sm:$0xff]  }
 0x2bd   :  { %4624 = vmatpush1.bf16.msra.mxu1 %v10270_v34  ;;  %4668 = vmatprep.subr.bf16.mxu0 %v10281_v52 }
 0x2be   :  { %4625 = vmatprep.subr.bf16.mxu1 %v10278_v55  ;;  %v10300_v55 = vld [vmem:[#allocation7 + $0xcf8] ss:$24 sps:$4 sm:$0xff]  }
 0x2bf   :  { %4554 = vmatmul.mubr.bf16.gmra.mxu0 %v11296_v45 }
 0x2c0   :  { %4669 = vmatpush1.bf16.msra.mxu0 %v10279_v56  ;;  %8887 = vmatprep.mubr.msk.bf16.mxu0 %vm2012_vm4, %v11266_v18  ;;  %v10311_v56 = vld [vmem:[#allocation7 + $0xd8c] ss:$24 sps:$4 sm:$0xff]  }
 0x2c1   :  { %4626 = vmatpush1.bf16.msra.mxu1 %v10276_v25  ;;  %4670 = vmatprep.subr.bf16.mxu0 %v10287_v22  ;;  %v10308_v22 = vld [vmem:[#allocation7 + $0xccc] ss:$24 sps:$4 sm:$0xff]  }
 0x2c2   :  { %4627 = vmatprep.subr.bf16.mxu1 %v10284_v58 }
 0x2c4   :  { %4671 = vmatpush1.bf16.msra.mxu0 %v10285_v60 }
 0x2c5   :  { %4628 = vmatpush1.bf16.msra.mxu1 %v10282_v26  ;;  %v3256_v61 = vpop.f32.mrf.mxu0  ;;  %4672 = vmatprep.subr.bf16.mxu0 %v10293_v46  ;;  %v10309_v46 = vld [vmem:[#allocation7 + $0xd88] ss:$24 sps:$4 sm:$0xff]  }
 0x2c6   :  { %v3205_v7 = vpop.f32.mrf.mxu1  ;;  %4629 = vmatprep.subr.bf16.mxu1 %v10290_v4 }
 0x2c7   :  { %v3206_v10 = vadd.f32 %v3205_v7, %v11210_v37  ;;  %v3258_v20 = vpop.f32.mrf.mxu0  ;;  %v10314_v7 = vld [vmem:[#allocation7 + $0xc9c] ss:$24 sps:$4 sm:$0xff]  }
 0x2c8   :  { %4673 = vmatpush1.bf16.msra.mxu0 %v10291_v23  ;;  %v3207_v24 = vpop.f32.mrf.mxu1 }
 0x2c9   :  { %v11309_v29 = vadd.f32 %v3256_v61, %v3206_v10  ;;  %4630 = vmatpush2.bf16.msra.mxu1 %v10288_v14  ;;  %v3208_v21 = vadd.f32 %v3207_v24, %v11212_v13  ;;  %v3260_v31 = vpop.f32.mrf.mxu0  ;;  %4674 = vmatprep.subr.bf16.mxu0 %v10299_v19  ;;  %v10306_v61 = vld [vmem:[#allocation7 + $0xcc8] ss:$24 sps:$4 sm:$0xff]   ;;  %v10317_v14 = vld [vmem:[#allocation7 + $0xf9c] ss:$24 sps:$4 sm:$0xff]   ;;  %v10312_v24 = vld [vmem:[#allocation7 + $0xc98] ss:$24 sps:$4 sm:$0xff]  }
 0x2ca   :  { %v3209_v48 = vpop.f32.mrf.mxu1  ;;  %4631 = vmatprep.subr.bf16.mxu1 %v10296_v42 }
 0x2cb   :  { %v11312_v39 = vadd.f32 %v3258_v20, %v3208_v21  ;;  %v3210_v37 = vadd.f32 %v3209_v48, %v11214_v50  ;;  %v3262_v47 = vpop.f32.mrf.mxu0  ;;  %v10315_v20 = vld [vmem:[#allocation7 + $0xf98] ss:$24 sps:$4 sm:$0xff]   ;;  %v10320_v21 = vld [vmem:[#allocation7 + $0xc6c] ss:$24 sps:$4 sm:$0xff]  }
 0x2cc   :  { %4675 = vmatpush1.bf16.msra.mxu0 %v10297_v44  ;;  %v3211_v32 = vpop.f32.mrf.mxu1  ;;  %v10323_v44 = vld [vmem:[#allocation7 + $0xf6c] ss:$24 sps:$4 sm:$0xff]   ;;  %v10327_v48 = vld [vmem:[#allocation7 + $0xf38] ss:$24 sps:$4 sm:$0xff]  }
 0x2cd   :  { %v11315_v34 = vadd.f32 %v3260_v31, %v3210_v37  ;;  %4632 = vmatpush2.bf16.msra.mxu1 %v10294_v11  ;;  %v3212_v13 = vadd.f32 %v3211_v32, %v11216_v57  ;;  %v3266_v52 = vpop.f32.mrf.mxu0  ;;  %4676 = vmatprep.subr.bf16.mxu0 %v10305_v49  ;;  %v10318_v31 = vld [vmem:[#allocation7 + $0xc68] ss:$24 sps:$4 sm:$0xff]   ;;  %v10329_v11 = vld [vmem:[#allocation7 + $0xf3c] ss:$24 sps:$4 sm:$0xff]   ;;  %v10335_v37 = vld [vmem:[#allocation7 + $0xf0c] ss:$24 sps:$4 sm:$0xff]  }
 0x2ce   :  { %v3215_v25 = vpop.f32.mrf.mxu1  ;;  %4633 = vmatprep.subr.bf16.mxu1 %v10302_v27  ;;  %v10326_v49 = vld [vmem:[#allocation7 + $0xc3c] ss:$24 sps:$4 sm:$0xff]   ;;  %v10324_v27 = vld [vmem:[#allocation7 + $0xc38] ss:$24 sps:$4 sm:$0xff]   ;;  %v10333_v32 = vld [vmem:[#allocation7 + $0xf08] ss:$24 sps:$4 sm:$0xff]  }
 0x2cf   :  { %v11318_v58 = vadd.f32 %v3262_v47, %v3212_v13  ;;  %v3216_v50 = vadd.f32 %v3215_v25, %v11218_v43  ;;  %v3268_v60 = vpop.f32.mrf.mxu0  ;;  %v10332_v47 = vld [vmem:[#allocation7 + $0xc0c] ss:$24 sps:$4 sm:$0xff]  }
 0x2d0   :  { %4677 = vmatpush1.bf16.msra.mxu0 %v10303_v8  ;;  %v3217_v26 = vpop.f32.mrf.mxu1  ;;  %v10330_v8 = vld [vmem:[#allocation7 + $0xc08] ss:$24 sps:$4 sm:$0xff]   ;;  %v10338_v13 = vld [vmem:[#allocation7 + $0xbe4] ss:$24 sps:$4 sm:$0xff]   ;;  %v10344_v25 = vld [vmem:[#allocation7 + $0xbb4] ss:$24 sps:$4 sm:$0xff]  }
 0x2d1   :  { %v11321_v4 = vadd.f32 %v3266_v52, %v3216_v50  ;;  %4634 = vmatpush2.bf16.msra.mxu1 %v10300_v55  ;;  %v3218_v57 = vadd.f32 %v3217_v26, %v11220_v62  ;;  %v3270_v23 = vpop.f32.mrf.mxu0  ;;  %4678 = vmatprep.subr.bf16.mxu0 %v10311_v56  ;;  %v10321_v62 = vld [vmem:[#allocation7 + $0xf68] ss:$24 sps:$4 sm:$0xff]   ;;  %v10341_v52 = vld [vmem:[#allocation7 + $0xee4] ss:$24 sps:$4 sm:$0xff]  }
 0x2d2   :  { %v3219_v19 = vpop.f32.mrf.mxu1  ;;  %4635 = vmatprep.subr.bf16.mxu1 %v10308_v22  ;;  %v10336_v55 = vld [vmem:[#allocation7 + $0xbe0] ss:$24 sps:$4 sm:$0xff]   ;;  %v10347_v22 = vld [vmem:[#allocation7 + $0xeb4] ss:$24 sps:$4 sm:$0xff]   ;;  %v10342_v50 = vld [vmem:[#allocation7 + $0xbb0] ss:$24 sps:$4 sm:$0xff]  }
 0x2d3   :  { %v11324_v42 = vadd.f32 %v3268_v60, %v3218_v57  ;;  %v3271_v10 = vpop.f32.mrf.mxu0  ;;  %v10339_v56 = vld [vmem:[#allocation7 + $0xee0] ss:$24 sps:$4 sm:$0xff]   ;;  %v10345_v60 = vld [vmem:[#allocation7 + $0xeb0] ss:$24 sps:$4 sm:$0xff]   ;;  %v10350_v26 = vld [vmem:[#allocation7 + $0xb84] ss:$24 sps:$4 sm:$0xff]  }
 0x2d4   :  { %4679 = vmatpush1.bf16.msra.mxu0 %v10309_v46  ;;  %v3220_v43 = vpop.f32.mrf.mxu1  ;;  %v10353_v46 = vld [vmem:[#allocation7 + $0xe84] ss:$24 sps:$4 sm:$0xff]   ;;  %v10348_v57 = vld [vmem:[#allocation7 + $0xb80] ss:$24 sps:$4 sm:$0xff]   ;;  %v10354_v19 = vld [vmem:[#allocation7 + $0xb50] ss:$24 sps:$4 sm:$0xff]  }
 0x2d5   :  { %4636 = vmatpush2.bf16.msra.mxu1 %v10306_v61  ;;  %4688 = vmatprep.subr.bf16.mxu0 %v10317_v14  ;;  %v10351_v23 = vld [vmem:[#allocation7 + $0xe80] ss:$24 sps:$4 sm:$0xff]   ;;  %v10356_v61 = vld [vmem:[#allocation7 + $0xb54] ss:$24 sps:$4 sm:$0xff]   ;;  %v10362_v10 = vld [vmem:[#allocation7 + $0xb24] ss:$24 sps:$4 sm:$0xff]  }
 0x2d6   :  { %4637 = vmatprep.subr.bf16.mxu1 %v10314_v7  ;;  %v10359_v14 = vld [vmem:[#allocation7 + $0xe54] ss:$24 sps:$4 sm:$0xff]   ;;  %v10357_v7 = vld [vmem:[#allocation7 + $0xe50] ss:$24 sps:$4 sm:$0xff]   ;;  %v10365_v43 = vld [vmem:[#allocation7 + $0xe24] ss:$24 sps:$4 sm:$0xff]  }
 0x2d8   :  { %4689 = vmatpush2.bf16.msra.mxu0 %v10315_v20  ;;  %v10360_v20 = vld [vmem:[#allocation7 + $0xb20] ss:$24 sps:$4 sm:$0xff]  }
 0x2d9   :  { %4638 = vmatpush2.bf16.msra.mxu1 %v10312_v24  ;;  %4690 = vmatprep.subr.bf16.mxu0 %v10323_v44  ;;  %v10363_v24 = vld [vmem:[#allocation7 + $0xe20] ss:$24 sps:$4 sm:$0xff]   ;;  %v10368_v44 = vld [vmem:[#allocation7 + $0xaf4] ss:$24 sps:$4 sm:$0xff]  }
 0x2da   :  { %4639 = vmatprep.subr.bf16.mxu1 %v10320_v21 }
 0x2dc   :  { %4691 = vmatpush2.bf16.msra.mxu0 %v10321_v62 }
 0x2dd   :  { %4640 = vmatpush2.bf16.msra.mxu1 %v10318_v31  ;;  %4692 = vmatprep.subr.bf16.mxu0 %v10329_v11  ;;  %v10366_v31 = vld [vmem:[#allocation7 + $0xaf0] ss:$24 sps:$4 sm:$0xff]   ;;  %v10374_v11 = vld [vmem:[#allocation7 + $0xac4] ss:$24 sps:$4 sm:$0xff]  }
 0x2de   :  { %4641 = vmatprep.subr.bf16.mxu1 %v10326_v49 }
 0x2e0   :  { %4693 = vmatpush2.bf16.msra.mxu0 %v10327_v48  ;;  %v10377_v48 = vld [vmem:[#allocation7 + $0xdc4] ss:$24 sps:$4 sm:$0xff]  }
 0x2e1   :  { %4642 = vmatpush2.bf16.msra.mxu1 %v10324_v27  ;;  %4694 = vmatprep.subr.bf16.mxu0 %v10335_v37  ;;  %v10372_v37 = vld [vmem:[#allocation7 + $0xac0] ss:$24 sps:$4 sm:$0xff]  }
 0x2e2   :  { %4643 = vmatprep.subr.bf16.mxu1 %v10332_v47  ;;  %v10375_v47 = vld [vmem:[#allocation7 + $0xdc0] ss:$24 sps:$4 sm:$0xff]  }
 0x2e4   :  { %4695 = vmatpush2.bf16.msra.mxu0 %v10333_v32  ;;  %v10380_v32 = vld [vmem:[#allocation7 + $0xa94] ss:$24 sps:$4 sm:$0xff]  }
 0x2e5   :  { %4644 = vmatpush2.bf16.msra.mxu1 %v10330_v8  ;;  %4715 = vmatprep.subr.bf16.mxu0 %v10338_v13  ;;  %v10383_v13 = vld [vmem:[#allocation7 + $0xd94] ss:$24 sps:$4 sm:$0xff]  }
 0x2e6   :  { %4766 = vmatprep.subr.bf16.mxu1 %v10341_v52 }
 0x2e7   :  { %4697 = vmatmul.mubr.bf16.vlgmr.msra.gmra.mxu0 %v11288_v6 }
 0x2e8   :  { %4646 = vmatmul.mubr.bf16.vlgmr.msra.gmra.mxu1 %v11301_v41  ;;  %8888 = vmatprep.mubr.msk.bf16.mxu0 %vm2012_vm4, %v11253_v40 }
 0x2e9   :  { %4655 = vmatprep.mubr.bf16.mxu1 %v11250_v28  ;;  %4716 = vmatpush1.bf16.msra.mxu0 %v10336_v55  ;;  %v10378_v55 = vld [vmem:[#allocation7 + $0xa90] ss:$24 sps:$4 sm:$0xff]  }
 0x2ea   :  { %4767 = vmatpush1.bf16.msra.mxu1 %v10339_v56  ;;  %4717 = vmatprep.subr.bf16.mxu0 %v10344_v25  ;;  %v10381_v56 = vld [vmem:[#allocation7 + $0xd90] ss:$24 sps:$4 sm:$0xff]   ;;  %v10386_v25 = vld [vmem:[#allocation7 + $0xd64] ss:$24 sps:$4 sm:$0xff]  }
 0x2eb   :  { %4768 = vmatprep.subr.bf16.mxu1 %v10347_v22 }
 0x2ed   :  { %4718 = vmatpush1.bf16.msra.mxu0 %v10342_v50  ;;  %v10389_v50 = vld [vmem:[#allocation7 + $0xfa4] ss:$24 sps:$4 sm:$0xff]  }
 0x2ee   :  { %4769 = vmatpush1.bf16.msra.mxu1 %v10345_v60  ;;  %4719 = vmatprep.subr.bf16.mxu0 %v10350_v26  ;;  %v10384_v26 = vld [vmem:[#allocation7 + $0xd60] ss:$24 sps:$4 sm:$0xff]  }
 0x2ef   :  { %4707 = vmatmul.mubr.bf16.gmra.mxu0 %v11283_v1  ;;  %4770 = vmatprep.subr.bf16.mxu1 %v10353_v46 }
 0x2f0   :  { %4656 = vmatmul.mubr.bf16.gmra.mxu1 %v11296_v45  ;;  %4747 = vmatprep.mubr.bf16.mxu0 %v11260_v16  ;;  %v10371_v16 = vld [vmem:[#allocation7 + $0xdf4] ss:$24 sps:$4 sm:$0xff]  }
 0x2f1   :  { %4720 = vmatpush1.bf16.msra.mxu0 %v10348_v57  ;;  %8889 = vmatprep.mubr.msk.bf16.mxu1 %vm2012_vm4, %v11266_v18  ;;  %v10369_v18 = vld [vmem:[#allocation7 + $0xdf0] ss:$24 sps:$4 sm:$0xff]   ;;  %v10387_v57 = vld [vmem:[#allocation7 + $0xfa0] ss:$24 sps:$4 sm:$0xff]  }
 0x2f2   :  { %4771 = vmatpush1.bf16.msra.mxu1 %v10351_v23  ;;  %4721 = vmatprep.subr.bf16.mxu0 %v10356_v61  ;;  %v10392_v23 = vld [vmem:[#allocation7 + $0xd34] ss:$24 sps:$4 sm:$0xff]  }
 0x2f3   :  { %4772 = vmatprep.subr.bf16.mxu1 %v10359_v14  ;;  %v10395_v14 = vld [vmem:[#allocation7 + $0xf74] ss:$24 sps:$4 sm:$0xff]  }
 0x2f5   :  { %4722 = vmatpush1.bf16.msra.mxu0 %v10354_v19 }
 0x2f6   :  { %4773 = vmatpush1.bf16.msra.mxu1 %v10357_v7  ;;  %4723 = vmatprep.subr.bf16.mxu0 %v10362_v10 }
 0x2f7   :  { %v3358_v21 = vpop.f32.mrf.mxu1  ;;  %4774 = vmatprep.subr.bf16.mxu1 %v10365_v43  ;;  %v10390_v43 = vld [vmem:[#allocation7 + $0xd30] ss:$24 sps:$4 sm:$0xff]  }
 0x2f9   :  { %4724 = vmatpush1.bf16.msra.mxu0 %v10360_v20  ;;  %v3360_v62 = vpop.f32.mrf.mxu1 }
 0x2fa   :  { %4775 = vmatpush1.bf16.msra.mxu1 %v10363_v24  ;;  %4725 = vmatprep.subr.bf16.mxu0 %v10368_v44  ;;  %v10393_v24 = vld [vmem:[#allocation7 + $0xf70] ss:$24 sps:$4 sm:$0xff]   ;;  %v10398_v44 = vld [vmem:[#allocation7 + $0xd04] ss:$24 sps:$4 sm:$0xff]  }
 0x2fb   :  { %v3362_v49 = vpop.f32.mrf.mxu1  ;;  %4776 = vmatprep.subr.bf16.mxu1 %v10371_v16 }
 0x2fd   :  { %4726 = vmatpush1.bf16.msra.mxu0 %v10366_v31  ;;  %v3364_v27 = vpop.f32.mrf.mxu1 }
 0x2fe   :  { %4777 = vmatpush1.bf16.msra.mxu1 %v10369_v18  ;;  %4727 = vmatprep.subr.bf16.mxu0 %v10374_v11 }
 0x2ff   :  { %v3368_v8 = vpop.f32.mrf.mxu1  ;;  %4778 = vmatprep.subr.bf16.mxu1 %v10377_v48  ;;  %v10396_v48 = vld [vmem:[#allocation7 + $0xd00] ss:$24 sps:$4 sm:$0xff]  }
 0x301   :  { %4728 = vmatpush1.bf16.msra.mxu0 %v10372_v37  ;;  %v3370_v52 = vpop.f32.mrf.mxu1  ;;  %v10399_v37 = vld [vmem:[#allocation7 + $0xf40] ss:$24 sps:$4 sm:$0xff]  }
 0x302   :  { %4779 = vmatpush1.bf16.msra.mxu1 %v10375_v47  ;;  %4729 = vmatprep.subr.bf16.mxu0 %v10380_v32  ;;  %v10404_v47 = vld [vmem:[#allocation7 + $0xcd4] ss:$24 sps:$4 sm:$0xff]  }
 0x303   :  { %v3372_v22 = vpop.f32.mrf.mxu1  ;;  %4780 = vmatprep.subr.bf16.mxu1 %v10383_v13 }
 0x304   :  { %v10410_v22 = vld [vmem:[#allocation7 + $0xca4] ss:$24 sps:$4 sm:$0xff]  }
 0x305   :  { %4730 = vmatpush1.bf16.msra.mxu0 %v10378_v55  ;;  %v3373_v60 = vpop.f32.mrf.mxu1 }
 0x306   :  { %4781 = vmatpush1.bf16.msra.mxu1 %v10381_v56  ;;  %v3307_v46 = vpop.f32.mrf.mxu0  ;;  %4731 = vmatprep.subr.bf16.mxu0 %v10386_v25  ;;  %v10402_v56 = vld [vmem:[#allocation7 + $0xcd0] ss:$24 sps:$4 sm:$0xff]   ;;  %v10413_v60 = vld [vmem:[#allocation7 + $0xc74] ss:$24 sps:$4 sm:$0xff]  }
 0x307   :  { %v3308_v61 = vadd.f32 %v3307_v46, %v11232_v59  ;;  %4790 = vmatprep.subr.bf16.mxu1 %v10389_v50  ;;  %v10401_v59 = vld [vmem:[#allocation7 + $0xf44] ss:$24 sps:$4 sm:$0xff]   ;;  %v10405_v25 = vld [vmem:[#allocation7 + $0xf10] ss:$24 sps:$4 sm:$0xff]  }
 0x308   :  { %v3309_v19 = vpop.f32.mrf.mxu0  ;;  %v10417_v46 = vld [vmem:[#allocation7 + $0xc10] ss:$24 sps:$4 sm:$0xff]  }
 0x309   :  { %v11337_v7 = vadd.f32 %v3358_v21, %v3308_v61  ;;  %4732 = vmatpush2.bf16.msra.mxu0 %v10384_v26  ;;  %v3310_v10 = vadd.f32 %v3309_v19, %v11234_v9  ;;  %v10414_v26 = vld [vmem:[#allocation7 + $0xc40] ss:$24 sps:$4 sm:$0xff]  }
 0x30a   :  { %4791 = vmatpush2.bf16.msra.mxu1 %v10387_v57  ;;  %v3311_v20 = vpop.f32.mrf.mxu0  ;;  %4733 = vmatprep.subr.bf16.mxu0 %v10392_v23 }
 0x30b   :  { %v11340_v16 = vadd.f32 %v3360_v62, %v3310_v10  ;;  %v3312_v31 = vadd.f32 %v3311_v20, %v11236_v17  ;;  %4792 = vmatprep.subr.bf16.mxu1 %v10395_v14  ;;  %v10407_v17 = vld [vmem:[#allocation7 + $0xf14] ss:$24 sps:$4 sm:$0xff]  }
 0x30c   :  { %v3313_v18 = vpop.f32.mrf.mxu0 }
 0x30d   :  { %v11343_v11 = vadd.f32 %v3362_v49, %v3312_v31  ;;  %4734 = vmatpush2.bf16.msra.mxu0 %v10390_v43  ;;  %v3314_v21 = vadd.f32 %v3313_v18, %v11238_v38 }
 0x30e   :  { %4793 = vmatpush2.bf16.msra.mxu1 %v10393_v24  ;;  %v3317_v9 = vpop.f32.mrf.mxu0  ;;  %4735 = vmatprep.subr.bf16.mxu0 %v10398_v44 }
 0x30f   :  { %v11346_v32 = vadd.f32 %v3364_v27, %v3314_v21  ;;  %v3318_v62 = vadd.f32 %v3317_v9, %v11240_v3  ;;  %4794 = vmatprep.subr.bf16.mxu1 %v10401_v59  ;;  %v10408_v3 = vld [vmem:[#allocation7 + $0xca0] ss:$24 sps:$4 sm:$0xff]  }
 0x310   :  { %v3319_v13 = vpop.f32.mrf.mxu0 }
 0x311   :  { %v11349_v55 = vadd.f32 %v3368_v8, %v3318_v62  ;;  %4736 = vmatpush2.bf16.msra.mxu0 %v10396_v48  ;;  %v3320_v49 = vadd.f32 %v3319_v13, %v11242_v35  ;;  %v10411_v8 = vld [vmem:[#allocation7 + $0xc70] ss:$24 sps:$4 sm:$0xff]   ;;  %v10416_v35 = vld [vmem:[#allocation7 + $0xc44] ss:$24 sps:$4 sm:$0xff]  }
 0x312   :  { %4795 = vmatpush2.bf16.msra.mxu1 %v10399_v37  ;;  %v3321_v38 = vpop.f32.mrf.mxu0  ;;  %4737 = vmatprep.subr.bf16.mxu0 %v10404_v47 }
 0x313   :  { %v11352_v50 = vadd.f32 %v3370_v52, %v3320_v49  ;;  %4796 = vmatprep.subr.bf16.mxu1 %v10407_v17  ;;  %v10419_v52 = vld [vmem:[#allocation7 + $0xc14] ss:$24 sps:$4 sm:$0xff]  }
 0x314   :  { %v3322_v27 = vpop.f32.mrf.mxu0 }
 0x315   :  { %4738 = vmatpush2.bf16.msra.mxu0 %v10402_v56 }
 0x316   :  { %4797 = vmatpush2.bf16.msra.mxu1 %v10405_v25  ;;  %4739 = vmatprep.subr.bf16.mxu0 %v10410_v22 }
 0x319   :  { %4799 = vmatmul.mubr.bf16.vlgmr.msra.gmra.mxu1 %v11288_v6  ;;  %4740 = vmatpush2.bf16.msra.mxu0 %v10408_v3 }
 0x31a   :  { %8890 = vmatprep.mubr.msk.bf16.mxu1 %vm2012_vm4, %v11253_v40  ;;  %4741 = vmatprep.subr.bf16.mxu0 %v10413_v60 }
 0x31d   :  { %4742 = vmatpush2.bf16.msra.mxu0 %v10411_v8 }
 0x31e   :  { %4743 = vmatprep.subr.bf16.mxu0 %v10416_v35 }
 0x321   :  { %4809 = vmatmul.mubr.bf16.gmra.mxu1 %v11283_v1  ;;  %4744 = vmatpush2.bf16.msra.mxu0 %v10414_v26 }
 0x322   :  { %4745 = vmatprep.subr.bf16.mxu0 %v10419_v52 }
 0x325   :  { %4746 = vmatpush2.bf16.msra.mxu0 %v10417_v46 }
 0x328   :  { %4748 = vmatmul.mubr.bf16.vlgmr.msra.gmra.mxu0 %v11301_v41 }
 0x329   :  { %4757 = vmatprep.mubr.bf16.mxu0 %v11250_v28 }
 0x330   :  { %4758 = vmatmul.mubr.bf16.gmra.mxu0 %v11296_v45 }
 0x336   :  { %v3460_v6 = vpop.f32.mrf.mxu0 }
 0x337   :  { %v3409_v40 = vpop.f32.mrf.mxu1 }
 0x338   :  { %v3410_v57 = vadd.f32 %v3409_v40, %v11270_v63  ;;  %v3462_v23 = vpop.f32.mrf.mxu0 }
 0x339   :  { %v3411_v61 = vpop.f32.mrf.mxu1 }
 0x33a   :  { %v11362_v14 = vadd.f32 %v3460_v6, %v3410_v57  ;;  %v3412_v1 = vadd.f32 %v3411_v61, %v11272_v30  ;;  %v3464_v19 = vpop.f32.mrf.mxu0 }
 0x33b   :  { %v3413_v10 = vpop.f32.mrf.mxu1 }
 0x33c   :  { %v11365_v43 = vadd.f32 %v3462_v23, %v3412_v1  ;;  %v3414_v41 = vadd.f32 %v3413_v10, %v11274_v33  ;;  %v3466_v20 = vpop.f32.mrf.mxu0 }
 0x33d   :  { %v3415_v28 = vpop.f32.mrf.mxu1 }
 0x33e   :  { %v11368_v24 = vadd.f32 %v3464_v19, %v3414_v41  ;;  %v3416_v45 = vadd.f32 %v3415_v28, %v11276_v36  ;;  %v3470_v44 = vpop.f32.mrf.mxu0 }
 0x33f   :  { %v3419_v63 = vpop.f32.mrf.mxu1 }
 0x340   :  { %v11371_v31 = vadd.f32 %v3466_v20, %v3416_v45  ;;  %v3420_v59 = vadd.f32 %v3419_v63, %v11278_v53  ;;  %v3472_v18 = vpop.f32.mrf.mxu0  ;;  %v10420_v45 = vld [vmem:[#allocation10 + $0x1f8] sm:$0xff]   ;;  %v10423_v63 = vld [vmem:[#allocation10 + $0x1b0] sm:$0xff]  }
 0x341   :  { %v3421_v30 = vpop.f32.mrf.mxu1  ;;  %9189 = vmatprep.subr.bf16.mxu1 %v10420_v45 }
 0x342   :  { %v11374_v21 = vadd.f32 %v3470_v44, %v3420_v59  ;;  %v3422_v48 = vadd.f32 %v3421_v30, %v11280_v54  ;;  %v3474_v9 = vpop.f32.mrf.mxu0  ;;  %v11380_v54 = vld [vmem:[#allocation8] sm:$0x3f]  ;;  %v10422_v44 = vld [vmem:[#allocation10 + $0x1f0] sm:$0xff]   ;;  %v10425_v59 = vld [vmem:[#allocation10 + $0x1a8] sm:$0xff]  }
 0x343   :  { %v3423_v33 = vpop.f32.mrf.mxu1  ;;  %v4840_v52 = vrot.slane %v11380_v54, %v750_v51  ;;  %v4844_v41 = vrot.slane %v11380_v54, %v754_v15  ;;  %v10427_v15 = vld [vmem:[#allocation10 + $0x1a0] sm:$0xff]   ;;  %v10428_v30 = vld [vmem:[#allocation10 + $0x1d8] sm:$0xff]  }
 0x344   :  { %v11377_v37 = vadd.f32 %v3472_v18, %v3422_v48  ;;  %v3475_v47 = vpop.f32.mrf.mxu0  ;;  %v10426_v18 = vld [vmem:[#allocation10 + $0x1e0] sm:$0xff]  }
 0x345   :  { %v3424_v62 = vpop.f32.mrf.mxu1 }
 0x368   :  { %v4596_v17 = vpop.f32.mrf.mxu1 }
 0x36a   :  { %v4598_v36 = vpop.f32.mrf.mxu1 }
 0x36c   :  { %v4600_v13 = vpop.f32.mrf.mxu1 }
 0x36e   :  { %v4602_v49 = vpop.f32.mrf.mxu1 }
 0x370   :  { %v4606_v56 = vpop.f32.mrf.mxu1 }
 0x372   :  { %v4608_v38 = vpop.f32.mrf.mxu1 }
 0x374   :  { %v4610_v25 = vpop.f32.mrf.mxu1 }
 0x375   :  { %v10430_v25 = vld [vmem:[#allocation10 + $0x1d0] sm:$0xff]  }
 0x376   :  { %v4611_v53 = vpop.f32.mrf.mxu1 }
 0x377   :  { %v4545_v22 = vpop.f32.mrf.mxu0 }
 0x378   :  { %v4597_v27 = vadd.f32 %v4596_v17, %v4545_v22 }
 0x379   :  { %v4547_v3 = vpop.f32.mrf.mxu0 }
 0x37a   :  { %v4817_v60 = vadd.f32 %v4597_v27, %v11309_v29  ;;  %v4599_v48 = vadd.f32 %v4598_v36, %v4547_v3  ;;  %v4852_v36 = vrot.slane %v11380_v54, %v762_v5  ;;  %v10431_v27 = vld [vmem:[#allocation10 + $0x190] sm:$0xff]  }
 0x37b   :  { %v4549_v8 = vpop.f32.mrf.mxu0 }
 0x37c   :  { %v4601_v35 = vadd.f32 %v4600_v13, %v4549_v8  ;;  %v4818_v9 = vadd.f32 %v4599_v48, %v11312_v39 }
 0x37d   :  { %v4551_v26 = vpop.f32.mrf.mxu0 }
 0x37e   :  { %v4823_v46 = vadd.f32 %v4601_v35, %v11315_v34  ;;  %v4603_v6 = vadd.f32 %v4602_v49, %v4551_v26  ;;  %v4868_v62 = vadd.f32 %v4844_v41, %v4818_v9  ;;  %v4848_v49 = vrot.slane %v11380_v54, %v758_v12 }
 0x37f   :  { %v4555_v40 = vpop.f32.mrf.mxu0 }
 0x380   :  { %v11386_v57 = vadd.f32 %v4840_v52, %v4823_v46  ;;  %v11389_v23 = vadd.f32 %v4603_v6, %v11318_v58  ;;  %v4607_v61 = vadd.f32 %v4606_v56, %v4555_v40  ;;  %v10421_v58 = vld [vmem:[#allocation10 + $0x1b8] sm:$0xff]   ;;  %v4867_v56 = vadd.f32 %v4840_v52, %v4817_v60  ;;  %v10432_v6 = vld [vmem:[#allocation10 + $0x1c8] sm:$0xff]  }
 0x381   :  { %v4557_v29 = vpop.f32.mrf.mxu0  ;;  %9190 = vmatpush3.bf16.msra.mxu1 %v10421_v58  ;;  %v4886_v8 = vmax.f32 %v4868_v62, 0.0 }
 0x382   :  { %v4829_v1 = vadd.f32 %v4607_v61, %v11321_v4  ;;  %v4609_v19 = vadd.f32 %v4608_v38, %v4557_v29  ;;  %9191 = vmatprep.subr.bf16.mxu1 %v10422_v44  ;;  %v10424_v4 = vld [vmem:[#allocation10 + $0x1e8] sm:$0xff]   ;;  %v4885_v60 = vmax.f32 %v4867_v56, 0.0 }
 0x383   :  { %v4559_v10 = vpop.f32.mrf.mxu0 }
 0x384   :  { %v11395_v51 = vadd.f32 %v4840_v52, %v4829_v1  ;;  %v4830_v34 = vadd.f32 %v4609_v19, %v11324_v42  ;;  %v10429_v42 = vld [vmem:[#allocation10 + $0x198] sm:$0xff]   ;;  %v10433_v1 = vld [vmem:[#allocation10 + $0x188] sm:$0xff]   ;;  %v4874_v19 = vadd.f32 %v4844_v41, %v11389_v23 }
 0x385   :  { %v4560_v20 = vpop.f32.mrf.mxu0  ;;  %9192 = vmatpush3.bf16.msra.mxu1 %v10423_v63 }
 0x386   :  { %v11398_v28 = vadd.f32 %v4844_v41, %v4830_v34  ;;  %9193 = vmatprep.subr.bf16.mxu1 %v10424_v4  ;;  %v4910_v34 = vrot.slane %v4886_v8, 2  ;;  %v4892_v48 = vmax.f32 %v4874_v19, 0.0 }
 0x389   :  { %9194 = vmatpush3.bf16.msra.mxu1 %v10425_v59  ;;  %v4909_v59 = vrot.slane %v4885_v60, 2 }
 0x38a   :  { %9195 = vmatprep.subr.bf16.mxu1 %v10426_v18 }
 0x38d   :  { %9196 = vmatpush3.bf16.msra.mxu1 %v10427_v15 }
 0x38e   :  { %9197 = vmatprep.subr.bf16.mxu1 %v10428_v30 }
 0x391   :  { %9198 = vmatpush3.bf16.msra.mxu1 %v10429_v42  ;;  %v10435_v42 = vld [vmem:[#allocation10 + $0x180] sm:$0xff]  }
 0x392   :  { %9199 = vmatprep.subr.bf16.mxu1 %v10430_v25 }
 0x395   :  { %9200 = vmatpush3.bf16.msra.mxu1 %v10431_v27  ;;  %v10437_v27 = vld [vmem:[#allocation10 + $0x238] sm:$0xff]  }
 0x396   :  { %9201 = vmatprep.subr.bf16.mxu1 %v10432_v6  ;;  %v10448_v6 = vld [vmem:[#allocation10 + $0x220] sm:$0xff]  }
 0x399   :  { %9202 = vmatpush3.bf16.msra.mxu1 %v10433_v1 }
 0x3a7   :  { %v4698_v33 = vpop.f32.mrf.mxu0 }
 0x3a8   :  { %v4647_v47 = vpop.f32.mrf.mxu1 }
 0x3a9   :  { %v4699_v17 = vadd.f32 %v4698_v33, %v4647_v47  ;;  %v4700_v13 = vpop.f32.mrf.mxu0  ;;  %v11415_v33 = vmax.f32 %v4886_v8, %v4910_v34 }
 0x3aa   :  { %v4649_v38 = vpop.f32.mrf.mxu1 }
 0x3ab   :  { %v4819_v53 = vadd.f32 %v4699_v17, %v11337_v7  ;;  %v4701_v22 = vadd.f32 %v4700_v13, %v4649_v38  ;;  %v4702_v39 = vpop.f32.mrf.mxu0 }
 0x3ac   :  { %v4651_v3 = vpop.f32.mrf.mxu1 }
 0x3ad   :  { %v4820_v35 = vadd.f32 %v4701_v22, %v11340_v16  ;;  %v4703_v26 = vadd.f32 %v4702_v39, %v4651_v3  ;;  %v4704_v46 = vpop.f32.mrf.mxu0  ;;  %v4869_v12 = vadd.f32 %v4848_v49, %v4819_v53  ;;  %v11429_v22 = vmax.f32 %v4885_v60, %v4909_v59  ;;  %v10438_v3 = vld [vmem:[#allocation10 + $0x270] sm:$0xff]   ;;  %v10444_v60 = vld [vmem:[#allocation10 + $0x228] sm:$0xff]  }
 0x3ae   :  { %v4653_v52 = vpop.f32.mrf.mxu1  ;;  %v6004_v39 = vrot.slane %v4892_v48, 2 }
 0x3af   :  { %v4870_v7 = vadd.f32 %v4852_v36, %v4820_v35  ;;  %v4825_v40 = vadd.f32 %v4703_v26, %v11343_v11  ;;  %v4705_v61 = vadd.f32 %v4704_v46, %v4653_v52  ;;  %v4708_v29 = vpop.f32.mrf.mxu0  ;;  %v4887_v5 = vmax.f32 %v4869_v12, 0.0  ;;  %v10434_v11 = vld [vmem:[#allocation10 + $0x1c0] sm:$0xff]   ;;  %v10440_v26 = vld [vmem:[#allocation10 + $0x230] sm:$0xff]   ;;  %v10442_v46 = vld [vmem:[#allocation10 + $0x268] sm:$0xff]  }
 0x3b0   :  { %v4657_v10 = vpop.f32.mrf.mxu1  ;;  %9203 = vmatprep.subr.bf16.mxu1 %v10434_v11  ;;  %v10446_v52 = vld [vmem:[#allocation10 + $0x260] sm:$0xff]  }
 0x3b1   :  { %v4888_v16 = vmax.f32 %v4870_v7, 0.0  ;;  %v4875_v20 = vadd.f32 %v4848_v49, %v4825_v40  ;;  %v4826_v45 = vadd.f32 %v4705_v61, %v11346_v32  ;;  %v4709_v58 = vadd.f32 %v4708_v29, %v4657_v10  ;;  %v4710_v44 = vpop.f32.mrf.mxu0  ;;  %9204 = vmatpush3.bf16.msra.mxu1 %v10435_v42  ;;  %v10450_v7 = vld [vmem:[#allocation10 + $0x258] sm:$0xff]   ;;  %v10454_v61 = vld [vmem:[#allocation10 + $0x250] sm:$0xff]  }
 0x3b2   :  { %v4659_v63 = vpop.f32.mrf.mxu1  ;;  %v4911_v4 = vrot.slane %v4887_v5, 2  ;;  %v10452_v40 = vld [vmem:[#allocation10 + $0x218] sm:$0xff]   ;;  %v10456_v29 = vld [vmem:[#allocation10 + $0x210] sm:$0xff]  }
 0x3b3   :  { %v4893_v18 = vmax.f32 %v4875_v20, 0.0  ;;  %v11412_v15 = vadd.f32 %v4852_v36, %v4826_v45  ;;  %v4831_v30 = vadd.f32 %v4709_v58, %v11349_v55  ;;  %v4711_v23 = vadd.f32 %v4710_v44, %v4659_v63  ;;  %v4712_v41 = vpop.f32.mrf.mxu0 }
 0x3b4   :  { %v4661_v9 = vpop.f32.mrf.mxu1  ;;  %v11417_v32 = vmax.f32 %v4887_v5, %v4911_v4  ;;  %v4912_v47 = vrot.slane %v4888_v16, 2  ;;  %v10458_v5 = vld [vmem:[#allocation10 + $0x248] sm:$0xff]   ;;  %v4855_v58 = vsub.s32 4, %v11087_v2  ;;  %v4859_v63 = vsub.s32 5, %v11087_v2 }
 0x3b5   :  { %v11419_v62 = vadd.f32 %v4848_v49, %v4831_v30  ;;  %v4832_v17 = vadd.f32 %v4711_v23, %v11352_v50  ;;  %v4713_v13 = vpop.f32.mrf.mxu0  ;;  %v6005_v25 = vrot.slane %v4893_v18, 2  ;;  %v10436_v49 = vld [vmem:[#allocation10 + $0x278] sm:$0xff]   ;;  %v10460_v4 = vld [vmem:[#allocation10 + $0x208] sm:$0xff]   ;;  %v10462_v23 = vld [vmem:[#allocation10 + $0x240] sm:$0xff]  }
 0x3b6   :  { %v4662_v56 = vpop.f32.mrf.mxu1  ;;  %v9634_v55 = vpack.i.bf16 %v11417_v32, %v11415_v33  ;;  %v11424_v38 = vmax.f32 %v4888_v16, %v4912_v47  ;;  %v10439_v50 = vld [vmem:[#allocation10 + $0x2f8] sm:$0xff]   ;;  %9211 = vmatprep.subr.bf16.mxu0 %v10436_v49  ;;  %v10464_v9 = vld [vmem:[#allocation10 + $0x200] sm:$0xff]  }
 0x3b7   :  { %v11426_v53 = vadd.f32 %v4852_v36, %v4832_v17  ;;  %v11433_v35 = vmax.f32 %v4893_v18, %v6005_v25  ;;  %9212 = vmatpush3.bf16.msra.mxu0 %v10437_v27  ;;  %9233 = vmatprep.subr.bf16.mxu1 %v10439_v50  ;;  %v11436_v36 = vmax.f32 %v4892_v48, %v6004_v39  ;;  %v4894_v56 = vmax.f32 %v11412_v15, 0.0  ;;  %v10466_v25 = vld [vmem:[#allocation10 + $0x78] sm:$0xff]  }
 0x3b8   :  { %9635 = vrot.lane.b32.xlu0 %v9634_v55, %s10900_s17  ;;  %v9639_v8 = vpack.i.bf16 %v11424_v38, %v11429_v22  ;;  %9213 = vmatprep.subr.bf16.mxu0 %v10438_v3  ;;  %v4856_v18 = vrot.slane %v11380_v54, %v4855_v58  ;;  %v4860_v48 = vrot.slane %v11380_v54, %v4859_v63  ;;  %v4891_v3 = vmax.f32 %v11386_v57, 0.0 }
 0x3b9   :  { %v9644_v12 = vpack.i.bf16 %v11433_v35, %v11436_v36  ;;  %v4899_v54 = vmax.f32 %v11419_v62, 0.0  ;;  %v4898_v15 = vmax.f32 %v11398_v28, 0.0  ;;  %v4900_v28 = vmax.f32 %v11426_v53, 0.0 }
 0x3ba   :  { %v4897_v63 = vmax.f32 %v11395_v51, 0.0 }
 0x3bb   :  { %9214 = vmatpush3.bf16.msra.mxu0 %v10440_v26 }
 0x3bc   :  { %9640 = vrot.lane.b32.xlu0 %v9639_v8, %s10900_s17  ;;  %9215 = vmatprep.subr.bf16.mxu0 %v10442_v46 }
 0x3bf   :  { %9216 = vmatpush3.bf16.msra.mxu0 %v10444_v60 }
 0x3c0   :  { %9645 = vrot.lane.b32.xlu0 %v9644_v12, %s10900_s17  ;;  %9217 = vmatprep.subr.bf16.mxu0 %v10446_v52  ;;  %v6006_v52 = vrot.slane %v4894_v56, 2 }
 0x3c3   :  { %9218 = vmatpush3.bf16.msra.mxu0 %v10448_v6 }
 0x3c4   :  { %9219 = vmatprep.subr.bf16.mxu0 %v10450_v7 }
 0x3c7   :  { %9220 = vmatpush3.bf16.msra.mxu0 %v10452_v40 }
 0x3c8   :  { %9221 = vmatprep.subr.bf16.mxu0 %v10454_v61  ;;  %v7102_v61 = vrot.slane %v4899_v54, 2 }
 0x3ca   :  { %v11466_v58 = vmax.f32 %v4899_v54, %v7102_v61  ;;  %v10465_v61 = vld [vmem:[#allocation10 + $0x288] sm:$0xff]  }
 0x3cb   :  { %9222 = vmatpush3.bf16.msra.mxu0 %v10456_v29 }
 0x3cc   :  { %9223 = vmatprep.subr.bf16.mxu0 %v10458_v5 }
 0x3cf   :  { %9224 = vmatpush3.bf16.msra.mxu0 %v10460_v4 }
 0x3d0   :  { %9225 = vmatprep.subr.bf16.mxu0 %v10462_v23  ;;  %v7100_v23 = vrot.slane %v4897_v63, 2 }
 0x3d3   :  { %9226 = vmatpush3.bf16.msra.mxu0 %v10464_v9 }
 0x3d4   :  { %9255 = vmatprep.subr.bf16.mxu0 %v10466_v25 }
 0x3d9   :  { %v4800_v1 = vpop.f32.mrf.mxu1 }
 0x3db   :  { %v4802_v19 = vpop.f32.mrf.mxu1 }
 0x3dd   :  { %v4804_v10 = vpop.f32.mrf.mxu1 }
 0x3df   :  { %v4806_v34 = vpop.f32.mrf.mxu1 }
 0x3e1   :  { %v4810_v16 = vpop.f32.mrf.mxu1 }
 0x3e3   :  { %v4812_v20 = vpop.f32.mrf.mxu1 }
 0x3e5   :  { %v4814_v45 = vpop.f32.mrf.mxu1 }
 0x3e7   :  { %v4815_v44 = vpop.f32.mrf.mxu1 }
 0x3e8   :  { %v4749_v59 = vpop.f32.mrf.mxu0 }
 0x3e9   :  { %v4801_v11 = vadd.f32 %v4800_v1, %v4749_v59 }
 0x3ea   :  { %v4751_v30 = vpop.f32.mrf.mxu0 }
 0x3eb   :  { %v4821_v41 = vadd.f32 %v4801_v11, %v11362_v14  ;;  %v4803_v42 = vadd.f32 %v4802_v19, %v4751_v30  ;;  %v7103_v11 = vrot.slane %v4900_v28, 2 }
 0x3ec   :  { %v4753_v47 = vpop.f32.mrf.mxu0 }
 0x3ed   :  { %v4822_v17 = vadd.f32 %v4803_v42, %v11365_v43  ;;  %v4805_v13 = vadd.f32 %v4804_v10, %v4753_v47  ;;  %v4871_v2 = vadd.f32 %v4856_v18, %v4821_v41  ;;  %v7101_v10 = vrot.slane %v4898_v15, 2 }
 0x3ee   :  { %v4755_v55 = vpop.f32.mrf.mxu0  ;;  %v11485_v42 = vmax.f32 %v4900_v28, %v7103_v11 }
 0x3ef   :  { %v4827_v39 = vadd.f32 %v4805_v13, %v11368_v24  ;;  %v4807_v49 = vadd.f32 %v4806_v34, %v4755_v55  ;;  %v4889_v27 = vmax.f32 %v4871_v2, 0.0  ;;  %v4872_v14 = vadd.f32 %v4860_v48, %v4822_v17 }
 0x3f0   :  { %v4759_v50 = vpop.f32.mrf.mxu0 }
 0x3f1   :  { %v4828_v43 = vadd.f32 %v4807_v49, %v11371_v31  ;;  %v4811_v8 = vadd.f32 %v4810_v16, %v4759_v50  ;;  %v4913_v26 = vrot.slane %v4889_v27, 2  ;;  %v4890_v46 = vmax.f32 %v4872_v14, 0.0 }
 0x3f2   :  { %v4761_v12 = vpop.f32.mrf.mxu0  ;;  %v4877_v60 = vadd.f32 %v4856_v18, %v4827_v39  ;;  %v6003_v31 = vrot.slane %v4891_v3, 2  ;;  %v11462_v16 = vmax.f32 %v4894_v56, %v6006_v52  ;;  %v10451_v52 = vld [vmem:[#allocation10 + $0x2e0] sm:$0xff]  }
 0x3f3   :  { %v4833_v24 = vadd.f32 %v4811_v8, %v11374_v21  ;;  %v4813_v6 = vadd.f32 %v4812_v20, %v4761_v12  ;;  %v11454_v7 = vmax.f32 %v4889_v27, %v4913_v26  ;;  %v4914_v57 = vrot.slane %v4890_v46, 2  ;;  %v10441_v26 = vld [vmem:[#allocation10 + $0x2b8] sm:$0xff]   ;;  %v10445_v12 = vld [vmem:[#allocation10 + $0x2b0] sm:$0xff]  }
 0x3f4   :  { %v4763_v40 = vpop.f32.mrf.mxu0  ;;  %v4895_v62 = vmax.f32 %v4877_v60, 0.0  ;;  %v4878_v29 = vadd.f32 %v4860_v48, %v4828_v43  ;;  %v11471_v53 = vmax.f32 %v4891_v3, %v6003_v31  ;;  %v10447_v60 = vld [vmem:[#allocation10 + $0x2e8] sm:$0xff]   ;;  %v10468_v31 = vld [vmem:[#allocation10 + $0x280] sm:$0xff]  }
 0x3f5   :  { %4941 = vrot.lane.b32.xlu1 %v11454_v7, %s10900_s17  ;;  %v4883_v5 = vadd.f32 %v4856_v18, %v4833_v24  ;;  %v4834_v21 = vadd.f32 %v4813_v6, %v11377_v37  ;;  %v11460_v34 = vmax.f32 %v4890_v46, %v4914_v57  ;;  %v11475_v37 = vmax.f32 %v4898_v15, %v7101_v10  ;;  %v10443_v15 = vld [vmem:[#allocation10 + $0x2f0] sm:$0xff]   ;;  %v10453_v24 = vld [vmem:[#allocation10 + $0x2a0] sm:$0xff]   ;;  %v10457_v6 = vld [vmem:[#allocation10 + $0x298] sm:$0xff]  }
 0x3f6   :  { %v4764_v1 = vpop.f32.mrf.mxu0  ;;  %v6007_v19 = vrot.slane %v4895_v62, 2  ;;  %v4896_v20 = vmax.f32 %v4878_v29, 0.0  ;;  %v9649_v4 = vpack.i.bf16 %v11462_v16, %v11471_v53  ;;  %v10459_v57 = vld [vmem:[#allocation10 + $0x2d0] sm:$0xff]   ;;  %v10467_v29 = vld [vmem:[#allocation10 + $0x2c0] sm:$0xff]  }
 0x3f7   :  { %v4901_v44 = vmax.f32 %v4883_v5, 0.0  ;;  %v4884_v18 = vadd.f32 %v4860_v48, %v4834_v21  ;;  %v9654_v30 = vpack.i.bf16 %v11466_v58, %v11475_v37  ;;  %v11491_v48 = vmax.f32 %v4897_v63, %v7100_v23  ;;  %v10461_v40 = vld [vmem:[#allocation10 + $0x290] sm:$0xff]   ;;  %v10471_v5 = vld [vmem:[#allocation10 + $0xf8] sm:$0xff]  }
 0x3f8   :  { %v11464_v45 = vmax.f32 %v4895_v62, %v6007_v19  ;;  %v6008_v59 = vrot.slane %v4896_v20, 2  ;;  %v10463_v62 = vld [vmem:[#allocation10 + $0x2c8] sm:$0xff]   ;;  %v10469_v23 = vld [vmem:[#allocation10 + $0x38] sm:$0xff]  }
 0x3f9   :  { %4943 = vrot.lane.b32.xlu1 %v11460_v34, %s10900_s17  ;;  %v7104_v51 = vrot.slane %v4901_v44, 2  ;;  %v4902_v9 = vmax.f32 %v4884_v18, 0.0  ;;  %v9659_v17 = vpack.i.bf16 %v11485_v42, %v11491_v48 }
 0x3fa   :  { %6035 = vrot.lane.b32.xlu0 %v11464_v45, %s10900_s17  ;;  %v11483_v41 = vmax.f32 %v4896_v20, %v6008_v59 }
 0x3fb   :  { %v11487_v47 = vmax.f32 %v4901_v44, %v7104_v51  ;;  %v7105_v13 = vrot.slane %v4902_v9, 2 }
 0x3fd   :  { %9650 = vrot.lane.b32.xlu1 %v9649_v4, %s10900_s17  ;;  %v11498_v2 = vmax.f32 %v4902_v9, %v7105_v13  ;;  %v10470_v9 = vld [vmem:[#allocation10 + $0x70] sm:$0xff]  }
 0x3fe   :  { %9655 = vrot.lane.b32.xlu0 %v9654_v30, %s10900_s17 }
 0x401   :  { %6037 = vrot.lane.b32.xlu1 %v11483_v41, %s10900_s17 }
 0x402   :  { %7132 = vrot.lane.b32.xlu0 %v11487_v47, %s10900_s17 }
 0x405   :  { %9660 = vrot.lane.b32.xlu1 %v9659_v17, %s10900_s17 }
 0x409   :  { %7134 = vrot.lane.b32.xlu1 %v11498_v2, %s10900_s17 }
 0x42a   :  { %v9636_v56 = vpop.permute.xlu0 %9635 }
 0x42b   :  { %v9638_v55 = vunpack.i.h.bf16 %v9636_v56  ;;  %v9637_v25 = vunpack.i.l.bf16 %v9636_v56 }
 0x42d   :  { %v4946_v39 = vsel %vm2012_vm4, %v9637_v25, %v9638_v55 }
 0x42e   :  { %v9641_v49 = vpop.permute.xlu0 %9640  ;;  %v4959_v27 = vmax.f32 %v11415_v33, %v4946_v39  ;;  %v10449_v33 = vld [vmem:[#allocation10 + $0x2a8] sm:$0xff]  }
 0x42f   :  { %v9642_v14 = vunpack.i.l.bf16 %v9641_v49  ;;  %v9643_v28 = vunpack.i.h.bf16 %v9641_v49  ;;  %v10476_v39 = vld [vmem:[#allocation10 + $0x28] sm:$0xff]   ;;  %v10477_v49 = vld [vmem:[#allocation10 + $0xb0] sm:$0xff]  }
 0x430   :  { %v4965_v3 = vpack.c.bf16 %v4959_v27, %v4959_v27  ;;  %v10478_v27 = vld [vmem:[#allocation10 + $0x60] sm:$0xff]  }
 0x431   :  { %v4945_v54 = vsel %vm2012_vm4, %v9642_v14, %v9637_v25  ;;  %v4947_v1 = vsel %vm2012_vm4, %v9638_v55, %v9643_v28  ;;  %v10473_v55 = vld [vmem:[#allocation10 + $0xb8] sm:$0xff]   ;;  %v10475_v25 = vld [vmem:[#allocation10 + $0xf0] sm:$0xff]  }
 0x432   :  { %v4958_v50 = vmax.f32 %v11429_v22, %v4945_v54  ;;  %v5170_v43 = vrot.slane %v4965_v3, 2  ;;  %v10455_v22 = vld [vmem:[#allocation10 + $0x2d8] sm:$0xff]   ;;  %v4960_v19 = vmax.f32 %v11417_v32, %v4947_v1  ;;  %v10481_v54 = vld [vmem:[#allocation10 + $0xa8] sm:$0xff]   ;;  %v10498_v1 = vld [vmem:[#allocation10 + $0xc0] sm:$0xff]  }
 0x434   :  { %v11506_v8 = vpack.c.bf16 %v4958_v50, %v4958_v50  ;;  %5501 = vmatprep.mubr.bf16.mxu1 %v5170_v43  ;;  %v11513_v44 = vpack.c.bf16 %v4960_v19, %v4960_v19  ;;  %v10482_v50 = vld [vmem:[#allocation10 + $0x58] sm:$0xff]   ;;  %v10483_v43 = vld [vmem:[#allocation10 + $0xe0] sm:$0xff]  }
 0x435   :  { %v10501_v19 = vld [vmem:[#allocation10 + $0x138] sm:$0xff]  }
 0x436   :  { %v5169_v46 = vrot.slane %v11506_v8, 2  ;;  %v5171_v32 = vrot.slane %v11513_v44, 2 }
 0x438   :  { %5502 = vmatmul.mubr.bf16.vlgmr.msra.gmra.mxu1 %v5169_v46  ;;  %v10485_v46 = vld [vmem:[#allocation10 + $0xa0] sm:$0xff]  }
 0x439   :  { %9234 = vmatpush3.bf16.msra.mxu1 %v10441_v26  ;;  %v10484_v26 = vld [vmem:[#allocation10 + $0x18] sm:$0xff]  }
 0x43a   :  { %9235 = vmatprep.subr.bf16.mxu1 %v10443_v15  ;;  %v10486_v15 = vld [vmem:[#allocation10 + $0x50] sm:$0xff]  }
 0x43d   :  { %9236 = vmatpush3.bf16.msra.mxu1 %v10445_v12  ;;  %v10487_v12 = vld [vmem:[#allocation10 + $0xd8] sm:$0xff]  }
 0x43e   :  { %9237 = vmatprep.subr.bf16.mxu1 %v10447_v60  ;;  %v10488_v60 = vld [vmem:[#allocation10 + $0x10] sm:$0xff]  }
 0x441   :  { %9238 = vmatpush3.bf16.msra.mxu1 %v10449_v33  ;;  %v10489_v33 = vld [vmem:[#allocation10 + $0x98] sm:$0xff]  }
 0x442   :  { %9239 = vmatprep.subr.bf16.mxu1 %v10451_v52  ;;  %v10490_v52 = vld [vmem:[#allocation10 + $0x48] sm:$0xff]  }
 0x445   :  { %9240 = vmatpush3.bf16.msra.mxu1 %v10453_v24  ;;  %v10491_v24 = vld [vmem:[#allocation10 + $0xd0] sm:$0xff]  }
 0x446   :  { %9241 = vmatprep.subr.bf16.mxu1 %v10455_v22  ;;  %v10492_v22 = vld [vmem:[#allocation10 + $0x8] sm:$0xff]  }
 0x449   :  { %9242 = vmatpush3.bf16.msra.mxu1 %v10457_v6  ;;  %v11526_v6 = vpop.permute.xlu0 %9645 }
 0x44a   :  { %9243 = vmatprep.subr.bf16.mxu1 %v10459_v57  ;;  %v10493_v57 = vld [vmem:[#allocation10 + $0x90] sm:$0xff]  }
 0x44d   :  { %9244 = vmatpush3.bf16.msra.mxu1 %v10461_v40  ;;  %v10494_v40 = vld [vmem:[#allocation10 + $0x40] sm:$0xff]  }
 0x44e   :  { %9245 = vmatprep.subr.bf16.mxu1 %v10463_v62  ;;  %v10495_v62 = vld [vmem:[#allocation10 + $0xc8] sm:$0xff]  }
 0x451   :  { %9246 = vmatpush3.bf16.msra.mxu1 %v10465_v61  ;;  %v9648_v61 = vunpack.i.h.bf16 %v11526_v6 }
 0x452   :  { %9247 = vmatprep.subr.bf16.mxu1 %v10467_v29  ;;  %v9647_v29 = vunpack.i.l.bf16 %v11526_v6  ;;  %v10565_v6 = vld [vmem:[#allocation10 + $0x4b8] sm:$0xff]  }
 0x455   :  { %9248 = vmatpush3.bf16.msra.mxu1 %v10468_v31  ;;  %v10496_v31 = vld [vmem:[#allocation10] sm:$0xff]  }
 0x456   :  { %9277 = vmatprep.subr.bf16.mxu1 %v10471_v5  ;;  %v10497_v5 = vld [vmem:[#allocation10 + $0x88] sm:$0xff]  }
 0x467   :  { %v4942_v10 = vpop.permute.xlu1 %4941 }
 0x468   :  { %v4948_v21 = vsel %vm2012_vm4, %v9643_v28, %v4942_v10  ;;  %v10499_v28 = vld [vmem:[#allocation10 + $0x178] sm:$0xff]  }
 0x469   :  { %v4961_v20 = vmax.f32 %v11424_v38, %v4948_v21  ;;  %v10500_v21 = vld [vmem:[#allocation10 + $0x80] sm:$0xff]  }
 0x46b   :  { %v4967_v63 = vpack.c.bf16 %v4961_v20, %v4961_v20  ;;  %v4944_v4 = vpop.permute.xlu1 %4943  ;;  %v10502_v20 = vld [vmem:[#allocation10 + $0x170] sm:$0xff]  }
 0x46c   :  { %v4949_v59 = vsel %vm2012_vm4, %v4942_v10, %v4944_v4  ;;  %v4957_v11 = vsel %vm2012_vm4, %v4944_v4, %v9642_v14  ;;  %v10479_v14 = vld [vmem:[#allocation10 + $0xe8] sm:$0xff]   ;;  %v6040_v10 = vsel %vm2012_vm4, %v9647_v29, %v9648_v61 }
 0x46d   :  { %v4962_v18 = vmax.f32 %v11454_v7, %v4949_v59  ;;  %v4963_v30 = vmax.f32 %v11460_v34, %v4957_v11  ;;  %v5172_v51 = vrot.slane %v4967_v63, 2  ;;  %v10472_v7 = vld [vmem:[#allocation10 + $0x30] sm:$0xff]   ;;  %v10474_v34 = vld [vmem:[#allocation10 + $0x68] sm:$0xff]   ;;  %v6053_v4 = vmax.f32 %v11436_v36, %v6040_v10  ;;  %v10505_v11 = vld [vmem:[#allocation10 + $0x338] sm:$0xff]  }
 0x46e   :  { %v10504_v59 = vld [vmem:[#allocation10 + $0x130] sm:$0xff]   ;;  %v10535_v10 = vld [vmem:[#allocation10 + $0x478] sm:$0xff]  }
 0x46f   :  { %v11520_v17 = vpack.c.bf16 %v4962_v18, %v4962_v18  ;;  %v11522_v38 = vpack.c.bf16 %v4963_v30, %v4963_v30  ;;  %5541 = vmatprep.mubr.bf16.mxu0 %v5172_v51  ;;  %v10506_v18 = vld [vmem:[#allocation10 + $0x168] sm:$0xff]   ;;  %v10507_v30 = vld [vmem:[#allocation10 + $0x370] sm:$0xff]   ;;  %v11538_v51 = vpack.c.bf16 %v6053_v4, %v6053_v4 }
 0x470   :  { %5542 = vmatmul.mubr.bf16.vlgmr.msra.gmra.mxu0 %v5171_v32  ;;  %v10509_v36 = vld [vmem:[#allocation10 + $0x330] sm:$0xff]   ;;  %v10511_v32 = vld [vmem:[#allocation10 + $0x368] sm:$0xff]  }
 0x471   :  { %v5173_v13 = vrot.slane %v11520_v17, 2  ;;  %9256 = vmatpush3.bf16.msra.mxu0 %v10469_v23  ;;  %5909 = vmatprep.mubr.bf16.mxu0 %v4965_v3  ;;  %v5174_v56 = vrot.slane %v11522_v38, 2  ;;  %v10480_v3 = vld [vmem:[#allocation10 + $0x20] sm:$0xff]   ;;  %v10508_v23 = vld [vmem:[#allocation10 + $0x128] sm:$0xff]  }
 0x472   :  { %9257 = vmatprep.subr.bf16.mxu0 %v10470_v9  ;;  %v10512_v9 = vld [vmem:[#allocation10 + $0x120] sm:$0xff]  }
 0x473   :  { %5581 = vmatprep.mubr.bf16.mxu1 %v5174_v56  ;;  %v10515_v56 = vld [vmem:[#allocation10 + $0x360] sm:$0xff]  }
 0x474   :  { %5582 = vmatmul.mubr.bf16.vlgmr.msra.gmra.mxu1 %v5173_v13  ;;  %v10514_v13 = vld [vmem:[#allocation10 + $0x158] sm:$0xff]  }
 0x475   :  { %9258 = vmatpush3.bf16.msra.mxu0 %v10472_v7  ;;  %9278 = vmatpush3.bf16.msra.mxu1 %v10473_v55  ;;  %v10517_v7 = vld [vmem:[#allocation10 + $0x320] sm:$0xff]   ;;  %v10518_v55 = vld [vmem:[#allocation10 + $0x150] sm:$0xff]  }
 0x476   :  { %5949 = vmatprep.mubr.bf16.mxu1 %v4967_v63  ;;  %9259 = vmatprep.subr.bf16.mxu0 %v10474_v34  ;;  %v10503_v63 = vld [vmem:[#allocation10 + $0x378] sm:$0xff]  }
 0x477   :  { %9279 = vmatprep.subr.bf16.mxu1 %v10475_v25  ;;  %v10519_v34 = vld [vmem:[#allocation10 + $0x358] sm:$0xff]   ;;  %v11542_v25 = vpop.permute.xlu1 %9650 }
 0x479   :  { %9260 = vmatpush3.bf16.msra.mxu0 %v10476_v39  ;;  %9280 = vmatpush3.bf16.msra.mxu1 %v10477_v49  ;;  %v10520_v39 = vld [vmem:[#allocation10 + $0x110] sm:$0xff]   ;;  %v10521_v49 = vld [vmem:[#allocation10 + $0x318] sm:$0xff]  }
 0x47a   :  { %9261 = vmatprep.subr.bf16.mxu0 %v10478_v27  ;;  %9281 = vmatprep.subr.bf16.mxu1 %v10479_v14  ;;  %v10522_v27 = vld [vmem:[#allocation10 + $0x148] sm:$0xff]   ;;  %v10523_v14 = vld [vmem:[#allocation10 + $0x350] sm:$0xff]  }
 0x47d   :  { %9262 = vmatpush3.bf16.msra.mxu0 %v10480_v3  ;;  %9282 = vmatpush3.bf16.msra.mxu1 %v10481_v54  ;;  %v9653_v3 = vunpack.i.h.bf16 %v11542_v25  ;;  %v10524_v54 = vld [vmem:[#allocation10 + $0x108] sm:$0xff]  }
 0x47e   :  { %9263 = vmatprep.subr.bf16.mxu0 %v10482_v50  ;;  %9283 = vmatprep.subr.bf16.mxu1 %v10483_v43  ;;  %v10525_v50 = vld [vmem:[#allocation10 + $0x310] sm:$0xff]   ;;  %v10526_v43 = vld [vmem:[#allocation10 + $0x140] sm:$0xff]  }
 0x481   :  { %9264 = vmatpush3.bf16.msra.mxu0 %v10484_v26  ;;  %9284 = vmatpush3.bf16.msra.mxu1 %v10485_v46  ;;  %v11545_v26 = vpop.permute.xlu0 %6035  ;;  %v10527_v46 = vld [vmem:[#allocation10 + $0x348] sm:$0xff]  }
 0x482   :  { %9265 = vmatprep.subr.bf16.mxu0 %v10486_v15  ;;  %9285 = vmatprep.subr.bf16.mxu1 %v10487_v12  ;;  %v9652_v15 = vunpack.i.l.bf16 %v11542_v25  ;;  %v6042_v12 = vsel %vm2012_vm4, %v9653_v3, %v11545_v26 }
 0x485   :  { %9266 = vmatpush3.bf16.msra.mxu0 %v10488_v60  ;;  %9286 = vmatpush3.bf16.msra.mxu1 %v10489_v33  ;;  %v10528_v60 = vld [vmem:[#allocation10 + $0x100] sm:$0xff]   ;;  %v11552_v33 = vpop.permute.xlu1 %6037 }
 0x486   :  { %9267 = vmatprep.subr.bf16.mxu0 %v10490_v52  ;;  %9287 = vmatprep.subr.bf16.mxu1 %v10491_v24  ;;  %v10529_v52 = vld [vmem:[#allocation10 + $0x308] sm:$0xff]   ;;  %v10531_v24 = vld [vmem:[#allocation10 + $0x3f8] sm:$0xff]   ;;  %v6043_v25 = vsel %vm2012_vm4, %v11545_v26, %v11552_v33 }
 0x487   :  { %v10569_v26 = vld [vmem:[#allocation10 + $0x538] sm:$0xff]  }
 0x489   :  { %9268 = vmatpush3.bf16.msra.mxu0 %v10492_v22  ;;  %9288 = vmatpush3.bf16.msra.mxu1 %v10493_v57  ;;  %v10530_v22 = vld [vmem:[#allocation10 + $0x340] sm:$0xff]   ;;  %v6055_v57 = vmax.f32 %v11462_v16, %v6042_v12  ;;  %v6674_v12 = vrot.slane %v11538_v51, 2 }
 0x48a   :  { %9269 = vmatprep.subr.bf16.mxu0 %v10494_v40  ;;  %9289 = vmatprep.subr.bf16.mxu1 %v10495_v62  ;;  %v6039_v40 = vsel %vm2012_vm4, %v9652_v15, %v9647_v29  ;;  %v6051_v62 = vsel %vm2012_vm4, %v11552_v33, %v9652_v15  ;;  %v10536_v29 = vld [vmem:[#allocation10 + $0x3b0] sm:$0xff]  }
 0x48b   :  { %v6057_v16 = vmax.f32 %v11483_v41, %v6051_v62  ;;  %v10540_v41 = vld [vmem:[#allocation10 + $0x3a8] sm:$0xff]  }
 0x48c   :  { %v10575_v62 = vld [vmem:[#allocation10 + $0x568] sm:$0xff]  }
 0x48d   :  { %9270 = vmatpush3.bf16.msra.mxu0 %v10496_v31  ;;  %9290 = vmatpush3.bf16.msra.mxu1 %v10497_v5  ;;  %v10533_v31 = vld [vmem:[#allocation10 + $0x3b8] sm:$0xff]   ;;  %v10532_v5 = vld [vmem:[#allocation10 + $0x300] sm:$0xff]   ;;  %v11568_v4 = vpack.c.bf16 %v6057_v16, %v6057_v16  ;;  %v10582_v16 = vld [vmem:[#allocation10 + $0x4d0] sm:$0xff]  }
 0x48e   :  { %9299 = vmatprep.subr.bf16.mxu0 %v10499_v28  ;;  %9291 = vmatprep.subr.bf16.mxu1 %v10498_v1  ;;  %v10534_v28 = vld [vmem:[#allocation10 + $0x3f0] sm:$0xff]   ;;  %v6052_v1 = vmax.f32 %v11471_v53, %v6039_v40  ;;  %v10574_v40 = vld [vmem:[#allocation10 + $0x4e0] sm:$0xff]  }
 0x48f   :  { %v10539_v53 = vld [vmem:[#allocation10 + $0x470] sm:$0xff]  }
 0x490   :  { %5910 = vmatmul.mubr.bf16.vlgmr.msra.gmra.mxu0 %v11506_v8  ;;  %v10510_v8 = vld [vmem:[#allocation10 + $0x160] sm:$0xff]  }
 0x491   :  { %9300 = vmatpush3.bf16.msra.mxu0 %v10501_v19  ;;  %5989 = vmatprep.mubr.bf16.mxu0 %v11522_v38  ;;  %v10513_v38 = vld [vmem:[#allocation10 + $0x328] sm:$0xff]   ;;  %v11561_v19 = vpack.c.bf16 %v6055_v57, %v6055_v57 }
 0x492   :  { %9292 = vmatpush3.bf16.msra.mxu1 %v10500_v21  ;;  %9301 = vmatprep.subr.bf16.mxu0 %v10502_v20  ;;  %v10537_v21 = vld [vmem:[#allocation10 + $0x438] sm:$0xff]   ;;  %v11566_v20 = vpack.c.bf16 %v6052_v1, %v6052_v1  ;;  %v10579_v1 = vld [vmem:[#allocation10 + $0x560] sm:$0xff]  }
 0x493   :  { %9321 = vmatprep.subr.bf16.mxu1 %v10503_v63  ;;  %v10538_v63 = vld [vmem:[#allocation10 + $0x3e8] sm:$0xff]   ;;  %v6676_v57 = vrot.slane %v11561_v19, 2 }
 0x495   :  { %5950 = vmatmul.mubr.bf16.vlgmr.msra.gmra.mxu1 %v11513_v44  ;;  %9302 = vmatpush3.bf16.msra.mxu0 %v10504_v59  ;;  %v10516_v44 = vld [vmem:[#allocation10 + $0x118] sm:$0xff]   ;;  %v10542_v59 = vld [vmem:[#allocation10 + $0x3e0] sm:$0xff]  }
 0x496   :  { %9322 = vmatpush3.bf16.msra.mxu1 %v10505_v11  ;;  %6481 = vmatprep.mubr.bf16.mxu1 %v11538_v51  ;;  %v10543_v11 = vld [vmem:[#allocation10 + $0x468] sm:$0xff]   ;;  %v10573_v51 = vld [vmem:[#allocation10 + $0x530] sm:$0xff]  }
 0x497   :  { %9303 = vmatprep.subr.bf16.mxu0 %v10506_v18  ;;  %9323 = vmatprep.subr.bf16.mxu1 %v10507_v30  ;;  %v10544_v18 = vld [vmem:[#allocation10 + $0x3a0] sm:$0xff]   ;;  %v10545_v30 = vld [vmem:[#allocation10 + $0x428] sm:$0xff]  }
 0x499   :  { %9304 = vmatpush3.bf16.msra.mxu0 %v10508_v23  ;;  %v10546_v23 = vld [vmem:[#allocation10 + $0x3d8] sm:$0xff]  }
 0x49a   :  { %9324 = vmatpush3.bf16.msra.mxu1 %v10509_v36  ;;  %9305 = vmatprep.subr.bf16.mxu0 %v10510_v8  ;;  %v10547_v36 = vld [vmem:[#allocation10 + $0x460] sm:$0xff]   ;;  %v10548_v8 = vld [vmem:[#allocation10 + $0x398] sm:$0xff]  }
 0x49b   :  { %9325 = vmatprep.subr.bf16.mxu1 %v10511_v32  ;;  %v10549_v32 = vld [vmem:[#allocation10 + $0x420] sm:$0xff]  }
 0x49d   :  { %9306 = vmatpush3.bf16.msra.mxu0 %v10512_v9  ;;  %v10550_v9 = vld [vmem:[#allocation10 + $0x3d0] sm:$0xff]  }
 0x49e   :  { %9326 = vmatpush3.bf16.msra.mxu1 %v10513_v38  ;;  %9307 = vmatprep.subr.bf16.mxu0 %v10514_v13  ;;  %v10551_v38 = vld [vmem:[#allocation10 + $0x458] sm:$0xff]   ;;  %v10552_v13 = vld [vmem:[#allocation10 + $0x390] sm:$0xff]  }
 0x49f   :  { %9327 = vmatprep.subr.bf16.mxu1 %v10515_v56  ;;  %v10553_v56 = vld [vmem:[#allocation10 + $0x418] sm:$0xff]  }
 0x4a1   :  { %9308 = vmatpush3.bf16.msra.mxu0 %v10516_v44  ;;  %v10554_v44 = vld [vmem:[#allocation10 + $0x3c8] sm:$0xff]  }
 0x4a2   :  { %9328 = vmatpush3.bf16.msra.mxu1 %v10517_v7  ;;  %9309 = vmatprep.subr.bf16.mxu0 %v10518_v55  ;;  %v10555_v7 = vld [vmem:[#allocation10 + $0x450] sm:$0xff]   ;;  %v10556_v55 = vld [vmem:[#allocation10 + $0x388] sm:$0xff]  }
 0x4a3   :  { %9329 = vmatprep.subr.bf16.mxu1 %v10519_v34  ;;  %v10557_v34 = vld [vmem:[#allocation10 + $0x410] sm:$0xff]  }
 0x4a5   :  { %9310 = vmatpush3.bf16.msra.mxu0 %v10520_v39  ;;  %v10558_v39 = vld [vmem:[#allocation10 + $0x3c0] sm:$0xff]  }
 0x4a6   :  { %9330 = vmatpush3.bf16.msra.mxu1 %v10521_v49  ;;  %9311 = vmatprep.subr.bf16.mxu0 %v10522_v27  ;;  %v6041_v49 = vsel %vm2012_vm4, %v9648_v61, %v9653_v3  ;;  %v10559_v27 = vld [vmem:[#allocation10 + $0x448] sm:$0xff]   ;;  %v10564_v61 = vld [vmem:[#allocation10 + $0x400] sm:$0xff]   ;;  %v10566_v3 = vld [vmem:[#allocation10 + $0x4f0] sm:$0xff]  }
 0x4a7   :  { %9331 = vmatprep.subr.bf16.mxu1 %v10523_v14  ;;  %v10560_v14 = vld [vmem:[#allocation10 + $0x380] sm:$0xff]  }
 0x4a9   :  { %9312 = vmatpush3.bf16.msra.mxu0 %v10524_v54  ;;  %v6054_v54 = vmax.f32 %v11433_v35, %v6041_v49  ;;  %v6056_v35 = vmax.f32 %v11464_v45, %v6043_v25  ;;  %v10572_v45 = vld [vmem:[#allocation10 + $0x4a8] sm:$0xff]  }
 0x4aa   :  { %9332 = vmatpush3.bf16.msra.mxu1 %v10525_v50  ;;  %9313 = vmatprep.subr.bf16.mxu0 %v10526_v43  ;;  %v10561_v50 = vld [vmem:[#allocation10 + $0x408] sm:$0xff]   ;;  %v10563_v43 = vld [vmem:[#allocation10 + $0x4f8] sm:$0xff]  }
 0x4ab   :  { %9333 = vmatprep.subr.bf16.mxu1 %v10527_v46  ;;  %v10562_v46 = vld [vmem:[#allocation10 + $0x440] sm:$0xff]   ;;  %v11581_v15 = vpack.c.bf16 %v6054_v54, %v6054_v54  ;;  %v11586_v33 = vpack.c.bf16 %v6056_v35, %v6056_v35  ;;  %v10607_v25 = vld [vmem:[#allocation10 + $0x668] sm:$0xff]   ;;  %v10610_v35 = vld [vmem:[#allocation10 + $0x5d8] sm:$0xff]  }
 0x4ad   :  { %9314 = vmatpush3.bf16.msra.mxu0 %v10528_v60  ;;  %v10567_v60 = vld [vmem:[#allocation10 + $0x578] sm:$0xff]   ;;  %v6675_v54 = vrot.slane %v11581_v15, 2 }
 0x4ae   :  { %9334 = vmatpush3.bf16.msra.mxu1 %v10529_v52  ;;  %9343 = vmatprep.subr.bf16.mxu0 %v10531_v24  ;;  %v10568_v52 = vld [vmem:[#allocation10 + $0x4b0] sm:$0xff]   ;;  %v10570_v24 = vld [vmem:[#allocation10 + $0x4e8] sm:$0xff]  }
 0x4af   :  { %9335 = vmatprep.subr.bf16.mxu1 %v10530_v22  ;;  %v10571_v22 = vld [vmem:[#allocation10 + $0x570] sm:$0xff]  }
 0x4b0   :  { %5990 = vmatmul.mubr.bf16.vlgmr.msra.gmra.mxu0 %v11520_v17  ;;  %v10541_v17 = vld [vmem:[#allocation10 + $0x430] sm:$0xff]  }
 0x4b1   :  { %9344 = vmatpush3.bf16.msra.mxu0 %v10533_v31  ;;  %6521 = vmatprep.mubr.bf16.mxu0 %v11561_v19  ;;  %v10576_v31 = vld [vmem:[#allocation10 + $0x4a0] sm:$0xff]   ;;  %v10580_v19 = vld [vmem:[#allocation10 + $0x498] sm:$0xff]  }
 0x4b2   :  { %9336 = vmatpush3.bf16.msra.mxu1 %v10532_v5  ;;  %9345 = vmatprep.subr.bf16.mxu0 %v10534_v28  ;;  %v10577_v5 = vld [vmem:[#allocation10 + $0x528] sm:$0xff]   ;;  %v10578_v28 = vld [vmem:[#allocation10 + $0x4d8] sm:$0xff]  }
 0x4b3   :  { %9365 = vmatprep.subr.bf16.mxu1 %v10535_v10  ;;  %v10581_v10 = vld [vmem:[#allocation10 + $0x520] sm:$0xff]  }
 0x4b5   :  { %6482 = vmatmul.mubr.bf16.vlgmr.msra.gmra.mxu1 %v11566_v20  ;;  %9346 = vmatpush3.bf16.msra.mxu0 %v10536_v29  ;;  %v10583_v29 = vld [vmem:[#allocation10 + $0x558] sm:$0xff]  }
 0x4b6   :  { %9366 = vmatpush3.bf16.msra.mxu1 %v10537_v21  ;;  %6561 = vmatprep.mubr.bf16.mxu1 %v11568_v4  ;;  %v10584_v21 = vld [vmem:[#allocation10 + $0x490] sm:$0xff]  }
 0x4b7   :  { %9347 = vmatprep.subr.bf16.mxu0 %v10538_v63  ;;  %9367 = vmatprep.subr.bf16.mxu1 %v10539_v53  ;;  %v10585_v63 = vld [vmem:[#allocation10 + $0x518] sm:$0xff]   ;;  %v10586_v53 = vld [vmem:[#allocation10 + $0x4c8] sm:$0xff]  }
 0x4b9   :  { %9348 = vmatpush3.bf16.msra.mxu0 %v10540_v41  ;;  %v10587_v41 = vld [vmem:[#allocation10 + $0x550] sm:$0xff]  }
 0x4ba   :  { %9368 = vmatpush3.bf16.msra.mxu1 %v10541_v17  ;;  %9349 = vmatprep.subr.bf16.mxu0 %v10542_v59  ;;  %v10588_v17 = vld [vmem:[#allocation10 + $0x488] sm:$0xff]   ;;  %v11590_v59 = vpop.permute.xlu0 %9655 }
 0x4bb   :  { %9369 = vmatprep.subr.bf16.mxu1 %v10543_v11  ;;  %v10589_v11 = vld [vmem:[#allocation10 + $0x510] sm:$0xff]  }
 0x4bd   :  { %9350 = vmatpush3.bf16.msra.mxu0 %v10544_v18  ;;  %v10590_v18 = vld [vmem:[#allocation10 + $0x4c0] sm:$0xff]  }
 0x4be   :  { %9370 = vmatpush3.bf16.msra.mxu1 %v10545_v30  ;;  %9351 = vmatprep.subr.bf16.mxu0 %v10546_v23  ;;  %v10591_v30 = vld [vmem:[#allocation10 + $0x548] sm:$0xff]   ;;  %v9658_v23 = vunpack.i.h.bf16 %v11590_v59 }
 0x4bf   :  { %9371 = vmatprep.subr.bf16.mxu1 %v10547_v36  ;;  %v9657_v36 = vunpack.i.l.bf16 %v11590_v59  ;;  %v10661_v59 = vld [vmem:[#allocation10 + $0x7b8] sm:$0xff]  }
 0x4c1   :  { %9352 = vmatpush3.bf16.msra.mxu0 %v10548_v8  ;;  %v10592_v8 = vld [vmem:[#allocation10 + $0x480] sm:$0xff]  }
 0x4c2   :  { %9372 = vmatpush3.bf16.msra.mxu1 %v10549_v32  ;;  %9353 = vmatprep.subr.bf16.mxu0 %v10550_v9  ;;  %v10593_v32 = vld [vmem:[#allocation10 + $0x508] sm:$0xff]   ;;  %v10595_v9 = vld [vmem:[#allocation10 + $0x5f8] sm:$0xff]  }
 0x4c3   :  { %9373 = vmatprep.subr.bf16.mxu1 %v10551_v38  ;;  %v10594_v38 = vld [vmem:[#allocation10 + $0x540] sm:$0xff]  }
 0x4c5   :  { %9354 = vmatpush3.bf16.msra.mxu0 %v10552_v13  ;;  %v10597_v13 = vld [vmem:[#allocation10 + $0x5b8] sm:$0xff]  }
 0x4c6   :  { %9374 = vmatpush3.bf16.msra.mxu1 %v10553_v56  ;;  %9355 = vmatprep.subr.bf16.mxu0 %v10554_v44  ;;  %v7137_v56 = vsel %vm2012_vm4, %v9657_v36, %v9658_v23  ;;  %v6673_v44 = vrot.slane %v11566_v20, 2  ;;  %v10602_v20 = vld [vmem:[#allocation10 + $0x5e8] sm:$0xff]  }
 0x4c7   :  { %9375 = vmatprep.subr.bf16.mxu1 %v10555_v7  ;;  %v10596_v7 = vld [vmem:[#allocation10 + $0x500] sm:$0xff]   ;;  %v7150_v49 = vmax.f32 %v11475_v37, %v7137_v56  ;;  %v10605_v37 = vld [vmem:[#allocation10 + $0x630] sm:$0xff]  }
 0x4c8   :  { %v10630_v56 = vld [vmem:[#allocation10 + $0x6f0] sm:$0xff]  }
 0x4c9   :  { %9356 = vmatpush3.bf16.msra.mxu0 %v10556_v55  ;;  %v10598_v55 = vld [vmem:[#allocation10 + $0x5f0] sm:$0xff]  }
 0x4ca   :  { %9376 = vmatpush3.bf16.msra.mxu1 %v10557_v34  ;;  %9357 = vmatprep.subr.bf16.mxu0 %v10558_v39  ;;  %v6678_v34 = vrot.slane %v11568_v4, 2  ;;  %v10599_v39 = vld [vmem:[#allocation10 + $0x678] sm:$0xff]   ;;  %v10604_v4 = vld [vmem:[#allocation10 + $0x5a8] sm:$0xff]  }
 0x4cb   :  { %9377 = vmatprep.subr.bf16.mxu1 %v10559_v27  ;;  %v10600_v27 = vld [vmem:[#allocation10 + $0x5b0] sm:$0xff]  }
 0x4cd   :  { %9358 = vmatpush3.bf16.msra.mxu0 %v10560_v14  ;;  %v10601_v14 = vld [vmem:[#allocation10 + $0x638] sm:$0xff]  }
 0x4ce   :  { %9378 = vmatpush3.bf16.msra.mxu1 %v10561_v50  ;;  %9387 = vmatprep.subr.bf16.mxu0 %v10563_v43  ;;  %v10603_v50 = vld [vmem:[#allocation10 + $0x670] sm:$0xff]   ;;  %v11603_v43 = vpack.c.bf16 %v7150_v49, %v7150_v49 }
 0x4cf   :  { %9379 = vmatprep.subr.bf16.mxu1 %v10562_v46  ;;  %v10606_v46 = vld [vmem:[#allocation10 + $0x5e0] sm:$0xff]   ;;  %v10635_v49 = vld [vmem:[#allocation10 + $0x770] sm:$0xff]  }
 0x4d0   :  { %6522 = vmatmul.mubr.bf16.vlgmr.msra.gmra.mxu0 %v11581_v15 }
 0x4d1   :  { %9388 = vmatpush3.bf16.msra.mxu0 %v10565_v6  ;;  %7005 = vmatprep.mubr.bf16.mxu0 %v6674_v12 }
 0x4d2   :  { %9380 = vmatpush3.bf16.msra.mxu1 %v10564_v61  ;;  %9389 = vmatprep.subr.bf16.mxu0 %v10566_v3  ;;  %v10608_v61 = vld [vmem:[#allocation10 + $0x5a0] sm:$0xff]   ;;  %v10609_v3 = vld [vmem:[#allocation10 + $0x628] sm:$0xff]  }
 0x4d3   :  { %9409 = vmatprep.subr.bf16.mxu1 %v10567_v60  ;;  %v10611_v60 = vld [vmem:[#allocation10 + $0x660] sm:$0xff]  }
 0x4d5   :  { %6562 = vmatmul.mubr.bf16.vlgmr.msra.gmra.mxu1 %v11586_v33  ;;  %9390 = vmatpush3.bf16.msra.mxu0 %v10568_v52 }
 0x4d6   :  { %9410 = vmatpush3.bf16.msra.mxu1 %v10569_v26  ;;  %7045 = vmatprep.mubr.bf16.mxu1 %v6676_v57  ;;  %v10612_v26 = vld [vmem:[#allocation10 + $0x598] sm:$0xff]   ;;  %v10614_v57 = vld [vmem:[#allocation10 + $0x5d0] sm:$0xff]  }
 0x4d7   :  { %9391 = vmatprep.subr.bf16.mxu0 %v10570_v24  ;;  %9411 = vmatprep.subr.bf16.mxu1 %v10571_v22  ;;  %v10613_v22 = vld [vmem:[#allocation10 + $0x620] sm:$0xff]  }
 0x4d9   :  { %9392 = vmatpush3.bf16.msra.mxu0 %v10572_v45  ;;  %v10615_v45 = vld [vmem:[#allocation10 + $0x658] sm:$0xff]  }
 0x4da   :  { %9412 = vmatpush3.bf16.msra.mxu1 %v10573_v51  ;;  %9393 = vmatprep.subr.bf16.mxu0 %v10574_v40  ;;  %v11608_v51 = vpop.permute.xlu1 %9660  ;;  %v10616_v40 = vld [vmem:[#allocation10 + $0x590] sm:$0xff]  }
 0x4db   :  { %9413 = vmatprep.subr.bf16.mxu1 %v10575_v62  ;;  %v10617_v62 = vld [vmem:[#allocation10 + $0x618] sm:$0xff]  }
 0x4dd   :  { %9394 = vmatpush3.bf16.msra.mxu0 %v10576_v31  ;;  %v10618_v31 = vld [vmem:[#allocation10 + $0x5c8] sm:$0xff]  }
 0x4de   :  { %9414 = vmatpush3.bf16.msra.mxu1 %v10577_v5  ;;  %9395 = vmatprep.subr.bf16.mxu0 %v10578_v28  ;;  %v10619_v5 = vld [vmem:[#allocation10 + $0x650] sm:$0xff]   ;;  %v9663_v28 = vunpack.i.h.bf16 %v11608_v51 }
 0x4df   :  { %9415 = vmatprep.subr.bf16.mxu1 %v10579_v1  ;;  %v10620_v1 = vld [vmem:[#allocation10 + $0x588] sm:$0xff]  }
 0x4e1   :  { %9396 = vmatpush3.bf16.msra.mxu0 %v10580_v19  ;;  %v10621_v19 = vld [vmem:[#allocation10 + $0x610] sm:$0xff]  }
 0x4e2   :  { %9416 = vmatpush3.bf16.msra.mxu1 %v10581_v10  ;;  %9397 = vmatprep.subr.bf16.mxu0 %v10582_v16  ;;  %v10622_v10 = vld [vmem:[#allocation10 + $0x5c0] sm:$0xff]   ;;  %v11611_v16 = vpop.permute.xlu0 %7132 }
 0x4e3   :  { %9417 = vmatprep.subr.bf16.mxu1 %v10583_v29  ;;  %v10623_v29 = vld [vmem:[#allocation10 + $0x648] sm:$0xff]  }
 0x4e5   :  { %9398 = vmatpush3.bf16.msra.mxu0 %v10584_v21  ;;  %v9662_v21 = vunpack.i.l.bf16 %v11608_v51 }
 0x4e6   :  { %9418 = vmatpush3.bf16.msra.mxu1 %v10585_v63  ;;  %9399 = vmatprep.subr.bf16.mxu0 %v10586_v53  ;;  %v7139_v63 = vsel %vm2012_vm4, %v9663_v28, %v11611_v16  ;;  %v10624_v53 = vld [vmem:[#allocation10 + $0x580] sm:$0xff]  }
 0x4e7   :  { %9419 = vmatprep.subr.bf16.mxu1 %v10587_v41  ;;  %v11618_v41 = vpop.permute.xlu1 %7134 }
 0x4e8   :  { %v7140_v51 = vsel %vm2012_vm4, %v11611_v16, %v11618_v41  ;;  %v10664_v16 = vld [vmem:[#allocation10 + $0x7b0] sm:$0xff]  }
 0x4e9   :  { %9400 = vmatpush3.bf16.msra.mxu0 %v10588_v17  ;;  %v10625_v17 = vld [vmem:[#allocation10 + $0x608] sm:$0xff]  }
 0x4ea   :  { %9420 = vmatpush3.bf16.msra.mxu1 %v10589_v11  ;;  %9401 = vmatprep.subr.bf16.mxu0 %v10590_v18  ;;  %v10627_v11 = vld [vmem:[#allocation10 + $0x6f8] sm:$0xff]   ;;  %v10626_v18 = vld [vmem:[#allocation10 + $0x640] sm:$0xff]  }
 0x4eb   :  { %9421 = vmatprep.subr.bf16.mxu1 %v10591_v30  ;;  %v7152_v30 = vmax.f32 %v11485_v42, %v7139_v63  ;;  %v10631_v42 = vld [vmem:[#allocation10 + $0x778] sm:$0xff]  }
 0x4ec   :  { %v10665_v63 = vld [vmem:[#allocation10 + $0x838] sm:$0xff]  }
 0x4ed   :  { %9402 = vmatpush3.bf16.msra.mxu0 %v10592_v8  ;;  %v7136_v8 = vsel %vm2012_vm4, %v9662_v21, %v9657_v36  ;;  %v10632_v36 = vld [vmem:[#allocation10 + $0x6b0] sm:$0xff]  }
 0x4ee   :  { %9422 = vmatpush3.bf16.msra.mxu1 %v10593_v32  ;;  %9431 = vmatprep.subr.bf16.mxu0 %v10595_v9  ;;  %v7148_v32 = vsel %vm2012_vm4, %v11618_v41, %v9662_v21  ;;  %v10629_v9 = vld [vmem:[#allocation10 + $0x6b8] sm:$0xff]  }
 0x4ef   :  { %9423 = vmatprep.subr.bf16.mxu1 %v10594_v38  ;;  %v6677_v38 = vrot.slane %v11586_v33, 2  ;;  %v10633_v33 = vld [vmem:[#allocation10 + $0x738] sm:$0xff]  }
 0x4f0   :  { %7006 = vmatmul.mubr.bf16.vlgmr.msra.gmra.mxu0 %v6673_v44  ;;  %v7149_v44 = vmax.f32 %v11491_v48, %v7136_v8  ;;  %v10668_v8 = vld [vmem:[#allocation10 + $0x7a8] sm:$0xff]  }
 0x4f1   :  { %9432 = vmatpush3.bf16.msra.mxu0 %v10597_v13  ;;  %7085 = vmatprep.mubr.bf16.mxu0 %v6678_v34  ;;  %v10628_v13 = vld [vmem:[#allocation10 + $0x600] sm:$0xff]  }
 0x4f2   :  { %9424 = vmatpush3.bf16.msra.mxu1 %v10596_v7  ;;  %9433 = vmatprep.subr.bf16.mxu0 %v10598_v55  ;;  %v11628_v7 = vpack.c.bf16 %v7152_v30, %v7152_v30  ;;  %v7154_v55 = vmax.f32 %v11498_v2, %v7148_v32  ;;  %v11632_v34 = vpack.c.bf16 %v7149_v44, %v7149_v44  ;;  %v10637_v2 = vld [vmem:[#allocation10 + $0x730] sm:$0xff]   ;;  %v10671_v44 = vld [vmem:[#allocation10 + $0x868] sm:$0xff]  }
 0x4f3   :  { %9453 = vmatprep.subr.bf16.mxu1 %v10599_v39  ;;  %v10634_v39 = vld [vmem:[#allocation10 + $0x6e8] sm:$0xff]  }
 0x4f4   :  { %v11634_v48 = vpack.c.bf16 %v7154_v55, %v7154_v55 }
 0x4f5   :  { %7046 = vmatmul.mubr.bf16.vlgmr.msra.gmra.mxu1 %v6675_v54  ;;  %9434 = vmatpush3.bf16.msra.mxu0 %v10600_v27  ;;  %v10636_v27 = vld [vmem:[#allocation10 + $0x6a8] sm:$0xff]  }
 0x4f6   :  { %9454 = vmatpush3.bf16.msra.mxu1 %v10601_v14  ;;  %7578 = vmatprep.mubr.bf16.mxu1 %v11603_v43  ;;  %v10638_v14 = vld [vmem:[#allocation10 + $0x6e0] sm:$0xff]   ;;  %v10639_v54 = vld [vmem:[#allocation10 + $0x768] sm:$0xff]  }
 0x4f7   :  { %9435 = vmatprep.subr.bf16.mxu0 %v10602_v20  ;;  %9455 = vmatprep.subr.bf16.mxu1 %v10603_v50  ;;  %v10640_v20 = vld [vmem:[#allocation10 + $0x6a0] sm:$0xff]   ;;  %v10641_v50 = vld [vmem:[#allocation10 + $0x728] sm:$0xff]  }
 0x4f8   :  { %v9205_v6 = vpop.f32.mrf.mxu1 }
 0x4f9   :  { %9436 = vmatpush3.bf16.msra.mxu0 %v10604_v4  ;;  %v10642_v4 = vld [vmem:[#allocation10 + $0x6d8] sm:$0xff]  }
 0x4fa   :  { %9456 = vmatpush3.bf16.msra.mxu1 %v10605_v37  ;;  %v9206_v15 = vpop.f32.mrf.mxu1  ;;  %9437 = vmatprep.subr.bf16.mxu0 %v10606_v46  ;;  %v10643_v37 = vld [vmem:[#allocation10 + $0x760] sm:$0xff]   ;;  %v10644_v46 = vld [vmem:[#allocation10 + $0x698] sm:$0xff]  }
 0x4fb   :  { %v11606_v12 = vadd.f32 %v9206_v15, %v9205_v6  ;;  %9457 = vmatprep.subr.bf16.mxu1 %v10607_v25  ;;  %v10645_v25 = vld [vmem:[#allocation10 + $0x720] sm:$0xff]   ;;  %v10646_v6 = vld [vmem:[#allocation10 + $0x6d0] sm:$0xff]  }
 0x4fc   :  { %v9208_v52 = vpop.f32.mrf.mxu1  ;;  %v10648_v15 = vld [vmem:[#allocation10 + $0x690] sm:$0xff]  }
 0x4fd   :  { %9438 = vmatpush3.bf16.msra.mxu0 %v10608_v61  ;;  %v10647_v61 = vld [vmem:[#allocation10 + $0x758] sm:$0xff]   ;;  %v10652_v52 = vld [vmem:[#allocation10 + $0x688] sm:$0xff]  }
 0x4fe   :  { %9458 = vmatpush3.bf16.msra.mxu1 %v10609_v3  ;;  %v9209_v24 = vpop.f32.mrf.mxu1  ;;  %9439 = vmatprep.subr.bf16.mxu0 %v10610_v35  ;;  %v10649_v3 = vld [vmem:[#allocation10 + $0x718] sm:$0xff]   ;;  %v10650_v35 = vld [vmem:[#allocation10 + $0x6c8] sm:$0xff]  }
 0x4ff   :  { %9459 = vmatprep.subr.bf16.mxu1 %v10611_v60  ;;  %v10651_v60 = vld [vmem:[#allocation10 + $0x750] sm:$0xff]   ;;  %v10654_v24 = vld [vmem:[#allocation10 + $0x6c0] sm:$0xff]  }
 0x501   :  { %9440 = vmatpush3.bf16.msra.mxu0 %v10612_v26  ;;  %v10653_v26 = vld [vmem:[#allocation10 + $0x710] sm:$0xff]  }
 0x502   :  { %9460 = vmatpush3.bf16.msra.mxu1 %v10613_v22  ;;  %9441 = vmatprep.subr.bf16.mxu0 %v10614_v57  ;;  %v7138_v22 = vsel %vm2012_vm4, %v9658_v23, %v9663_v28  ;;  %v10655_v57 = vld [vmem:[#allocation10 + $0x748] sm:$0xff]   ;;  %v10660_v23 = vld [vmem:[#allocation10 + $0x700] sm:$0xff]   ;;  %v10662_v28 = vld [vmem:[#allocation10 + $0x7f0] sm:$0xff]  }
 0x503   :  { %9461 = vmatprep.subr.bf16.mxu1 %v10615_v45  ;;  %v10656_v45 = vld [vmem:[#allocation10 + $0x680] sm:$0xff]  }
 0x505   :  { %9442 = vmatpush3.bf16.msra.mxu0 %v10616_v40  ;;  %v7151_v40 = vmax.f32 %v11466_v58, %v7138_v22  ;;  %v7153_v58 = vmax.f32 %v11487_v47, %v7140_v51  ;;  %v10667_v47 = vld [vmem:[#allocation10 + $0x870] sm:$0xff]   ;;  %v7775_v22 = vrot.slane %v11634_v48, 2 }
 0x506   :  { %9462 = vmatpush3.bf16.msra.mxu1 %v10617_v62  ;;  %9443 = vmatprep.subr.bf16.mxu0 %v10618_v31  ;;  %v10657_v62 = vld [vmem:[#allocation10 + $0x708] sm:$0xff]   ;;  %v10659_v31 = vld [vmem:[#allocation10 + $0x7f8] sm:$0xff]  }
 0x507   :  { %9463 = vmatprep.subr.bf16.mxu1 %v10619_v5  ;;  %v10658_v5 = vld [vmem:[#allocation10 + $0x740] sm:$0xff]  }
 0x509   :  { %9444 = vmatpush3.bf16.msra.mxu0 %v10620_v1  ;;  %v11647_v1 = vpack.c.bf16 %v7151_v40, %v7151_v40 }
 0x50a   :  { %9464 = vmatpush3.bf16.msra.mxu1 %v10621_v19  ;;  %9445 = vmatprep.subr.bf16.mxu0 %v10622_v10  ;;  %v7771_v19 = vrot.slane %v11603_v43, 2  ;;  %v10663_v10 = vld [vmem:[#allocation10 + $0x878] sm:$0xff]   ;;  %v7773_v43 = vrot.slane %v11628_v7, 2 }
 0x50b   :  { %9465 = vmatprep.subr.bf16.mxu1 %v10623_v29 }
 0x50d   :  { %9446 = vmatpush3.bf16.msra.mxu0 %v10624_v53  ;;  %v11652_v53 = vpack.c.bf16 %v7153_v58, %v7153_v58 }
 0x50e   :  { %9466 = vmatpush3.bf16.msra.mxu1 %v10625_v17  ;;  %9475 = vmatprep.subr.bf16.mxu0 %v10627_v11  ;;  %v10666_v17 = vld [vmem:[#allocation10 + $0x7e8] sm:$0xff]  }
 0x50f   :  { %9467 = vmatprep.subr.bf16.mxu1 %v10626_v18 }
 0x510   :  { %7086 = vmatmul.mubr.bf16.vlgmr.msra.gmra.mxu0 %v6677_v38  ;;  %v10669_v38 = vld [vmem:[#allocation10 + $0x830] sm:$0xff]  }
 0x511   :  { %9476 = vmatpush3.bf16.msra.mxu0 %v10629_v9  ;;  %7618 = vmatprep.mubr.bf16.mxu0 %v11628_v7  ;;  %v10672_v7 = vld [vmem:[#allocation10 + $0x7a0] sm:$0xff]  }
 0x512   :  { %9468 = vmatpush3.bf16.msra.mxu1 %v10628_v13  ;;  %9477 = vmatprep.subr.bf16.mxu0 %v10630_v56  ;;  %v10670_v13 = vld [vmem:[#allocation10 + $0x7e0] sm:$0xff]  }
 0x513   :  { %9497 = vmatprep.subr.bf16.mxu1 %v10631_v42 }
 0x515   :  { %7579 = vmatmul.mubr.bf16.vlgmr.msra.gmra.mxu1 %v11632_v34  ;;  %9478 = vmatpush3.bf16.msra.mxu0 %v10632_v36  ;;  %v10673_v36 = vld [vmem:[#allocation10 + $0x828] sm:$0xff]  }
 0x516   :  { %9498 = vmatpush3.bf16.msra.mxu1 %v10633_v33  ;;  %7658 = vmatprep.mubr.bf16.mxu1 %v11634_v48  ;;  %v10674_v33 = vld [vmem:[#allocation10 + $0x7d8] sm:$0xff]   ;;  %v10697_v48 = vld [vmem:[#allocation10 + $0x8a8] sm:$0xff]  }
 0x517   :  { %9479 = vmatprep.subr.bf16.mxu0 %v10634_v39  ;;  %9499 = vmatprep.subr.bf16.mxu1 %v10635_v49  ;;  %v10675_v39 = vld [vmem:[#allocation10 + $0x860] sm:$0xff]   ;;  %v10676_v49 = vld [vmem:[#allocation10 + $0x798] sm:$0xff]  }
 0x519   :  { %9480 = vmatpush3.bf16.msra.mxu0 %v10636_v27  ;;  %v10677_v27 = vld [vmem:[#allocation10 + $0x820] sm:$0xff]  }
 0x51a   :  { %9500 = vmatpush3.bf16.msra.mxu1 %v10637_v2  ;;  %9481 = vmatprep.subr.bf16.mxu0 %v10638_v14  ;;  %v10678_v2 = vld [vmem:[#allocation10 + $0x7d0] sm:$0xff]   ;;  %v10679_v14 = vld [vmem:[#allocation10 + $0x858] sm:$0xff]  }
 0x51b   :  { %9501 = vmatprep.subr.bf16.mxu1 %v10639_v54  ;;  %v10680_v54 = vld [vmem:[#allocation10 + $0x790] sm:$0xff]  }
 0x51d   :  { %9482 = vmatpush3.bf16.msra.mxu0 %v10640_v20  ;;  %v10681_v20 = vld [vmem:[#allocation10 + $0x818] sm:$0xff]  }
 0x51e   :  { %9502 = vmatpush3.bf16.msra.mxu1 %v10641_v50  ;;  %9483 = vmatprep.subr.bf16.mxu0 %v10642_v4  ;;  %v10682_v50 = vld [vmem:[#allocation10 + $0x7c8] sm:$0xff]   ;;  %v10683_v4 = vld [vmem:[#allocation10 + $0x850] sm:$0xff]  }
 0x51f   :  { %9503 = vmatprep.subr.bf16.mxu1 %v10643_v37  ;;  %v10684_v37 = vld [vmem:[#allocation10 + $0x788] sm:$0xff]  }
 0x521   :  { %9484 = vmatpush3.bf16.msra.mxu0 %v10644_v46  ;;  %v10685_v46 = vld [vmem:[#allocation10 + $0x810] sm:$0xff]  }
 0x522   :  { %9504 = vmatpush3.bf16.msra.mxu1 %v10645_v25  ;;  %9485 = vmatprep.subr.bf16.mxu0 %v10646_v6  ;;  %v10686_v25 = vld [vmem:[#allocation10 + $0x7c0] sm:$0xff]   ;;  %v10687_v6 = vld [vmem:[#allocation10 + $0x848] sm:$0xff]  }
 0x523   :  { %9505 = vmatprep.subr.bf16.mxu1 %v10647_v61  ;;  %v10688_v61 = vld [vmem:[#allocation10 + $0x780] sm:$0xff]  }
 0x525   :  { %9486 = vmatpush3.bf16.msra.mxu0 %v10648_v15  ;;  %v10689_v15 = vld [vmem:[#allocation10 + $0x808] sm:$0xff]  }
 0x526   :  { %9506 = vmatpush3.bf16.msra.mxu1 %v10649_v3  ;;  %9487 = vmatprep.subr.bf16.mxu0 %v10650_v35  ;;  %v10691_v3 = vld [vmem:[#allocation10 + $0x8f8] sm:$0xff]   ;;  %v10690_v35 = vld [vmem:[#allocation10 + $0x840] sm:$0xff]  }
 0x527   :  { %9507 = vmatprep.subr.bf16.mxu1 %v10651_v60  ;;  %v10693_v60 = vld [vmem:[#allocation10 + $0x8b8] sm:$0xff]  }
 0x529   :  { %9488 = vmatpush3.bf16.msra.mxu0 %v10652_v52  ;;  %v7770_v52 = vrot.slane %v11632_v34, 2 }
 0x52a   :  { %9508 = vmatpush3.bf16.msra.mxu1 %v10653_v26  ;;  %9489 = vmatprep.subr.bf16.mxu0 %v10654_v24  ;;  %v10692_v26 = vld [vmem:[#allocation10 + $0x800] sm:$0xff]   ;;  %v10694_v24 = vld [vmem:[#allocation10 + $0x8f0] sm:$0xff]  }
 0x52b   :  { %9509 = vmatprep.subr.bf16.mxu1 %v10655_v57 }
 0x52d   :  { %9490 = vmatpush3.bf16.msra.mxu0 %v10656_v45  ;;  %v10695_v45 = vld [vmem:[#allocation10 + $0x8b0] sm:$0xff]  }
 0x52e   :  { %9510 = vmatpush3.bf16.msra.mxu1 %v10657_v62  ;;  %9519 = vmatprep.subr.bf16.mxu0 %v10659_v31  ;;  %v10696_v62 = vld [vmem:[#allocation10 + $0x8e8] sm:$0xff]   ;;  %v7772_v31 = vrot.slane %v11647_v1, 2 }
 0x52f   :  { %9511 = vmatprep.subr.bf16.mxu1 %v10658_v5 }
 0x530   :  { %7619 = vmatmul.mubr.bf16.vlgmr.msra.gmra.mxu0 %v11647_v1  ;;  %v9227_v29 = vpop.f32.mrf.mxu0  ;;  %v10700_v1 = vld [vmem:[#allocation10 + $0x8d8] sm:$0xff]  }
 0x531   :  { %9520 = vmatpush3.bf16.msra.mxu0 %v10661_v59  ;;  %8102 = vmatprep.mubr.bf16.mxu0 %v7771_v19 }
 0x532   :  { %9512 = vmatpush3.bf16.msra.mxu1 %v10660_v23  ;;  %v9228_v21 = vpop.f32.mrf.mxu0  ;;  %9521 = vmatprep.subr.bf16.mxu0 %v10662_v28  ;;  %v10698_v28 = vld [vmem:[#allocation10 + $0x8e0] sm:$0xff]  }
 0x533   :  { %v9229_v41 = vadd.f32 %v9228_v21, %v9227_v29  ;;  %9541 = vmatprep.subr.bf16.mxu1 %v10663_v10  ;;  %v10699_v29 = vld [vmem:[#allocation10 + $0x8a0] sm:$0xff]  }
 0x534   :  { %v9230_v11 = vpop.f32.mrf.mxu0  ;;  %v9249_v18 = vpop.f32.mrf.mxu1 }
 0x535   :  { %v5544_v30 = vadd.f32 %v9229_v41, %v11606_v12  ;;  %7659 = vmatmul.mubr.bf16.vlgmr.msra.gmra.mxu1 %v11652_v53  ;;  %9522 = vmatpush3.bf16.msra.mxu0 %v10664_v16  ;;  %v10702_v41 = vld [vmem:[#allocation10 + $0x8d0] sm:$0xff]   ;;  %v10705_v11 = vld [vmem:[#allocation10 + $0x888] sm:$0xff]  }
 0x536   :  { %9542 = vmatpush3.bf16.msra.mxu1 %v10665_v63  ;;  %8142 = vmatprep.mubr.bf16.mxu1 %v7773_v43  ;;  %v9231_v32 = vpop.f32.mrf.mxu0  ;;  %v9250_v9 = vpop.f32.mrf.mxu1  ;;  %v10701_v63 = vld [vmem:[#allocation10 + $0x898] sm:$0xff]   ;;  %v10707_v43 = vld [vmem:[#allocation10 + $0x880] sm:$0xff]  }
 0x537   :  { %v9251_v56 = vadd.f32 %v9250_v9, %v9249_v18  ;;  %9523 = vmatprep.subr.bf16.mxu0 %v10666_v17  ;;  %9543 = vmatprep.subr.bf16.mxu1 %v10667_v47  ;;  %v10703_v17 = vld [vmem:[#allocation10 + $0x890] sm:$0xff]   ;;  %v10704_v47 = vld [vmem:[#allocation10 + $0x8c8] sm:$0xff]   ;;  %v10706_v18 = vld [vmem:[#allocation10 + $0x8c0] sm:$0xff]  }
 0x538   :  { %v9252_v42 = vpop.f32.mrf.mxu1 }
 0x539   :  { %v11657_v55 = vadd.f32 %v9251_v56, %v5544_v30  ;;  %9524 = vmatpush3.bf16.msra.mxu0 %v10668_v8  ;;  %v7774_v30 = vrot.slane %v11652_v53, 2 }
 0x53a   :  { %9544 = vmatpush3.bf16.msra.mxu1 %v10669_v38  ;;  %v9253_v12 = vpop.f32.mrf.mxu1  ;;  %9525 = vmatprep.subr.bf16.mxu0 %v10670_v13 }
 0x53b   :  { %9545 = vmatprep.subr.bf16.mxu1 %v10671_v44 }
 0x53d   :  { %9526 = vmatpush3.bf16.msra.mxu0 %v10672_v7 }
 0x53e   :  { %9546 = vmatpush3.bf16.msra.mxu1 %v10673_v36  ;;  %9527 = vmatprep.subr.bf16.mxu0 %v10674_v33 }
 0x53f   :  { %9547 = vmatprep.subr.bf16.mxu1 %v10675_v39 }
 0x541   :  { %9528 = vmatpush3.bf16.msra.mxu0 %v10676_v49 }
 0x542   :  { %9548 = vmatpush3.bf16.msra.mxu1 %v10677_v27  ;;  %9529 = vmatprep.subr.bf16.mxu0 %v10678_v2 }
 0x543   :  { %9549 = vmatprep.subr.bf16.mxu1 %v10679_v14 }
 0x545   :  { %9530 = vmatpush3.bf16.msra.mxu0 %v10680_v54 }
 0x546   :  { %9550 = vmatpush3.bf16.msra.mxu1 %v10681_v20  ;;  %9531 = vmatprep.subr.bf16.mxu0 %v10682_v50 }
 0x547   :  { %9551 = vmatprep.subr.bf16.mxu1 %v10683_v4 }
 0x549   :  { %9532 = vmatpush3.bf16.msra.mxu0 %v10684_v37  ;;  %v10708_v37 = vld [vmem:[%s11710_s7 + $0x38] sm:$0xff]  }
 0x54a   :  { %9552 = vmatpush3.bf16.msra.mxu1 %v10685_v46  ;;  %9533 = vmatprep.subr.bf16.mxu0 %v10686_v25  ;;  %v10709_v25 = vld [vmem:[%s11710_s7 + $0x30] sm:$0xff]  }
 0x54b   :  { %9553 = vmatprep.subr.bf16.mxu1 %v10687_v6  ;;  %v10710_v6 = vld [vmem:[%s11710_s7 + $0x28] sm:$0xff]  }
 0x54d   :  { %9534 = vmatpush3.bf16.msra.mxu0 %v10688_v61  ;;  %v10711_v61 = vld [vmem:[%s11710_s7 + $0x20] sm:$0xff]  }
 0x54e   :  { %9554 = vmatpush3.bf16.msra.mxu1 %v10689_v15  ;;  %9563 = vmatprep.subr.bf16.mxu0 %v10691_v3  ;;  %v10712_v15 = vld [vmem:[%s11710_s7 + $0x18] sm:$0xff]  }
 0x54f   :  { %9555 = vmatprep.subr.bf16.mxu1 %v10690_v35 }
 0x550   :  { %v9271_v57 = vpop.f32.mrf.mxu0  ;;  %8103 = vmatmul.mubr.bf16.vlgmr.msra.gmra.mxu0 %v7770_v52  ;;  %v10713_v52 = vld [vmem:[%s11710_s7 + $0x10] sm:$0xff]  }
 0x551   :  { %9564 = vmatpush3.bf16.msra.mxu0 %v10693_v60  ;;  %8182 = vmatprep.mubr.bf16.mxu0 %v7775_v22 }
 0x552   :  { %9556 = vmatpush3.bf16.msra.mxu1 %v10692_v26  ;;  %v9272_v40 = vpop.f32.mrf.mxu0  ;;  %9565 = vmatprep.subr.bf16.mxu0 %v10694_v24 }
 0x553   :  { %v9273_v5 = vadd.f32 %v9272_v40, %v9271_v57  ;;  %9594 = vmatprep.subr.bf16.mxu1 %v10903_v0 }
 0x554   :  { %v9274_v34 = vpop.f32.mrf.mxu0 }
 0x555   :  { %v5912_v51 = vadd.f32 %v9273_v5, %v11657_v55  ;;  %v9293_v59 = vpop.f32.mrf.mxu1  ;;  %8143 = vmatmul.mubr.bf16.vlgmr.msra.gmra.mxu1 %v7772_v31  ;;  %9566 = vmatpush3.bf16.msra.mxu0 %v10695_v45  ;;  %v10714_v45 = vld [vmem:[%s11710_s7 + $0x8] sm:$0xff]   ;;  %v10715_v34 = vld [vmem:[%s11710_s7] sm:$0xff]   ;;  %s10905_s7 = smov [#allocation14]  }
 0x556   :  { %v9275_v23 = vpop.f32.mrf.mxu0  ;;  %9567 = vmatprep.subr.bf16.mxu0 %v10696_v62  ;;  %9595 = vmatpush3.bf16.msra.mxu1 %v10708_v37  ;;  %s8333_s3 = sshll.u32 %s10905_s7, 4  ;;  %s8334_s3 = int_to_ptr.vmem [resolvable:$true] %s8333_s3 }
 0x557   :  { %v9294_v58 = vpop.f32.mrf.mxu1  ;;  %9596 = vmatprep.subr.bf16.mxu1 %v10903_v0  ;;  %9610 = vmatprep.mubr.msk.bf16.mxu1 %vm10904_vm5, %v10903_v0  ;;  %s10860_s22 = scalar_lea.vmem %s8334_s3, 32  ;;  %p10865_p8 = scmp.lt.s32.totalorder %s8334_s3, %s8334_s3 }
 0x558   :  { %v9295_v19 = vadd.f32 %v9294_v58, %v9293_v59  ;;  %p10861_p7 = scmp.ne.s32.totalorder %s8334_s3, %s10860_s22  ;;  %p10866_p9 = scmp.lt.s32.totalorder %s10860_s22, %s10860_s22 }
 0x559   :  { %v9296_v10 = vpop.f32.mrf.mxu1  ;;  %9568 = vmatpush3.bf16.msra.mxu0 %v10697_v48 }
 0x55a   :  { %v5952_v16 = vadd.f32 %v9295_v19, %v5912_v51  ;;  %9569 = vmatprep.subr.bf16.mxu0 %v10698_v28  ;;  %9597 = vmatpush3.bf16.msra.mxu1 %v10709_v25  ;;  %p10867_p10 = por %p10866_p9, %p10865_p8 }
 0x55b   :  { %v9297_v21 = vpop.f32.mrf.mxu1  ;;  %9598 = vmatprep.subr.bf16.mxu1 %v10903_v0 }
 0x55c   :  { %p10868_p11 = pnand %p10867_p10, %p10861_p7 }
 0x55d   :  { %9570 = vmatpush3.bf16.msra.mxu0 %v10699_v29 }
 0x55e   :  { %9571 = vmatprep.subr.bf16.mxu0 %v10700_v1  ;;  %9599 = vmatpush3.bf16.msra.mxu1 %v10710_v6  ;;  %v9180_v6 = vld [vmem:[#allocation13] ss:$0 sm:$0xff] }
 0x55f   :  { %9600 = vmatprep.subr.bf16.mxu1 %v10903_v0 }
 0x561   :  { %9572 = vmatpush3.bf16.msra.mxu0 %v10701_v63 }
 0x562   :  { %9573 = vmatprep.subr.bf16.mxu0 %v10702_v41  ;;  %9601 = vmatpush3.bf16.msra.mxu1 %v10711_v61 }
 0x563   :  { %9602 = vmatprep.subr.bf16.mxu1 %v10903_v0 }
 0x565   :  { %9574 = vmatpush3.bf16.msra.mxu0 %v10703_v17 }
 0x566   :  { %9575 = vmatprep.subr.bf16.mxu0 %v10704_v47  ;;  %9603 = vmatpush3.bf16.msra.mxu1 %v10712_v15 }
 0x567   :  { %9604 = vmatprep.subr.bf16.mxu1 %v10903_v0 }
 0x569   :  { %9576 = vmatpush3.bf16.msra.mxu0 %v10705_v11 }
 0x56a   :  { %9577 = vmatprep.subr.bf16.mxu0 %v10706_v18  ;;  %9605 = vmatpush3.bf16.msra.mxu1 %v10713_v52 }
 0x56b   :  { %9606 = vmatprep.subr.bf16.mxu1 %v10903_v0 }
 0x56d   :  { %9578 = vmatpush3.bf16.msra.mxu0 %v10707_v43 }
 0x56e   :  { %9607 = vmatpush3.bf16.msra.mxu1 %v10714_v45 }
 0x56f   :  { %9608 = vmatprep.subr.bf16.mxu1 %v10903_v0 }
 0x570   :  { %v9315_v8 = vpop.f32.mrf.mxu0  ;;  %8183 = vmatmul.mubr.bf16.vlgmr.msra.gmra.mxu0 %v7774_v30 }
 0x572   :  { %v9316_v32 = vpop.f32.mrf.mxu0  ;;  %9609 = vmatpush3.bf16.msra.mxu1 %v10715_v34 }
 0x573   :  { %v9317_v9 = vadd.f32 %v9316_v32, %v9315_v8 }
 0x574   :  { %v9318_v38 = vpop.f32.mrf.mxu0 }
 0x575   :  { %v5992_v13 = vadd.f32 %v9317_v9, %v5952_v16  ;;  %v9337_v56 = vpop.f32.mrf.mxu1 }
 0x576   :  { %v9319_v44 = vpop.f32.mrf.mxu0 }
 0x577   :  { %v9338_v42 = vpop.f32.mrf.mxu1 }
 0x578   :  { %v9339_v55 = vadd.f32 %v9338_v42, %v9337_v56 }
 0x579   :  { %v9340_v7 = vpop.f32.mrf.mxu1 }
 0x57b   :  { %v9341_v12 = vpop.f32.mrf.mxu1 }
 0x590   :  { %v9359_v36 = vpop.f32.mrf.mxu0 }
 0x592   :  { %v9360_v33 = vpop.f32.mrf.mxu0 }
 0x593   :  { %v9361_v39 = vadd.f32 %v9360_v33, %v9359_v36 }
 0x594   :  { %v9362_v49 = vpop.f32.mrf.mxu0 }
 0x595   :  { %v6524_v27 = vadd.f32 %v9361_v39, %v9339_v55  ;;  %v9381_v2 = vpop.f32.mrf.mxu1 }
 0x596   :  { %v9363_v14 = vpop.f32.mrf.mxu0 }
 0x597   :  { %v9382_v53 = vpop.f32.mrf.mxu1 }
 0x598   :  { %v9383_v54 = vadd.f32 %v9382_v53, %v9381_v2 }
 0x599   :  { %v9384_v20 = vpop.f32.mrf.mxu1 }
 0x59a   :  { %v6564_v50 = vadd.f32 %v9383_v54, %v6524_v27  ;;  %v9179_v20 = vld [vmem:[#allocation11] ss:$0 sm:$0xff] }
 0x59b   :  { %v9385_v4 = vpop.f32.mrf.mxu1 }
 0x59c   :  { %v6569_v46 = vadd.f32 %v6564_v50, %v5992_v13 }
 0x5b0   :  { %v9403_v3 = vpop.f32.mrf.mxu0 }
 0x5b2   :  { %v9404_v35 = vpop.f32.mrf.mxu0 }
 0x5b3   :  { %v9405_v60 = vadd.f32 %v9404_v35, %v9403_v3 }
 0x5b4   :  { %v9406_v26 = vpop.f32.mrf.mxu0 }
 0x5b5   :  { %v9425_v24 = vpop.f32.mrf.mxu1 }
 0x5b6   :  { %v9407_v22 = vpop.f32.mrf.mxu0 }
 0x5b7   :  { %v9426_v57 = vpop.f32.mrf.mxu1 }
 0x5b8   :  { %v9427_v40 = vadd.f32 %v9426_v57, %v9425_v24 }
 0x5b9   :  { %v9428_v62 = vpop.f32.mrf.mxu1 }
 0x5ba   :  { %v7048_v31 = vadd.f32 %v9427_v40, %v9405_v60 }
 0x5bb   :  { %v9429_v5 = vpop.f32.mrf.mxu1 }
 0x5d0   :  { %v9447_v51 = vpop.f32.mrf.mxu0 }
 0x5d2   :  { %v9448_v59 = vpop.f32.mrf.mxu0 }
 0x5d3   :  { %v9449_v48 = vadd.f32 %v9448_v59, %v9447_v51 }
 0x5d4   :  { %v9450_v23 = vpop.f32.mrf.mxu0 }
 0x5d5   :  { %v7088_v28 = vadd.f32 %v9449_v48, %v7048_v31  ;;  %v9469_v58 = vpop.f32.mrf.mxu1 }
 0x5d6   :  { %v9451_v19 = vpop.f32.mrf.mxu0 }
 0x5d7   :  { %v7093_v10 = vadd.f32 %v7088_v28, %v6569_v46  ;;  %v9470_v29 = vpop.f32.mrf.mxu1 }
 0x5d8   :  { %v9471_v16 = vadd.f32 %v9470_v29, %v9469_v58 }
 0x5d9   :  { %v9472_v1 = vpop.f32.mrf.mxu1 }
 0x5db   :  { %v9473_v21 = vpop.f32.mrf.mxu1 }
 0x5f0   :  { %v9491_v63 = vpop.f32.mrf.mxu0 }
 0x5f2   :  { %v9492_v41 = vpop.f32.mrf.mxu0 }
 0x5f3   :  { %v9493_v17 = vadd.f32 %v9492_v41, %v9491_v63 }
 0x5f4   :  { %v9494_v47 = vpop.f32.mrf.mxu0 }
 0x5f5   :  { %v9513_v11 = vpop.f32.mrf.mxu1  ;;  %v7621_v0 = vadd.f32 %v9493_v17, %v9471_v16 }
 0x5f6   :  { %v9495_v18 = vpop.f32.mrf.mxu0 }
 0x5f7   :  { %v9514_v43 = vpop.f32.mrf.mxu1 }
 0x5f8   :  { %v9515_v30 = vadd.f32 %v9514_v43, %v9513_v11 }
 0x5f9   :  { %v9516_v8 = vpop.f32.mrf.mxu1 }
 0x5fa   :  { %v7661_v32 = vadd.f32 %v9515_v30, %v7621_v0 }
 0x5fb   :  { %v9517_v9 = vpop.f32.mrf.mxu1 }
 0x5fc   :  { %v7666_v38 = vadd.f32 %v7661_v32, %v7093_v10 }
 0x610   :  { %v9535_v13 = vpop.f32.mrf.mxu0 }
 0x612   :  { %v9536_v56 = vpop.f32.mrf.mxu0 }
 0x613   :  { %v9537_v49 = vadd.f32 %v9536_v56, %v9535_v13 }
 0x614   :  { %v9538_v44 = vpop.f32.mrf.mxu0 }
 0x615   :  { %v9557_v42 = vpop.f32.mrf.mxu1 }
 0x616   :  { %v9539_v55 = vpop.f32.mrf.mxu0 }
 0x617   :  { %v9558_v7 = vpop.f32.mrf.mxu1 }
 0x618   :  { %v9559_v33 = vadd.f32 %v9558_v7, %v9557_v42 }
 0x619   :  { %v9560_v12 = vpop.f32.mrf.mxu1 }
 0x61a   :  { %v8145_v2 = vadd.f32 %v9559_v33, %v9537_v49 }
 0x61b   :  { %v9561_v36 = vpop.f32.mrf.mxu1 }
 0x630   :  { %v9579_v39 = vpop.f32.mrf.mxu0 }
 0x632   :  { %v9580_v27 = vpop.f32.mrf.mxu0 }
 0x633   :  { %v9581_v14 = vadd.f32 %v9580_v27, %v9579_v39 }
 0x634   :  { %v9582_v53 = vpop.f32.mrf.mxu0 }
 0x635   :  { %v8185_v54 = vadd.f32 %v9581_v14, %v8145_v2 }
 0x636   :  { %v9583_v50 = vpop.f32.mrf.mxu0 }
 0x637   :  { %v8190_v4 = vadd.f32 %v8185_v54, %v7666_v38 }
 0x639   :  { %v8198_v37 = vadd.f32 %v9179_v20, %v8190_v4 }
 0x63b   :  { %v8199_v46 = vmax.f32 %v8198_v37, 0.0 }
 0x63d   :  { %v8200_v25 = vpack.c.bf16 %v8199_v46, %v8199_v46 }
 0x63f   :  { %9611 = vmatmul.mubr.bf16.vlgmr.msra.gmra.mxu1 %v8200_v25 }
 0x6ff   :  { %v8306_v61 = vpop.f32.mrf.mxu1 }
 0x700   :  { %v8307_v15 = vadd.f32 %v9180_v6, %v8306_v61 }
 0x701   :  { %v9612_v3 = vpop.f32.mrf.mxu1 }
 0x702   :  { %v8313_v35 = vsel %vm8312_vm6, %v8307_v15, -inf }
 0x703   :  { %8314 = vmax.xlane.f32.xlu0 %v8313_v35  ;;  %v8309_v60 = vpop.f32.mrf.mxu1 }
 0x705   :  { %v9613_v52 = vpop.f32.mrf.mxu1 }
 0x78c   :  { %v8315_v26 = vpop.xlane.xlu0 %8314 }
 0x78d   :  { %v8316_v24 = vsub.f32 %v8307_v15, %v8315_v26 }
 0x78f   :  { %v8317_v22 = vmul.f32 1.442695, %v8316_v24 }
 0x791   :  { %10716 = vpow2.f32 %v8317_v22 }
 0x79e   :  { %v10717_v57 = vpop.eup %10716 }
 0x79f   :  { %v8319_v45 = vsel %vm8312_vm6, %v10717_v57, 0.0 }
 0x7a0   :  { %8320 = vadd.xlane.f32.xlu1 %v8319_v45 }
 0x829   :  { %v8321_v40 = vpop.xlane.xlu1 %8320 }
 0x82a   :  { %10718 = vlog2.f32 %v8321_v40 }
 0x837   :  { %v10719_v62 = vpop.eup %10718 }
 0x838   :  { %v8323_v31 = vmul.f32 0.6931472, %v10719_v62 }
 0x83a   :  { %v8324_v5 = vadd.f32 %v8323_v31, %v8315_v26 }
 0x83c   :  { %v8325_v34 = vsub.f32 %v8307_v15, %v8324_v5 }
 0x83e   :  { %8326 = vst.msk [vmem:[#allocation14] sm:$0x3] %vm8312_vm6, %v8325_v34 }
 0x83f   :  { %10871 = shalt.err (!%p10868_p11)
}
 0x840   :  { %8336 = dma.vmem_to_hbm [thread:$0]  %s8334_s3, 32, %s11712_s9, [#allocation4]  }
 0x841   :  { %10888 = dma.done.wait [#allocation4], 32  }
 0x842   :  { %10889 = vsyncadd [#allocation4], 4294967264 }
 0x843   :  { %8340 = vsyncpa [#allocation3], 1 }
 0x844   :  { %8341 = vsyncpa [#allocation6], 1 }
 0x845   :  { %8342 = vsyncpa [#allocation9], 1 }
 0x846   :  { %8343 = vsyncpa [#allocation12], 1 }
 0x847   :  { %8344 = vsyncpa [#allocation4], 1 }

</bundles_post_ra>
